<compile_context>
chip_gen: v7x
topology: tpu7x:2x2x1
jax: 0.10.0
libtpu: 0.0.40
codegen_flags: <defaults>
</compile_context>

<pallas_src>
import functools

import jax
import jax.numpy as jnp
from jax import lax
from jax.experimental import pallas as pl
from jax.experimental.pallas import tpu as pltpu

_EPS = 1e-5  # PyTorch InstanceNorm2d default (affine=False, track_running_stats=False)


def residual_block_kernel(x_ref, w1_ref, w2_ref, o_ref, *, matmul_dtype):
    """One batch sample per grid step. x_ref/o_ref: (1, H, W, C) NHWC."""
    _, H, W, C = x_ref.shape
    x_in = x_ref[0]
    x32 = x_in.astype(jnp.float32)          # residual path stays f32

    def reflect_pad1(v):
        # width-1 reflection pad (excludes the edge row/col itself); needs H, W >= 2
        vr = jnp.concatenate([v[1:2], v, v[H - 2:H - 1]], axis=0)             # (H+2, W, C)
        return jnp.concatenate([vr[:, 1:2], vr, vr[:, W - 2:W - 1]], axis=1)  # (H+2, W+2, C)

    def conv3x3(v, w_ref):
        # v: (H, W, C) already in matmul_dtype.  Per-tap matmul accumulation:
        # each shifted view is consumed immediately (peak = 1 tap), no im2col
        # slab, no lane-axis concat.  MXU work identical (K = C per tap).
        vp = reflect_pad1(v)                                   # (H+2, W+2, C)
        acc = jnp.zeros((H * W, C), jnp.float32)
        for dy in range(3):
            for dx in range(3):
                tap = vp[dy:dy + H, dx:dx + W, :].reshape(H * W, C)
                acc = acc + jnp.dot(tap, w_ref[dy * 3 + dx],
                                    preferred_element_type=jnp.float32)
        return acc.reshape(H, W, C)

    def inorm(v):
        # Fused single-pass statistics: var = E[x^2] - mean^2 (biased, as PyTorch).
        inv_n = 1.0 / float(H * W)
        s = jnp.sum(v, axis=(0, 1), keepdims=True)
        ss = jnp.sum(v * v, axis=(0, 1), keepdims=True)
        mu = s * inv_n
        var = jnp.maximum(ss * inv_n - mu * mu, 0.0)
        return (v - mu) * lax.rsqrt(var + _EPS)

    # NOTE: conv biases are intentionally dropped -- a per-channel bias followed
    # immediately by affine-free InstanceNorm cancels exactly in (v - mu).
    y = jnp.maximum(inorm(conv3x3(x_in.astype(matmul_dtype), w1_ref)), 0.0)
    y = inorm(conv3x3(y.astype(matmul_dtype), w2_ref))
    o_ref[0] = (x32 + y).astype(o_ref.dtype)


def _vmem_estimate(H, W, C, in_bytes, mm_bytes):
    """Per-grid-step (one sample) VMEM working-set estimate (per-tap path)."""
    tile_in = H * W * C * in_bytes
    tile_f32 = H * W * C * 4
    halo = (H + 2) * (W + 2) * C * mm_bytes          # reflection-padded activation
    weights = 2 * 2 * 9 * C * C * mm_bytes           # two convs, pipeline double-buffered
    return 4 * tile_in + weights + halo + 3 * tile_f32


def residual_block_nhwc(x, w1, w2, *, matmul_dtype=jnp.bfloat16):
    """x: (B, H, W, C) NHWC. w1/w2: HWIO (3, 3, C, C). Returns (B, H, W, C).

    matmul_dtype defaults to bf16 (native MXU dtype on v5e/v6e/v7x); statistics,
    normalization and the residual add stay in f32.  Pass jnp.float32 for a
    bit-exact reference/debug path.
    """
    B, H, W, C = x.shape
    assert H >= 2 and W >= 2, "reflection pad of width 1 needs H, W >= 2"

    # Fold 3x3 taps into the leading weight axis: HWIO (3,3,C,C) -> (9, C, C).
    # Tap index k = dy*3 + dx matches the kernel's loop order (row-major reshape).
    w1f = w1.reshape(9, C, C).astype(matmul_dtype)
    w2f = w2.reshape(9, C, C).astype(matmul_dtype)

    mmb = jnp.dtype(matmul_dtype).itemsize
    est = _vmem_estimate(H, W, C, x.dtype.itemsize, mmb)
    try:
        vmem_cap = pltpu.get_tpu_info().vmem_capacity_bytes
    except Exception:
        vmem_cap = 64 << 20                          # v7x worst case
    cap = (vmem_cap * 3) // 4                        # headroom for Mosaic internals
    # TODO(synk): if `est` ever exceeds `cap` (very large H*W*C per sample), add a
    # spatial grid axis with a 1-row overlapping halo + two-pass InstanceNorm
    # instead of running this whole-sample-per-step path.
    vmem_limit = int(min(max(int(est * 1.25), 32 << 20), cap))

    cost = pl.CostEstimate(
        flops=2 * (2 * 9 * B * H * W * C * C),       # two 3x3 convs
        transcendentals=0,
        bytes_accessed=2 * B * H * W * C * x.dtype.itemsize + 2 * 9 * C * C * mmb,
    )

    kernel = functools.partial(residual_block_kernel, matmul_dtype=matmul_dtype)
    return pl.pallas_call(
        kernel,
        out_shape=jax.ShapeDtypeStruct((B, H, W, C), x.dtype),
        grid_spec=pltpu.PrefetchScalarGridSpec(
            num_scalar_prefetch=0,
            grid=(B,),
            in_specs=[
                pl.BlockSpec((1, H, W, C), lambda b: (b, 0, 0, 0)),   # x: one sample
                pl.BlockSpec((9, C, C), lambda b: (0, 0, 0)),         # w1 (resident)
                pl.BlockSpec((9, C, C), lambda b: (0, 0, 0)),         # w2 (resident)
            ],
            out_specs=pl.BlockSpec((1, H, W, C), lambda b: (b, 0, 0, 0)),
        ),
        compiler_params=pltpu.CompilerParams(
            dimension_semantics=("parallel",),       # shard B across TCs when B > 1
            vmem_limit_bytes=vmem_limit,
        ),
        cost_estimate=cost,
    )(x, w1f, w2f)


def residual_block(x_nchw, w1, b1, w2, b2, *, matmul_dtype=jnp.bfloat16):
    """PyTorch-convention wrapper: x (B, C, H, W) -> (B, C, H, W).

    b1/b2 are accepted for API parity but cancel exactly under the affine-free
    InstanceNorm that follows each conv, so they are not passed to the kernel.
    When chaining blocks, prefer residual_block_nhwc and keep the whole generator
    in NHWC so the layout transposes are paid once per network, not per block.
    """
    del b1, b2  # mathematically dead under InstanceNorm(affine=False)
    x = jnp.transpose(x_nchw, (0, 2, 3, 1))          # NCHW -> NHWC
    out = residual_block_nhwc(x, w1, w2, matmul_dtype=matmul_dtype)
    return jnp.transpose(out, (0, 3, 1, 2))          # NHWC -> NCHW


def residual_block_ref(x_nchw, w1, b1, w2, b2):
    """Pure-JAX reference of the PyTorch module (biases included), for checking."""
    x = jnp.transpose(x_nchw, (0, 2, 3, 1)).astype(jnp.float32)

    def conv(v, w, b):
        vp = jnp.pad(v, ((0, 0), (1, 1), (1, 1), (0, 0)), mode="reflect")
        o = lax.conv_general_dilated(
            vp, w, window_strides=(1, 1), padding="VALID",
            dimension_numbers=("NHWC", "HWIO", "NHWC"))
        return o + b.reshape(1, 1, 1, -1)

    def inorm(v):
        mu = jnp.mean(v, axis=(1, 2), keepdims=True)
        var = jnp.mean((v - mu) ** 2, axis=(1, 2), keepdims=True)
        return (v - mu) * lax.rsqrt(var + _EPS)

    y = jnp.maximum(inorm(conv(x, w1, b1)), 0.0)
    y = inorm(conv(y, w2, b2))
    return jnp.transpose(x + y, (0, 3, 1, 2))


if __name__ == "__main__":
    B, C, H, W = 2, 4, 16, 16
    key = jax.random.PRNGKey(0)
    kx, k1, k2, k3, k4 = jax.random.split(key, 5)

    x = jax.random.normal(kx, (B, C, H, W), dtype=jnp.float32)

    # Deterministic synthetic params (PyTorch-style uniform(-1/sqrt(fan_in), ...)).
    fan_in = C * 3 * 3
    bound = 1.0 / (fan_in ** 0.5)
    w1 = jax.random.uniform(k1, (3, 3, C, C), jnp.float32, -bound, bound)  # HWIO
    b1 = jax.random.uniform(k2, (C,), jnp.float32, -bound, bound)
    w2 = jax.random.uniform(k3, (3, 3, C, C), jnp.float32, -bound, bound)  # HWIO
    b2 = jax.random.uniform(k4, (C,), jnp.float32, -bound, bound)

    ref = jax.block_until_ready(residual_block_ref(x, w1, b1, w2, b2))

    # f32 MXU path (exact semantics of the PyTorch module; also verifies that
    # dropping the biases inside the kernel is a numerical no-op).
    out_f32 = jax.block_until_ready(
        residual_block(x, w1, b1, w2, b2, matmul_dtype=jnp.float32))
    assert out_f32.shape == (B, C, H, W)
    max_err = float(jnp.max(jnp.abs(out_f32 - ref)))
    assert max_err < 1e-4, f"f32 path mismatch vs reference: {max_err}"

    # Default bf16 MXU path (recommended on v5e/v6e/v7x); InstanceNorm absorbs
    # most of the precision loss -- validated with a looser tolerance.
    out_bf16 = jax.block_until_ready(residual_block(x, w1, b1, w2, b2))
    max_err_bf16 = float(jnp.max(jnp.abs(out_bf16 - ref)))
    assert max_err_bf16 < 1e-1, f"bf16 path mismatch vs reference: {max_err_bf16}"

    print("KERNEL_OK")
</pallas_src>

<mosaic_0001>
module attributes {stable_mosaic.version = 11 : i64} {
  func.func @residual_block_kernel(%arg0: i32, %arg1: memref<1x16x16x4xf32, #tpu.memory_space<vmem>>, %arg2: memref<9x4x4xf32, #tpu.memory_space<vmem>>, %arg3: memref<9x4x4xf32, #tpu.memory_space<vmem>>, %arg4: memref<1x16x16x4xf32, #tpu.memory_space<vmem>>) attributes {dimension_semantics = [#tpu.dimension_semantics<parallel>], iteration_bounds = array<i64: 2>, scalar_prefetch = 0 : i64, scratch_operands = 0 : i64, tpu.core_type = #tpu.core_type<tc>, window_params = [{transform_indices = @transform_0, window_bounds = array<i64: 1, 16, 16, 4>}, {pipeline_mode = #tpu.pipeline_mode<synchronous>, transform_indices = @transform_1, window_bounds = array<i64: 9, 4, 4>}, {pipeline_mode = #tpu.pipeline_mode<synchronous>, transform_indices = @transform_2, window_bounds = array<i64: 9, 4, 4>}, {transform_indices = @transform_3, window_bounds = array<i64: 1, 16, 16, 4>}]} {
    %c0 = arith.constant 0 : index
    %c0_0 = arith.constant 0 : index
    %c0_1 = arith.constant 0 : index
    %c0_2 = arith.constant 0 : index
    %0 = vector.load %arg1[%c0, %c0_0, %c0_1, %c0_2] : memref<1x16x16x4xf32, #tpu.memory_space<vmem>>, vector<1x16x16x4xf32>
    %1 = vector.shape_cast %0 : vector<1x16x16x4xf32> to vector<16x16x4xf32>
    %2 = vector.extract_strided_slice %1 {offsets = [1, 0, 0], sizes = [1, 16, 4], strides = [1, 1, 1]} : vector<16x16x4xf32> to vector<1x16x4xf32>
    %3 = vector.extract_strided_slice %1 {offsets = [14, 0, 0], sizes = [1, 16, 4], strides = [1, 1, 1]} : vector<16x16x4xf32> to vector<1x16x4xf32>
    %4 = tpu.concatenate %2, %1, %3 in 0 : vector<1x16x4xf32>, vector<16x16x4xf32>, vector<1x16x4xf32> -> vector<18x16x4xf32>
    %5 = vector.extract_strided_slice %4 {offsets = [0, 1, 0], sizes = [18, 1, 4], strides = [1, 1, 1]} : vector<18x16x4xf32> to vector<18x1x4xf32>
    %6 = vector.extract_strided_slice %4 {offsets = [0, 14, 0], sizes = [18, 1, 4], strides = [1, 1, 1]} : vector<18x16x4xf32> to vector<18x1x4xf32>
    %7 = tpu.concatenate %5, %4, %6 in 1 : vector<18x1x4xf32>, vector<18x16x4xf32>, vector<18x1x4xf32> -> vector<18x18x4xf32>
    %cst = arith.constant 0.000000e+00 : f32
    %8 = vector.broadcast %cst : f32 to vector<256x4xf32>
    %9 = vector.extract_strided_slice %7 {offsets = [0, 0, 0], sizes = [16, 16, 4], strides = [1, 1, 1]} : vector<18x18x4xf32> to vector<16x16x4xf32>
    %10 = vector.shape_cast %9 : vector<16x16x4xf32> to vector<256x4xf32>
    %c0_3 = arith.constant 0 : index
    %c0_4 = arith.constant 0 : index
    %c0_5 = arith.constant 0 : index
    %11 = vector.load %arg2[%c0_3, %c0_4, %c0_5] : memref<9x4x4xf32, #tpu.memory_space<vmem>>, vector<1x4x4xf32>
    %12 = vector.shape_cast %11 : vector<1x4x4xf32> to vector<4x4xf32>
    %cst_6 = arith.constant dense<0.000000e+00> : vector<256x4xf32>
    %13 = tpu.matmul %10, %12, %cst_6 {dimension_numbers = #tpu.dot_dimension_numbers<[1], [0], [0], [1], [0, 0, 1, 1], [], []>} : vector<256x4xf32>, vector<4x4xf32>, vector<256x4xf32> -> vector<256x4xf32>
    %14 = arith.addf %8, %13 : vector<256x4xf32>
    %15 = vector.extract_strided_slice %7 {offsets = [0, 1, 0], sizes = [16, 16, 4], strides = [1, 1, 1]} : vector<18x18x4xf32> to vector<16x16x4xf32>
    %16 = vector.shape_cast %15 : vector<16x16x4xf32> to vector<256x4xf32>
    %c1 = arith.constant 1 : index
    %c0_7 = arith.constant 0 : index
    %c0_8 = arith.constant 0 : index
    %17 = vector.load %arg2[%c1, %c0_7, %c0_8] : memref<9x4x4xf32, #tpu.memory_space<vmem>>, vector<1x4x4xf32>
    %18 = vector.shape_cast %17 : vector<1x4x4xf32> to vector<4x4xf32>
    %cst_9 = arith.constant dense<0.000000e+00> : vector<256x4xf32>
    %19 = tpu.matmul %16, %18, %cst_9 {dimension_numbers = #tpu.dot_dimension_numbers<[1], [0], [0], [1], [0, 0, 1, 1], [], []>} : vector<256x4xf32>, vector<4x4xf32>, vector<256x4xf32> -> vector<256x4xf32>
    %20 = arith.addf %14, %19 : vector<256x4xf32>
    %21 = vector.extract_strided_slice %7 {offsets = [0, 2, 0], sizes = [16, 16, 4], strides = [1, 1, 1]} : vector<18x18x4xf32> to vector<16x16x4xf32>
    %22 = vector.shape_cast %21 : vector<16x16x4xf32> to vector<256x4xf32>
    %c2 = arith.constant 2 : index
    %c0_10 = arith.constant 0 : index
    %c0_11 = arith.constant 0 : index
    %23 = vector.load %arg2[%c2, %c0_10, %c0_11] : memref<9x4x4xf32, #tpu.memory_space<vmem>>, vector<1x4x4xf32>
    %24 = vector.shape_cast %23 : vector<1x4x4xf32> to vector<4x4xf32>
    %cst_12 = arith.constant dense<0.000000e+00> : vector<256x4xf32>
    %25 = tpu.matmul %22, %24, %cst_12 {dimension_numbers = #tpu.dot_dimension_numbers<[1], [0], [0], [1], [0, 0, 1, 1], [], []>} : vector<256x4xf32>, vector<4x4xf32>, vector<256x4xf32> -> vector<256x4xf32>
    %26 = arith.addf %20, %25 : vector<256x4xf32>
    %27 = vector.extract_strided_slice %7 {offsets = [1, 0, 0], sizes = [16, 16, 4], strides = [1, 1, 1]} : vector<18x18x4xf32> to vector<16x16x4xf32>
    %28 = vector.shape_cast %27 : vector<16x16x4xf32> to vector<256x4xf32>
    %c3 = arith.constant 3 : index
    %c0_13 = arith.constant 0 : index
    %c0_14 = arith.constant 0 : index
    %29 = vector.load %arg2[%c3, %c0_13, %c0_14] : memref<9x4x4xf32, #tpu.memory_space<vmem>>, vector<1x4x4xf32>
    %30 = vector.shape_cast %29 : vector<1x4x4xf32> to vector<4x4xf32>
    %cst_15 = arith.constant dense<0.000000e+00> : vector<256x4xf32>
    %31 = tpu.matmul %28, %30, %cst_15 {dimension_numbers = #tpu.dot_dimension_numbers<[1], [0], [0], [1], [0, 0, 1, 1], [], []>} : vector<256x4xf32>, vector<4x4xf32>, vector<256x4xf32> -> vector<256x4xf32>
    %32 = arith.addf %26, %31 : vector<256x4xf32>
    %33 = vector.extract_strided_slice %7 {offsets = [1, 1, 0], sizes = [16, 16, 4], strides = [1, 1, 1]} : vector<18x18x4xf32> to vector<16x16x4xf32>
    %34 = vector.shape_cast %33 : vector<16x16x4xf32> to vector<256x4xf32>
    %c4 = arith.constant 4 : index
    %c0_16 = arith.constant 0 : index
    %c0_17 = arith.constant 0 : index
    %35 = vector.load %arg2[%c4, %c0_16, %c0_17] : memref<9x4x4xf32, #tpu.memory_space<vmem>>, vector<1x4x4xf32>
    %36 = vector.shape_cast %35 : vector<1x4x4xf32> to vector<4x4xf32>
    %cst_18 = arith.constant dense<0.000000e+00> : vector<256x4xf32>
    %37 = tpu.matmul %34, %36, %cst_18 {dimension_numbers = #tpu.dot_dimension_numbers<[1], [0], [0], [1], [0, 0, 1, 1], [], []>} : vector<256x4xf32>, vector<4x4xf32>, vector<256x4xf32> -> vector<256x4xf32>
    %38 = arith.addf %32, %37 : vector<256x4xf32>
    %39 = vector.extract_strided_slice %7 {offsets = [1, 2, 0], sizes = [16, 16, 4], strides = [1, 1, 1]} : vector<18x18x4xf32> to vector<16x16x4xf32>
    %40 = vector.shape_cast %39 : vector<16x16x4xf32> to vector<256x4xf32>
    %c5 = arith.constant 5 : index
    %c0_19 = arith.constant 0 : index
    %c0_20 = arith.constant 0 : index
    %41 = vector.load %arg2[%c5, %c0_19, %c0_20] : memref<9x4x4xf32, #tpu.memory_space<vmem>>, vector<1x4x4xf32>
    %42 = vector.shape_cast %41 : vector<1x4x4xf32> to vector<4x4xf32>
    %cst_21 = arith.constant dense<0.000000e+00> : vector<256x4xf32>
    %43 = tpu.matmul %40, %42, %cst_21 {dimension_numbers = #tpu.dot_dimension_numbers<[1], [0], [0], [1], [0, 0, 1, 1], [], []>} : vector<256x4xf32>, vector<4x4xf32>, vector<256x4xf32> -> vector<256x4xf32>
    %44 = arith.addf %38, %43 : vector<256x4xf32>
    %45 = vector.extract_strided_slice %7 {offsets = [2, 0, 0], sizes = [16, 16, 4], strides = [1, 1, 1]} : vector<18x18x4xf32> to vector<16x16x4xf32>
    %46 = vector.shape_cast %45 : vector<16x16x4xf32> to vector<256x4xf32>
    %c6 = arith.constant 6 : index
    %c0_22 = arith.constant 0 : index
    %c0_23 = arith.constant 0 : index
    %47 = vector.load %arg2[%c6, %c0_22, %c0_23] : memref<9x4x4xf32, #tpu.memory_space<vmem>>, vector<1x4x4xf32>
    %48 = vector.shape_cast %47 : vector<1x4x4xf32> to vector<4x4xf32>
    %cst_24 = arith.constant dense<0.000000e+00> : vector<256x4xf32>
    %49 = tpu.matmul %46, %48, %cst_24 {dimension_numbers = #tpu.dot_dimension_numbers<[1], [0], [0], [1], [0, 0, 1, 1], [], []>} : vector<256x4xf32>, vector<4x4xf32>, vector<256x4xf32> -> vector<256x4xf32>
    %50 = arith.addf %44, %49 : vector<256x4xf32>
    %51 = vector.extract_strided_slice %7 {offsets = [2, 1, 0], sizes = [16, 16, 4], strides = [1, 1, 1]} : vector<18x18x4xf32> to vector<16x16x4xf32>
    %52 = vector.shape_cast %51 : vector<16x16x4xf32> to vector<256x4xf32>
    %c7 = arith.constant 7 : index
    %c0_25 = arith.constant 0 : index
    %c0_26 = arith.constant 0 : index
    %53 = vector.load %arg2[%c7, %c0_25, %c0_26] : memref<9x4x4xf32, #tpu.memory_space<vmem>>, vector<1x4x4xf32>
    %54 = vector.shape_cast %53 : vector<1x4x4xf32> to vector<4x4xf32>
    %cst_27 = arith.constant dense<0.000000e+00> : vector<256x4xf32>
    %55 = tpu.matmul %52, %54, %cst_27 {dimension_numbers = #tpu.dot_dimension_numbers<[1], [0], [0], [1], [0, 0, 1, 1], [], []>} : vector<256x4xf32>, vector<4x4xf32>, vector<256x4xf32> -> vector<256x4xf32>
    %56 = arith.addf %50, %55 : vector<256x4xf32>
    %57 = vector.extract_strided_slice %7 {offsets = [2, 2, 0], sizes = [16, 16, 4], strides = [1, 1, 1]} : vector<18x18x4xf32> to vector<16x16x4xf32>
    %58 = vector.shape_cast %57 : vector<16x16x4xf32> to vector<256x4xf32>
    %c8 = arith.constant 8 : index
    %c0_28 = arith.constant 0 : index
    %c0_29 = arith.constant 0 : index
    %59 = vector.load %arg2[%c8, %c0_28, %c0_29] : memref<9x4x4xf32, #tpu.memory_space<vmem>>, vector<1x4x4xf32>
    %60 = vector.shape_cast %59 : vector<1x4x4xf32> to vector<4x4xf32>
    %cst_30 = arith.constant dense<0.000000e+00> : vector<256x4xf32>
    %61 = tpu.matmul %58, %60, %cst_30 {dimension_numbers = #tpu.dot_dimension_numbers<[1], [0], [0], [1], [0, 0, 1, 1], [], []>} : vector<256x4xf32>, vector<4x4xf32>, vector<256x4xf32> -> vector<256x4xf32>
    %62 = arith.addf %56, %61 : vector<256x4xf32>
    %63 = vector.shape_cast %62 : vector<256x4xf32> to vector<16x16x4xf32>
    %cst_31 = arith.constant dense<0.000000e+00> : vector<4xf32>
    %64 = vector.multi_reduction <add>, %63, %cst_31 [0, 1] : vector<16x16x4xf32> to vector<4xf32>
    %65 = vector.shape_cast %64 : vector<4xf32> to vector<1x1x4xf32>
    %66 = arith.mulf %63, %63 : vector<16x16x4xf32>
    %cst_32 = arith.constant dense<0.000000e+00> : vector<4xf32>
    %67 = vector.multi_reduction <add>, %66, %cst_32 [0, 1] : vector<16x16x4xf32> to vector<4xf32>
    %68 = vector.shape_cast %67 : vector<4xf32> to vector<1x1x4xf32>
    %cst_33 = arith.constant 3.906250e-03 : f32
    %69 = vector.broadcast %cst_33 : f32 to vector<1x1x4xf32>
    %70 = arith.mulf %65, %69 : vector<1x1x4xf32>
    %cst_34 = arith.constant 3.906250e-03 : f32
    %71 = vector.broadcast %cst_34 : f32 to vector<1x1x4xf32>
    %72 = arith.mulf %68, %71 : vector<1x1x4xf32>
    %73 = arith.mulf %70, %70 : vector<1x1x4xf32>
    %74 = arith.subf %72, %73 : vector<1x1x4xf32>
    %cst_35 = arith.constant 0.000000e+00 : f32
    %75 = vector.broadcast %cst_35 : f32 to vector<1x1x4xf32>
    %76 = arith.maximumf %74, %75 : vector<1x1x4xf32>
    %77 = vector.broadcast %70 : vector<1x1x4xf32> to vector<16x16x4xf32>
    %78 = arith.subf %63, %77 : vector<16x16x4xf32>
    %cst_36 = arith.constant 9.99999974E-6 : f32
    %79 = vector.broadcast %cst_36 : f32 to vector<1x1x4xf32>
    %80 = arith.addf %76, %79 : vector<1x1x4xf32>
    %81 = math.rsqrt %80 : vector<1x1x4xf32>
    %82 = vector.broadcast %81 : vector<1x1x4xf32> to vector<16x16x4xf32>
    %83 = arith.mulf %78, %82 : vector<16x16x4xf32>
    %cst_37 = arith.constant 0.000000e+00 : f32
    %84 = vector.broadcast %cst_37 : f32 to vector<16x16x4xf32>
    %85 = arith.maximumf %83, %84 : vector<16x16x4xf32>
    %86 = vector.extract_strided_slice %85 {offsets = [1, 0, 0], sizes = [1, 16, 4], strides = [1, 1, 1]} : vector<16x16x4xf32> to vector<1x16x4xf32>
    %87 = vector.extract_strided_slice %85 {offsets = [14, 0, 0], sizes = [1, 16, 4], strides = [1, 1, 1]} : vector<16x16x4xf32> to vector<1x16x4xf32>
    %88 = tpu.concatenate %86, %85, %87 in 0 : vector<1x16x4xf32>, vector<16x16x4xf32>, vector<1x16x4xf32> -> vector<18x16x4xf32>
    %89 = vector.extract_strided_slice %88 {offsets = [0, 1, 0], sizes = [18, 1, 4], strides = [1, 1, 1]} : vector<18x16x4xf32> to vector<18x1x4xf32>
    %90 = vector.extract_strided_slice %88 {offsets = [0, 14, 0], sizes = [18, 1, 4], strides = [1, 1, 1]} : vector<18x16x4xf32> to vector<18x1x4xf32>
    %91 = tpu.concatenate %89, %88, %90 in 1 : vector<18x1x4xf32>, vector<18x16x4xf32>, vector<18x1x4xf32> -> vector<18x18x4xf32>
    %cst_38 = arith.constant 0.000000e+00 : f32
    %92 = vector.broadcast %cst_38 : f32 to vector<256x4xf32>
    %93 = vector.extract_strided_slice %91 {offsets = [0, 0, 0], sizes = [16, 16, 4], strides = [1, 1, 1]} : vector<18x18x4xf32> to vector<16x16x4xf32>
    %94 = vector.shape_cast %93 : vector<16x16x4xf32> to vector<256x4xf32>
    %c0_39 = arith.constant 0 : index
    %c0_40 = arith.constant 0 : index
    %c0_41 = arith.constant 0 : index
    %95 = vector.load %arg3[%c0_39, %c0_40, %c0_41] : memref<9x4x4xf32, #tpu.memory_space<vmem>>, vector<1x4x4xf32>
    %96 = vector.shape_cast %95 : vector<1x4x4xf32> to vector<4x4xf32>
    %cst_42 = arith.constant dense<0.000000e+00> : vector<256x4xf32>
    %97 = tpu.matmul %94, %96, %cst_42 {dimension_numbers = #tpu.dot_dimension_numbers<[1], [0], [0], [1], [0, 0, 1, 1], [], []>} : vector<256x4xf32>, vector<4x4xf32>, vector<256x4xf32> -> vector<256x4xf32>
    %98 = arith.addf %92, %97 : vector<256x4xf32>
    %99 = vector.extract_strided_slice %91 {offsets = [0, 1, 0], sizes = [16, 16, 4], strides = [1, 1, 1]} : vector<18x18x4xf32> to vector<16x16x4xf32>
    %100 = vector.shape_cast %99 : vector<16x16x4xf32> to vector<256x4xf32>
    %c1_43 = arith.constant 1 : index
    %c0_44 = arith.constant 0 : index
    %c0_45 = arith.constant 0 : index
    %101 = vector.load %arg3[%c1_43, %c0_44, %c0_45] : memref<9x4x4xf32, #tpu.memory_space<vmem>>, vector<1x4x4xf32>
    %102 = vector.shape_cast %101 : vector<1x4x4xf32> to vector<4x4xf32>
    %cst_46 = arith.constant dense<0.000000e+00> : vector<256x4xf32>
    %103 = tpu.matmul %100, %102, %cst_46 {dimension_numbers = #tpu.dot_dimension_numbers<[1], [0], [0], [1], [0, 0, 1, 1], [], []>} : vector<256x4xf32>, vector<4x4xf32>, vector<256x4xf32> -> vector<256x4xf32>
    %104 = arith.addf %98, %103 : vector<256x4xf32>
    %105 = vector.extract_strided_slice %91 {offsets = [0, 2, 0], sizes = [16, 16, 4], strides = [1, 1, 1]} : vector<18x18x4xf32> to vector<16x16x4xf32>
    %106 = vector.shape_cast %105 : vector<16x16x4xf32> to vector<256x4xf32>
    %c2_47 = arith.constant 2 : index
    %c0_48 = arith.constant 0 : index
    %c0_49 = arith.constant 0 : index
    %107 = vector.load %arg3[%c2_47, %c0_48, %c0_49] : memref<9x4x4xf32, #tpu.memory_space<vmem>>, vector<1x4x4xf32>
    %108 = vector.shape_cast %107 : vector<1x4x4xf32> to vector<4x4xf32>
    %cst_50 = arith.constant dense<0.000000e+00> : vector<256x4xf32>
    %109 = tpu.matmul %106, %108, %cst_50 {dimension_numbers = #tpu.dot_dimension_numbers<[1], [0], [0], [1], [0, 0, 1, 1], [], []>} : vector<256x4xf32>, vector<4x4xf32>, vector<256x4xf32> -> vector<256x4xf32>
    %110 = arith.addf %104, %109 : vector<256x4xf32>
    %111 = vector.extract_strided_slice %91 {offsets = [1, 0, 0], sizes = [16, 16, 4], strides = [1, 1, 1]} : vector<18x18x4xf32> to vector<16x16x4xf32>
    %112 = vector.shape_cast %111 : vector<16x16x4xf32> to vector<256x4xf32>
    %c3_51 = arith.constant 3 : index
    %c0_52 = arith.constant 0 : index
    %c0_53 = arith.constant 0 : index
    %113 = vector.load %arg3[%c3_51, %c0_52, %c0_53] : memref<9x4x4xf32, #tpu.memory_space<vmem>>, vector<1x4x4xf32>
    %114 = vector.shape_cast %113 : vector<1x4x4xf32> to vector<4x4xf32>
    %cst_54 = arith.constant dense<0.000000e+00> : vector<256x4xf32>
    %115 = tpu.matmul %112, %114, %cst_54 {dimension_numbers = #tpu.dot_dimension_numbers<[1], [0], [0], [1], [0, 0, 1, 1], [], []>} : vector<256x4xf32>, vector<4x4xf32>, vector<256x4xf32> -> vector<256x4xf32>
    %116 = arith.addf %110, %115 : vector<256x4xf32>
    %117 = vector.extract_strided_slice %91 {offsets = [1, 1, 0], sizes = [16, 16, 4], strides = [1, 1, 1]} : vector<18x18x4xf32> to vector<16x16x4xf32>
    %118 = vector.shape_cast %117 : vector<16x16x4xf32> to vector<256x4xf32>
    %c4_55 = arith.constant 4 : index
    %c0_56 = arith.constant 0 : index
    %c0_57 = arith.constant 0 : index
    %119 = vector.load %arg3[%c4_55, %c0_56, %c0_57] : memref<9x4x4xf32, #tpu.memory_space<vmem>>, vector<1x4x4xf32>
    %120 = vector.shape_cast %119 : vector<1x4x4xf32> to vector<4x4xf32>
    %cst_58 = arith.constant dense<0.000000e+00> : vector<256x4xf32>
    %121 = tpu.matmul %118, %120, %cst_58 {dimension_numbers = #tpu.dot_dimension_numbers<[1], [0], [0], [1], [0, 0, 1, 1], [], []>} : vector<256x4xf32>, vector<4x4xf32>, vector<256x4xf32> -> vector<256x4xf32>
    %122 = arith.addf %116, %121 : vector<256x4xf32>
    %123 = vector.extract_strided_slice %91 {offsets = [1, 2, 0], sizes = [16, 16, 4], strides = [1, 1, 1]} : vector<18x18x4xf32> to vector<16x16x4xf32>
    %124 = vector.shape_cast %123 : vector<16x16x4xf32> to vector<256x4xf32>
    %c5_59 = arith.constant 5 : index
    %c0_60 = arith.constant 0 : index
    %c0_61 = arith.constant 0 : index
    %125 = vector.load %arg3[%c5_59, %c0_60, %c0_61] : memref<9x4x4xf32, #tpu.memory_space<vmem>>, vector<1x4x4xf32>
    %126 = vector.shape_cast %125 : vector<1x4x4xf32> to vector<4x4xf32>
    %cst_62 = arith.constant dense<0.000000e+00> : vector<256x4xf32>
    %127 = tpu.matmul %124, %126, %cst_62 {dimension_numbers = #tpu.dot_dimension_numbers<[1], [0], [0], [1], [0, 0, 1, 1], [], []>} : vector<256x4xf32>, vector<4x4xf32>, vector<256x4xf32> -> vector<256x4xf32>
    %128 = arith.addf %122, %127 : vector<256x4xf32>
    %129 = vector.extract_strided_slice %91 {offsets = [2, 0, 0], sizes = [16, 16, 4], strides = [1, 1, 1]} : vector<18x18x4xf32> to vector<16x16x4xf32>
    %130 = vector.shape_cast %129 : vector<16x16x4xf32> to vector<256x4xf32>
    %c6_63 = arith.constant 6 : index
    %c0_64 = arith.constant 0 : index
    %c0_65 = arith.constant 0 : index
    %131 = vector.load %arg3[%c6_63, %c0_64, %c0_65] : memref<9x4x4xf32, #tpu.memory_space<vmem>>, vector<1x4x4xf32>
    %132 = vector.shape_cast %131 : vector<1x4x4xf32> to vector<4x4xf32>
    %cst_66 = arith.constant dense<0.000000e+00> : vector<256x4xf32>
    %133 = tpu.matmul %130, %132, %cst_66 {dimension_numbers = #tpu.dot_dimension_numbers<[1], [0], [0], [1], [0, 0, 1, 1], [], []>} : vector<256x4xf32>, vector<4x4xf32>, vector<256x4xf32> -> vector<256x4xf32>
    %134 = arith.addf %128, %133 : vector<256x4xf32>
    %135 = vector.extract_strided_slice %91 {offsets = [2, 1, 0], sizes = [16, 16, 4], strides = [1, 1, 1]} : vector<18x18x4xf32> to vector<16x16x4xf32>
    %136 = vector.shape_cast %135 : vector<16x16x4xf32> to vector<256x4xf32>
    %c7_67 = arith.constant 7 : index
    %c0_68 = arith.constant 0 : index
    %c0_69 = arith.constant 0 : index
    %137 = vector.load %arg3[%c7_67, %c0_68, %c0_69] : memref<9x4x4xf32, #tpu.memory_space<vmem>>, vector<1x4x4xf32>
    %138 = vector.shape_cast %137 : vector<1x4x4xf32> to vector<4x4xf32>
    %cst_70 = arith.constant dense<0.000000e+00> : vector<256x4xf32>
    %139 = tpu.matmul %136, %138, %cst_70 {dimension_numbers = #tpu.dot_dimension_numbers<[1], [0], [0], [1], [0, 0, 1, 1], [], []>} : vector<256x4xf32>, vector<4x4xf32>, vector<256x4xf32> -> vector<256x4xf32>
    %140 = arith.addf %134, %139 : vector<256x4xf32>
    %141 = vector.extract_strided_slice %91 {offsets = [2, 2, 0], sizes = [16, 16, 4], strides = [1, 1, 1]} : vector<18x18x4xf32> to vector<16x16x4xf32>
    %142 = vector.shape_cast %141 : vector<16x16x4xf32> to vector<256x4xf32>
    %c8_71 = arith.constant 8 : index
    %c0_72 = arith.constant 0 : index
    %c0_73 = arith.constant 0 : index
    %143 = vector.load %arg3[%c8_71, %c0_72, %c0_73] : memref<9x4x4xf32, #tpu.memory_space<vmem>>, vector<1x4x4xf32>
    %144 = vector.shape_cast %143 : vector<1x4x4xf32> to vector<4x4xf32>
    %cst_74 = arith.constant dense<0.000000e+00> : vector<256x4xf32>
    %145 = tpu.matmul %142, %144, %cst_74 {dimension_numbers = #tpu.dot_dimension_numbers<[1], [0], [0], [1], [0, 0, 1, 1], [], []>} : vector<256x4xf32>, vector<4x4xf32>, vector<256x4xf32> -> vector<256x4xf32>
    %146 = arith.addf %140, %145 : vector<256x4xf32>
    %147 = vector.shape_cast %146 : vector<256x4xf32> to vector<16x16x4xf32>
    %cst_75 = arith.constant dense<0.000000e+00> : vector<4xf32>
    %148 = vector.multi_reduction <add>, %147, %cst_75 [0, 1] : vector<16x16x4xf32> to vector<4xf32>
    %149 = vector.shape_cast %148 : vector<4xf32> to vector<1x1x4xf32>
    %150 = arith.mulf %147, %147 : vector<16x16x4xf32>
    %cst_76 = arith.constant dense<0.000000e+00> : vector<4xf32>
    %151 = vector.multi_reduction <add>, %150, %cst_76 [0, 1] : vector<16x16x4xf32> to vector<4xf32>
    %152 = vector.shape_cast %151 : vector<4xf32> to vector<1x1x4xf32>
    %cst_77 = arith.constant 3.906250e-03 : f32
    %153 = vector.broadcast %cst_77 : f32 to vector<1x1x4xf32>
    %154 = arith.mulf %149, %153 : vector<1x1x4xf32>
    %cst_78 = arith.constant 3.906250e-03 : f32
    %155 = vector.broadcast %cst_78 : f32 to vector<1x1x4xf32>
    %156 = arith.mulf %152, %155 : vector<1x1x4xf32>
    %157 = arith.mulf %154, %154 : vector<1x1x4xf32>
    %158 = arith.subf %156, %157 : vector<1x1x4xf32>
    %cst_79 = arith.constant 0.000000e+00 : f32
    %159 = vector.broadcast %cst_79 : f32 to vector<1x1x4xf32>
    %160 = arith.maximumf %158, %159 : vector<1x1x4xf32>
    %161 = vector.broadcast %154 : vector<1x1x4xf32> to vector<16x16x4xf32>
    %162 = arith.subf %147, %161 : vector<16x16x4xf32>
    %cst_80 = arith.constant 9.99999974E-6 : f32
    %163 = vector.broadcast %cst_80 : f32 to vector<1x1x4xf32>
    %164 = arith.addf %160, %163 : vector<1x1x4xf32>
    %165 = math.rsqrt %164 : vector<1x1x4xf32>
    %166 = vector.broadcast %165 : vector<1x1x4xf32> to vector<16x16x4xf32>
    %167 = arith.mulf %162, %166 : vector<16x16x4xf32>
    %168 = arith.addf %1, %167 : vector<16x16x4xf32>
    %c0_81 = arith.constant 0 : index
    %c0_82 = arith.constant 0 : index
    %c0_83 = arith.constant 0 : index
    %c0_84 = arith.constant 0 : index
    %169 = vector.load %arg4[%c0_81, %c0_82, %c0_83, %c0_84] : memref<1x16x16x4xf32, #tpu.memory_space<vmem>>, vector<1x16x16x4xf32>
    %170 = vector.shape_cast %169 : vector<1x16x16x4xf32> to vector<16x16x4xf32>
    %171 = vector.shape_cast %168 : vector<16x16x4xf32> to vector<1x16x16x4xf32>
    tpu.vector_store %arg4[%c0_81, %c0_82, %c0_83, %c0_84], %171 {strides = array<i32>} : memref<1x16x16x4xf32, #tpu.memory_space<vmem>>, vector<1x16x16x4xf32>,
    return
  }
  func.func @transform_0(%arg0: i32) -> (i32, i32, i32, i32) {
    %c0_i32 = arith.constant 0 : i32
    %c0_i32_0 = arith.constant 0 : i32
    %c0_i32_1 = arith.constant 0 : i32
    %c0_i32_2 = arith.constant 0 : i32
    return %arg0, %c0_i32, %c0_i32_0, %c0_i32_1 : i32, i32, i32, i32
  }
  func.func @transform_1(%arg0: i32) -> (i32, i32, i32) {
    %c0_i32 = arith.constant 0 : i32
    %c0_i32_0 = arith.constant 0 : i32
    %c0_i32_1 = arith.constant 0 : i32
    %c0_i32_2 = arith.constant 0 : i32
    return %c0_i32, %c0_i32_0, %c0_i32_1 : i32, i32, i32
  }
  func.func @transform_2(%arg0: i32) -> (i32, i32, i32) {
    %c0_i32 = arith.constant 0 : i32
    %c0_i32_0 = arith.constant 0 : i32
    %c0_i32_1 = arith.constant 0 : i32
    %c0_i32_2 = arith.constant 0 : i32
    return %c0_i32, %c0_i32_0, %c0_i32_1 : i32, i32, i32
  }
  func.func @transform_3(%arg0: i32) -> (i32, i32, i32, i32) {
    %c0_i32 = arith.constant 0 : i32
    %c0_i32_0 = arith.constant 0 : i32
    %c0_i32_1 = arith.constant 0 : i32
    %c0_i32_2 = arith.constant 0 : i32
    return %arg0, %c0_i32, %c0_i32_0, %c0_i32_1 : i32, i32, i32, i32
  }
}

</mosaic_0001>

<bundles_post_ra>
// kernel: tpu_custom_call.1
= control target key start
LH: loop header
LB: loop body
LE: loop exit
PB: predicated region body
PF: predicated region fallthrough
CT: control target
= control target key end

     0   :  { %s9312_s12 = smov 0   ;;  %s12534_s0 = inlined_call_operand.vmem [shape: f32[2,16,16,4], index: 0, kind: input, shape index: {}]   ;;  %s12535_s1 = inlined_call_operand.vmem [shape: f32[9,4,4], index: 1, kind: input, shape index: {}]   ;;  %s12536_s2 = inlined_call_operand.vmem [shape: f32[9,4,4], index: 2, kind: input, shape index: {}]   ;;  %s12537_s3 = inlined_call_operand.vmem [shape: f32[2,16,16,4], index: 3, kind: output, shape index: {}]  }
   0x1 LB: > { %s6611_s13 = sadd.s32 4294967295, %s9290_s12   ;;  %p6615_p0 = scmp.ge.s32.totalorder %s9290_s12, 1  ;;  %s9290_s12 = sphi %s9312_s12, %s13_s12  }
   0x2   : > { %p137_p1 = scmp.lt.s32.totalorder %s9290_s12, 3 }
   0x4   : > { %p138_p2 = pnand %p6615_p0, %p137_p1 }
   0x6   : > { %141 = sbr.rel (%p138_p2) target bundleno = 1736 (0x6c8), region = 32 }
   0xd   : > { %v6620_v0 = vld [vmem:[%s12535_s1 + $0x4] sm:$0xf]  ;;  %vm582_vm0 = vcmask 1043456   ;;  %p161_p3 = scmp.lt.s32.totalorder %s6611_s13, 1  ;;  %v412_v1 = vld [vmem:[%s12535_s1] sm:$0xf] }
   0xe   : > { %7828 = vmatprep.subr.msk.mxu0 %vm582_vm0, %v6620_v0  ;;  %vm267_vm1 = vcmask 1040384   ;;  %vm443_vm2 = vcmask 1046528   ;;  %vm521_vm3 = vcmask 31744   ;;  %v9385_v37 = vld [vmem:[%s12535_s1 + $0x8] sm:$0xf]  ;;  %vm1099_vm4 = vcmask 1045504  }
   0xf   : > { %7829 = vmatpush3.msk.msra.mxu0 %vm582_vm0, %v6620_v0  ;;  %s13047_s13 = smov (!%p161_p3, %s6611_s13), 1 }
  0x10   : > { %7878 = vmatprep.subr.msk.mxu0 %vm582_vm0, %v412_v1  ;;  %s7232_s18 = sshll.u32 %s13047_s13, 8 }
  0x11   : > { %s9337_s21 = scalar_lea.vmem %s12534_s0, %s7232_s18  ;;  %s12413_s6 = scalar_lea.vmem %s12537_s3, %s7232_s18 }
  0x12   : > { %v173_v2 = vld [vmem:[%s9337_s21 + $0x10] sm:$0xff]  ;;  %v174_v3 = vld [vmem:[%s9337_s21 + $0x18] sm:$0xff]  ;;  %v171_v4 = vld [vmem:[%s9337_s21] sm:$0xff] }
  0x13   : > { %v219_v5 = vrot.slane %v173_v2, 1  ;;  %v268_v6 = vrot.slane %v173_v2, 7  ;;  %v269_v7 = vrot.slane %v174_v3, 7  ;;  %v348_v8 = vrot.slane %v174_v3, 5  ;;  %v172_v9 = vld [vmem:[%s9337_s21 + $0x8] sm:$0xff]  ;;  %v175_v10 = vld [vmem:[%s9337_s21 + $0x20] sm:$0xff] }
  0x14   : > { %v220_v11 = vrot.slane %v171_v4, 1  ;;  %v271_v12 = vrot.slane %v171_v4, 7  ;;  %v272_v13 = vrot.slane %v172_v9, 7  ;;  %v349_v14 = vrot.slane %v172_v9, 5  ;;  %v176_v22 = vld [vmem:[%s9337_s21 + $0x28] sm:$0xff]  ;;  %v177_v27 = vld [vmem:[%s9337_s21 + $0x30] sm:$0xff] }
  0x15   : > { %v9345_v15 = vsel %vm267_vm1, %v268_v6, %v269_v7  ;;  %v9348_v16 = vsel %vm267_vm1, %v219_v5, %v268_v6  ;;  %v9351_v17 = vsel %vm267_vm1, %v269_v7, %v348_v8  ;;  %v221_v18 = vrot.slane %v175_v10, 1  ;;  %v178_v32 = vld [vmem:[%s9337_s21 + $0x38] sm:$0xff]  ;;  %v179_v41 = vld [vmem:[%s9337_s21 + $0x40] sm:$0xff]  ;;  %v180_v50 = vld [vmem:[%s9337_s21 + $0x48] sm:$0xff] }
  0x16   : > { %v444_v19 = vrot.slane %v9348_v16, 1  ;;  %v445_v20 = vrot.slane %v9345_v15, 1  ;;  %v447_v21 = vrot.slane %v9351_v17, 1  ;;  %v9358_v23 = vsel %vm267_vm1, %v271_v12, %v272_v13  ;;  %v181_v54 = vld [vmem:[%s9337_s21 + $0x50] sm:$0xff]  ;;  %v182_v57 = vld [vmem:[%s9337_s21 + $0x58] sm:$0xff]  ;;  %v183_v4 = vld [vmem:[%s9337_s21 + $0x60] sm:$0xff] }
  0x17   : > { %v9361_v24 = vsel %vm267_vm1, %v220_v11, %v271_v12  ;;  %v9364_v25 = vsel %vm267_vm1, %v272_v13, %v349_v14  ;;  %v274_v26 = vrot.slane %v175_v10, 7  ;;  %v450_v31 = vrot.slane %v9358_v23, 1  ;;  %v184_v7 = vld [vmem:[%s9337_s21 + $0x68] sm:$0xff] }
  0x18   : > { %v9368_v28 = vsel %vm443_vm2, %v444_v19, %v445_v20  ;;  %v9371_v29 = vsel %vm443_vm2, %v445_v20, %v447_v21  ;;  %v449_v30 = vrot.slane %v9361_v24, 1  ;;  %v452_v33 = vrot.slane %v9364_v25, 1 }
  0x19   : > { %12739 = vst [vmem:[#allocation2_spill] sm:$0xff] %v9368_v28  ;;  %12740 = vst [vmem:[#allocation3_spill] sm:$0xff] %v9371_v29  ;;  %7830 = vmatprep.mubr.msk.f32.mxu0 %vm521_vm3, %v9368_v28  ;;  %v275_v34 = vrot.slane %v176_v22, 7  ;;  %v9380_v35 = vsel %vm267_vm1, %v221_v18, %v274_v26  ;;  %v350_v36 = vrot.slane %v176_v22, 5  ;;  %v222_v39 = vrot.slane %v177_v27, 1 }
  0x1a   : > { %7831 = vmatmul.mubr.msk.f32.vlgmr.msra.gmra.mrb[0].mxu0 %vm521_vm3, %v9371_v29  ;;  %v9390_v38 = vsel %vm443_vm2, %v449_v30, %v450_v31  ;;  %v277_v40 = vrot.slane %v177_v27, 7  ;;  %v9397_v42 = vsel %vm443_vm2, %v450_v31, %v452_v33  ;;  %v278_v45 = vrot.slane %v178_v32, 7  ;;  %v186_v27 = vld [vmem:[%s9337_s21 + $0x78] sm:$0xff] }
  0x1b   : > { %7879 = vmatpush3.msk.msra.mxu0 %vm582_vm0, %v412_v1  ;;  %7833 = vmatprep.mubr.msk.f32.mxu0 %vm521_vm3, %v9390_v38  ;;  %v9400_v43 = vsel %vm267_vm1, %v274_v26, %v275_v34  ;;  %v9403_v44 = vsel %vm267_vm1, %v275_v34, %v350_v36  ;;  %v454_v46 = vrot.slane %v9380_v35, 1  ;;  %v351_v49 = vrot.slane %v178_v32, 5  ;;  %v185_v26 = vld [vmem:[%s9337_s21 + $0x70] sm:$0xff] }
  0x1c   : > { %v455_v47 = vrot.slane %v9400_v43, 1  ;;  %v9408_v48 = vsel %vm267_vm1, %v222_v39, %v277_v40  ;;  %7928 = vmatprep.subr.msk.mxu0 %vm582_vm0, %v9385_v37  ;;  %v9414_v51 = vsel %vm267_vm1, %v277_v40, %v278_v45  ;;  %v223_v52 = vrot.slane %v179_v41, 1  ;;  %v187_v39 = vld [vmem:[%s9337_s21 + $0x80] sm:$0xff]  ;;  %v188_v40 = vld [vmem:[%s9337_s21 + $0x88] sm:$0xff] }
  0x1d   : > { %v280_v53 = vrot.slane %v179_v41, 7  ;;  %v457_v55 = vrot.slane %v9403_v44, 1  ;;  %v459_v56 = vrot.slane %v9408_v48, 1  ;;  %v460_v58 = vrot.slane %v9414_v51, 1 }
  0x1e   : > { %7834 = vmatmul.mubr.msk.f32.gmra.mrb[2].mxu0 %vm521_vm3, %v9397_v42  ;;  %v9426_v59 = vsel %vm267_vm1, %v278_v45, %v351_v49  ;;  %v281_v60 = vrot.slane %v180_v50, 7  ;;  %v352_v61 = vrot.slane %v180_v50, 5  ;;  %v9429_v62 = vsel %vm443_vm2, %v454_v46, %v455_v47 }
  0x1f   : > { %7836 = vmatprep.mubr.msk.f32.mxu0 %vm521_vm3, %v9368_v28  ;;  %12741 = vst [vmem:[#allocation4_spill] sm:$0xff] %v9429_v62  ;;  %v9432_v63 = vsel %vm267_vm1, %v223_v52, %v280_v53  ;;  %v224_v0 = vrot.slane %v181_v54, 1  ;;  %v283_v1 = vrot.slane %v181_v54, 7  ;;  %v284_v3 = vrot.slane %v182_v57, 7 }
  0x20   : > { %v9435_v2 = vsel %vm267_vm1, %v280_v53, %v281_v60  ;;  %v9441_v5 = vsel %vm443_vm2, %v455_v47, %v457_v55  ;;  %v462_v6 = vrot.slane %v9426_v59, 1  ;;  %v9448_v8 = vsel %vm443_vm2, %v459_v56, %v460_v58 }
  0x21   : > { %12742 = vst [vmem:[#allocation5_spill] sm:$0xff] %v9441_v5  ;;  %12743 = vst [vmem:[#allocation6_spill] sm:$0xff] %v9448_v8  ;;  %v464_v9 = vrot.slane %v9432_v63, 1  ;;  %v465_v10 = vrot.slane %v9435_v2, 1  ;;  %v9453_v11 = vsel %vm267_vm1, %v281_v60, %v352_v61  ;;  %v9456_v12 = vsel %vm267_vm1, %v224_v0, %v283_v1  ;;  %v190_v0 = vld [vmem:[%s9337_s21 + $0x98] sm:$0xff] }
  0x22   : > { %7837 = vmatmul.mubr.msk.f32.gmra.mrb[4].mxu0 %vm521_vm3, %v9371_v29  ;;  %v353_v13 = vrot.slane %v182_v57, 5  ;;  %v225_v14 = vrot.slane %v183_v4, 1  ;;  %v286_v18 = vrot.slane %v183_v4, 7  ;;  %v9459_v19 = vsel %vm267_vm1, %v283_v1, %v284_v3  ;;  %v189_v57 = vld [vmem:[%s9337_s21 + $0x90] sm:$0xff] }
  0x23   : > { %7839 = vmatprep.mubr.msk.f32.mxu0 %vm521_vm3, %v9429_v62  ;;  %v287_v20 = vrot.slane %v184_v7, 7  ;;  %v467_v21 = vrot.slane %v9453_v11, 1  ;;  %v354_v22 = vrot.slane %v184_v7, 5  ;;  %v9469_v30 = vsel %vm443_vm2, %v460_v58, %v462_v6 }
  0x24   : > { %12744 = vst [vmem:[#allocation7_spill] sm:$0xff] %v9469_v30  ;;  %v469_v31 = vrot.slane %v9456_v12, 1  ;;  %v9473_v32 = vsel %vm443_vm2, %v464_v9, %v465_v10  ;;  %v470_v33 = vrot.slane %v9459_v19, 1  ;;  %v9477_v34 = vsel %vm267_vm1, %v284_v3, %v353_v13 }
  0x25   : > { %12745 = vst [vmem:[#allocation8_spill] sm:$0xff] %v9473_v32  ;;  %v9480_v36 = vsel %vm267_vm1, %v225_v14, %v286_v18  ;;  %v9485_v41 = vsel %vm267_vm1, %v286_v18, %v287_v20  ;;  %v226_v45 = vrot.slane %v185_v26, 1  ;;  %v289_v46 = vrot.slane %v185_v26, 7 }
  0x26   : > { %7840 = vmatmul.mubr.msk.f32.gmra.mrb[6].mxu0 %vm521_vm3, %v9441_v5  ;;  %v290_v47 = vrot.slane %v186_v27, 7  ;;  %v9490_v49 = vsel %vm443_vm2, %v465_v10, %v467_v21  ;;  %v9493_v50 = vsel %vm267_vm1, %v287_v20, %v354_v22  ;;  %v355_v52 = vrot.slane %v186_v27, 5  ;;  %v191_v27 = vld [vmem:[%s9337_s21 + $0xa0] sm:$0xff]  ;;  %v200_v5 = vld [vmem:[%s9337_s21 + $0xe8] sm:$0xff] }
  0x27   : > { %7842 = vmatprep.mubr.msk.f32.mxu0 %vm521_vm3, %v9448_v8  ;;  %12746 = vst [vmem:[#allocation9_spill] sm:$0xff] %v9490_v49  ;;  %v472_v53 = vrot.slane %v9477_v34, 1  ;;  %v227_v54 = vrot.slane %v187_v39, 1  ;;  %v292_v55 = vrot.slane %v187_v39, 7  ;;  %v293_v56 = vrot.slane %v188_v40, 7  ;;  %v192_v39 = vld [vmem:[%s9337_s21 + $0xa8] sm:$0xff] }
  0x28   : > { %v9500_v58 = vsel %vm443_vm2, %v469_v31, %v470_v33  ;;  %v474_v60 = vrot.slane %v9480_v36, 1  ;;  %v475_v61 = vrot.slane %v9485_v41, 1  ;;  %v477_v1 = vrot.slane %v9493_v50, 1 }
  0x29   : > { %12747 = vst [vmem:[#allocation10_spill] sm:$0xff] %v9500_v58  ;;  %v9507_v3 = vsel %vm267_vm1, %v289_v46, %v290_v47  ;;  %v9510_v4 = vsel %vm267_vm1, %v226_v45, %v289_v46  ;;  %v9515_v6 = vsel %vm267_vm1, %v290_v47, %v355_v52  ;;  %v356_v7 = vrot.slane %v188_v40, 5 }
  0x2a   : > { %7843 = vmatmul.mubr.msk.f32.gmra.mrb[8].mxu0 %vm521_vm3, %v9469_v30  ;;  %v228_v9 = vrot.slane %v189_v57, 1  ;;  %v295_v10 = vrot.slane %v189_v57, 7  ;;  %v9520_v13 = vsel %vm443_vm2, %v470_v33, %v472_v53  ;;  %v9523_v14 = vsel %vm267_vm1, %v292_v55, %v293_v56 }
  0x2b   : > { %7845 = vmatprep.mubr.msk.f32.mxu0 %vm521_vm3, %v9473_v32  ;;  %12748 = vst [vmem:[#allocation11_spill] sm:$0xff] %v9520_v13  ;;  %v9526_v18 = vsel %vm267_vm1, %v227_v54, %v292_v55  ;;  %v296_v20 = vrot.slane %v190_v0, 7  ;;  %v9529_v21 = vsel %vm443_vm2, %v474_v60, %v475_v61  ;;  %v479_v22 = vrot.slane %v9510_v4, 1  ;;  %v197_v32 = vld [vmem:[%s9337_s21 + $0xd0] sm:$0xff] }
  0x2c   : > { %12749 = vst [vmem:[#allocation12_spill] sm:$0xff] %v9529_v21  ;;  %v480_v26 = vrot.slane %v9507_v3, 1  ;;  %v9535_v31 = vsel %vm443_vm2, %v475_v61, %v477_v1  ;;  %v482_v33 = vrot.slane %v9515_v6, 1  ;;  %v484_v40 = vrot.slane %v9526_v18, 1  ;;  %v193_v61 = vld [vmem:[%s9337_s21 + $0xb0] sm:$0xff] }
  0x2d   : > { %12750 = vst [vmem:[#allocation13_spill] sm:$0xff] %v9535_v31  ;;  %v485_v45 = vrot.slane %v9523_v14, 1  ;;  %v9544_v46 = vsel %vm267_vm1, %v293_v56, %v356_v7  ;;  %v9547_v47 = vsel %vm267_vm1, %v228_v9, %v295_v10  ;;  %v9552_v52 = vsel %vm267_vm1, %v295_v10, %v296_v20  ;;  %v194_v56 = vld [vmem:[%s9337_s21 + $0xb8] sm:$0xff] }
  0x2e   : > { %7846 = vmatmul.mubr.msk.f32.gmra.mrb[10].mxu0 %vm521_vm3, %v9490_v49  ;;  %v357_v53 = vrot.slane %v190_v0, 5  ;;  %v229_v54 = vrot.slane %v191_v27, 1  ;;  %v298_v55 = vrot.slane %v191_v27, 7  ;;  %v9555_v57 = vsel %vm443_vm2, %v479_v22, %v480_v26 }
  0x2f   : > { %7848 = vmatprep.mubr.msk.f32.mxu0 %vm521_vm3, %v9500_v58  ;;  %12751 = vst [vmem:[#allocation14_spill] sm:$0xff] %v9555_v57  ;;  %v299_v60 = vrot.slane %v192_v39, 7  ;;  %v9562_v1 = vsel %vm443_vm2, %v480_v26, %v482_v33  ;;  %v487_v7 = vrot.slane %v9544_v46, 1  ;;  %v489_v9 = vrot.slane %v9547_v47, 1  ;;  %v195_v58 = vld [vmem:[%s9337_s21 + $0xc0] sm:$0xff] }
  0x30   : > { %12752 = vst [vmem:[#allocation15_spill] sm:$0xff] %v9562_v1  ;;  %v490_v0 = vrot.slane %v9552_v52, 1  ;;  %v9570_v10 = vsel %vm443_vm2, %v484_v40, %v485_v45  ;;  %v9573_v22 = vsel %vm267_vm1, %v296_v20, %v357_v53  ;;  %v9576_v27 = vsel %vm267_vm1, %v229_v54, %v298_v55 }
  0x31   : > { %12753 = vst [vmem:[#allocation16_spill] sm:$0xff] %v9570_v10  ;;  %v358_v26 = vrot.slane %v192_v39, 5  ;;  %v9579_v33 = vsel %vm267_vm1, %v298_v55, %v299_v60  ;;  %v9585_v40 = vsel %vm443_vm2, %v485_v45, %v487_v7  ;;  %v492_v53 = vrot.slane %v9573_v22, 1  ;;  %v196_v39 = vld [vmem:[%s9337_s21 + $0xc8] sm:$0xff] }
  0x32   : > { %7849 = vmatmul.mubr.msk.f32.gmra.mrb[12].mxu0 %vm521_vm3, %v9520_v13  ;;  %v302_v13 = vrot.slane %v194_v56, 7  ;;  %12754 = vst [vmem:[#allocation17_spill] sm:$0xff] %v9585_v40  ;;  %v9588_v20 = vsel %vm443_vm2, %v489_v9, %v490_v0  ;;  %v494_v54 = vrot.slane %v9576_v27, 1  ;;  %v495_v55 = vrot.slane %v9579_v33, 1 }
  0x33   : > { %7851 = vmatprep.mubr.msk.f32.mxu0 %vm521_vm3, %v9529_v21  ;;  %v301_v21 = vrot.slane %v193_v61, 7  ;;  %12755 = vst [vmem:[#allocation18_spill] sm:$0xff] %v9588_v20  ;;  %v231_v9 = vrot.slane %v195_v58, 1  ;;  %v305_v49 = vrot.slane %v196_v39, 7  ;;  %v307_v30 = vrot.slane %v197_v32, 7 }
  0x35   : > { %v9600_v45 = vsel %vm267_vm1, %v301_v21, %v302_v13 }
  0x36   : > { %7852 = vmatmul.mubr.msk.f32.gmra.mrb[14].mxu0 %vm521_vm3, %v9535_v31  ;;  %v230_v31 = vrot.slane %v193_v61, 1  ;;  %v9597_v61 = vsel %vm267_vm1, %v299_v60, %v358_v26 }
  0x37   : > { %7854 = vmatprep.mubr.msk.f32.mxu0 %vm521_vm3, %v9555_v57  ;;  %v304_v57 = vrot.slane %v195_v58, 7  ;;  %v497_v60 = vrot.slane %v9597_v61, 1 }
  0x38   : > { %v9603_v7 = vsel %vm267_vm1, %v230_v31, %v301_v21  ;;  %v9616_v21 = vsel %vm443_vm2, %v494_v54, %v495_v55  ;;  %v500_v31 = vrot.slane %v9600_v45, 1  ;;  %v199_v54 = vld [vmem:[%s9337_s21 + $0xe0] sm:$0xff] }
  0x39   : > { %12757 = vst [vmem:[#allocation20_spill] sm:$0xff] %v9616_v21  ;;  %v499_v58 = vrot.slane %v9603_v7, 1  ;;  %v9627_v8 = vsel %vm267_vm1, %v304_v57, %v305_v49 }
  0x3a   : > { %7855 = vmatmul.mubr.msk.f32.gmra.mrb[16].mxu0 %vm521_vm3, %v9562_v1  ;;  %v359_v1 = vrot.slane %v194_v56, 5  ;;  %v198_v56 = vld [vmem:[%s9337_s21 + $0xd8] sm:$0xff] }
  0x3b   : > { %7857 = vmatprep.mubr.msk.f32.mxu0 %vm521_vm3, %v9570_v10  ;;  %v9609_v10 = vsel %vm443_vm2, %v490_v0, %v492_v53  ;;  %v9624_v0 = vsel %vm267_vm1, %v231_v9, %v304_v57  ;;  %v360_v53 = vrot.slane %v196_v39, 5  ;;  %v505_v39 = vrot.slane %v9627_v8, 1 }
  0x3c   : > { %12756 = vst [vmem:[#allocation19_spill] sm:$0xff] %v9609_v10  ;;  %v9621_v26 = vsel %vm267_vm1, %v302_v13, %v359_v1  ;;  %v9636_v13 = vsel %vm443_vm2, %v495_v55, %v497_v60  ;;  %v9639_v1 = vsel %vm443_vm2, %v499_v58, %v500_v31  ;;  %v504_v57 = vrot.slane %v9624_v0, 1 }
  0x3d   : > { %12758 = vst [vmem:[#allocation21_spill] sm:$0xff] %v9636_v13  ;;  %12759 = vst [vmem:[#allocation22_spill] sm:$0xff] %v9639_v1  ;;  %v9645_v9 = vsel %vm267_vm1, %v305_v49, %v360_v53  ;;  %v361_v62 = vrot.slane %v198_v56, 5  ;;  %v233_v55 = vrot.slane %v199_v54, 1  ;;  %v310_v60 = vrot.slane %v199_v54, 7 }
  0x3e   : > { %7858 = vmatmul.mubr.msk.f32.gmra.mrb[18].mxu0 %vm521_vm3, %v9585_v40  ;;  %v232_v40 = vrot.slane %v197_v32, 1  ;;  %v502_v32 = vrot.slane %v9621_v26, 1  ;;  %v311_v58 = vrot.slane %v200_v5, 7  ;;  %v507_v49 = vrot.slane %v9645_v9, 1 }
  0x3f   : > { %7860 = vmatprep.mubr.msk.f32.mxu0 %vm521_vm3, %v9588_v20  ;;  %v308_v20 = vrot.slane %v198_v56, 7  ;;  %v9663_v56 = vsel %vm443_vm2, %v504_v57, %v505_v39  ;;  %v362_v54 = vrot.slane %v200_v5, 5 }
  0x40   : > { %v9658_v29 = vsel %vm443_vm2, %v500_v31, %v502_v32  ;;  %12760 = vst [vmem:[#allocation23_spill] sm:$0xff] %v9663_v56  ;;  %v9680_v31 = vsel %vm443_vm2, %v505_v39, %v507_v49  ;;  %v6721_v49 = vld [vmem:[%s12535_s1 + $0xc] sm:$0xf] }
  0x41   : > { %v9667_v53 = vsel %vm267_vm1, %v308_v20, %v361_v62  ;;  %v9689_v57 = vsel %vm267_vm1, %v311_v58, %v362_v54 }
  0x42   : > { %7861 = vmatmul.mubr.msk.f32.gmra.mrb[20].mxu0 %vm521_vm3, %v9609_v10  ;;  %v9648_v10 = vsel %vm267_vm1, %v232_v40, %v307_v30  ;;  %v512_v32 = vrot.slane %v9667_v53, 1 }
  0x43   : > { %7863 = vmatprep.mubr.msk.f32.mxu0 %vm521_vm3, %v9616_v21  ;;  %v9651_v21 = vsel %vm267_vm1, %v307_v30, %v308_v20  ;;  %v509_v40 = vrot.slane %v9648_v10, 1 }
  0x44   : > { %v510_v30 = vrot.slane %v9651_v21, 1 }
  0x46   : > { %7864 = vmatmul.mubr.msk.f32.gmra.mrb[22].mxu0 %vm521_vm3, %v9636_v13  ;;  %v9670_v13 = vsel %vm267_vm1, %v310_v60, %v311_v58  ;;  %v9684_v62 = vsel %vm443_vm2, %v509_v40, %v510_v30  ;;  %v9696_v39 = vsel %vm443_vm2, %v510_v30, %v512_v32  ;;  %v1101_v40 = vrot.slane %v9345_v15, 2 }
  0x47   : > { %7866 = vmatprep.mubr.msk.f32.mxu0 %vm521_vm3, %v9639_v1  ;;  %v9673_v1 = vsel %vm267_vm1, %v233_v55, %v310_v60  ;;  %12761 = vst [vmem:[#allocation24_spill] sm:$0xff] %v9684_v62  ;;  %v515_v20 = vrot.slane %v9670_v13, 1  ;;  %v517_v55 = vrot.slane %v9689_v57, 1  ;;  %v1103_v30 = vrot.slane %v9351_v17, 2 }
  0x48   : > { %v514_v5 = vrot.slane %v9673_v1, 1  ;;  %v1105_v32 = vrot.slane %v9361_v24, 2  ;;  %v1108_v17 = vrot.slane %v9364_v25, 2  ;;  %v1110_v25 = vrot.slane %v9380_v35, 2 }
  0x49   : > { %v9707_v58 = vsel %vm443_vm2, %v515_v20, %v517_v55 }
  0x4a   : > { %7867 = vmatmul.mubr.msk.f32.gmra.mrb[24].mxu0 %vm521_vm3, %v9658_v29  ;;  %v9700_v60 = vsel %vm443_vm2, %v514_v5, %v515_v20  ;;  %12762 = vst [vmem:[#allocation25_spill] sm:$0xff] %v9707_v58  ;;  %v1106_v5 = vrot.slane %v9358_v23, 2  ;;  %v9792_v20 = vsel %vm1099_vm4, %v1101_v40, %v1103_v30  ;;  %v1111_v30 = vrot.slane %v9400_v43, 2 }
  0x4b   : > { %7869 = vmatprep.mubr.msk.f32.mxu0 %vm521_vm3, %v9663_v56 }
  0x4c   : > { %v9796_v55 = vsel %vm1099_vm4, %v1105_v32, %v1106_v5  ;;  %v9821_v32 = vsel %vm1099_vm4, %v1110_v25, %v1111_v30  ;;  %v1120_v25 = vrot.slane %v9432_v63, 2 }
  0x4d   : > { %12764 = vst [vmem:[#allocation27_spill] sm:$0xff] %v9796_v55  ;;  %12766 = vst [vmem:[#allocation29_spill] sm:$0xff] %v9821_v32 }
  0x4e   : > { %7870 = vmatmul.mubr.msk.f32.gmra.mrb[26].mxu0 %vm521_vm3, %v9680_v31 }
  0x4f   : > { %7872 = vmatprep.mubr.msk.f32.mxu0 %vm521_vm3, %v9684_v62 }
  0x52   : > { %7873 = vmatmul.mubr.msk.f32.gmra.mrb[28].mxu0 %vm521_vm3, %v9696_v39 }
  0x53   : > { %7875 = vmatprep.mubr.msk.f32.mxu0 %vm521_vm3, %v9700_v60 }
  0x56   : > { %7876 = vmatmul.mubr.msk.f32.gmra.mrb[30].mxu0 %vm521_vm3, %v9707_v58 }
  0x57   : > { %7880 = vmatprep.mubr.msk.f32.mxu0 %vm521_vm3, %v9348_v16 }
  0x5a   : > { %7881 = vmatmul.mubr.msk.f32.vlgmr.msra.gmra.mrb[0].mxu0 %vm521_vm3, %v9345_v15 }
  0x5b   : > { %7929 = vmatpush3.msk.msra.mxu0 %vm582_vm0, %v9385_v37  ;;  %7883 = vmatprep.mubr.msk.f32.mxu0 %vm521_vm3, %v9361_v24  ;;  %v1100_v37 = vrot.slane %v9348_v16, 2 }
  0x5c   : > { %7978 = vmatprep.subr.msk.mxu0 %vm582_vm0, %v6721_v49 }
  0x5d   : > { %v9783_v54 = vsel %vm1099_vm4, %v1100_v37, %v1101_v40  ;;  %v9801_v37 = vld [vmem:[%s12535_s1 + $0x10] sm:$0xf]  ;;  %v9809_v40 = vsel %vm1099_vm4, %v1106_v5, %v1108_v17  ;;  %v1115_v5 = vrot.slane %v9408_v48, 2  ;;  %v1116_v17 = vrot.slane %v9414_v51, 2 }
  0x5e   : > { %7884 = vmatmul.mubr.msk.f32.gmra.mrb[2].mxu0 %vm521_vm3, %v9358_v23  ;;  %12763 = vst [vmem:[#allocation26_spill] sm:$0xff] %v9783_v54  ;;  %12765 = vst [vmem:[#allocation28_spill] sm:$0xff] %v9809_v40 }
  0x5f   : > { %7886 = vmatprep.mubr.msk.f32.mxu0 %vm521_vm3, %v9348_v16 }
  0x62   : > { %7887 = vmatmul.mubr.msk.f32.gmra.mrb[4].mxu0 %vm521_vm3, %v9345_v15 }
  0x63   : > { %7889 = vmatprep.mubr.msk.f32.mxu0 %vm521_vm3, %v9380_v35 }
  0x66   : > { %7890 = vmatmul.mubr.msk.f32.gmra.mrb[6].mxu0 %vm521_vm3, %v9400_v43 }
  0x67   : > { %7892 = vmatprep.mubr.msk.f32.mxu0 %vm521_vm3, %v9408_v48 }
  0x6a   : > { %7893 = vmatmul.mubr.msk.f32.gmra.mrb[8].mxu0 %vm521_vm3, %v9414_v51 }
  0x6b   : > { %7895 = vmatprep.mubr.msk.f32.mxu0 %vm521_vm3, %v9432_v63 }
  0x6e   : > { %7896 = vmatmul.mubr.msk.f32.gmra.mrb[10].mxu0 %vm521_vm3, %v9435_v2 }
  0x6f   : > { %7898 = vmatprep.mubr.msk.f32.mxu0 %vm521_vm3, %v9456_v12 }
  0x72   : > { %7899 = vmatmul.mubr.msk.f32.gmra.mrb[12].mxu0 %vm521_vm3, %v9459_v19 }
  0x73   : > { %7901 = vmatprep.mubr.msk.f32.mxu0 %vm521_vm3, %v9480_v36 }
  0x76   : > { %7902 = vmatmul.mubr.msk.f32.gmra.mrb[14].mxu0 %vm521_vm3, %v9485_v41 }
  0x77   : > { %7904 = vmatprep.mubr.msk.f32.mxu0 %vm521_vm3, %v9510_v4 }
  0x7a   : > { %7905 = vmatmul.mubr.msk.f32.gmra.mrb[16].mxu0 %vm521_vm3, %v9507_v3 }
  0x7b   : > { %7907 = vmatprep.mubr.msk.f32.mxu0 %vm521_vm3, %v9526_v18 }
  0x7e   : > { %7908 = vmatmul.mubr.msk.f32.gmra.mrb[18].mxu0 %vm521_vm3, %v9523_v14 }
  0x7f   : > { %7910 = vmatprep.mubr.msk.f32.mxu0 %vm521_vm3, %v9547_v47 }
  0x82   : > { %7911 = vmatmul.mubr.msk.f32.gmra.mrb[20].mxu0 %vm521_vm3, %v9552_v52 }
  0x83   : > { %7913 = vmatprep.mubr.msk.f32.mxu0 %vm521_vm3, %v9576_v27 }
  0x86   : > { %7914 = vmatmul.mubr.msk.f32.gmra.mrb[22].mxu0 %vm521_vm3, %v9579_v33 }
  0x87   : > { %7916 = vmatprep.mubr.msk.f32.mxu0 %vm521_vm3, %v9603_v7 }
  0x8a   : > { %7917 = vmatmul.mubr.msk.f32.gmra.mrb[24].mxu0 %vm521_vm3, %v9600_v45 }
  0x8b   : > { %7919 = vmatprep.mubr.msk.f32.mxu0 %vm521_vm3, %v9624_v0 }
  0x8e   : > { %7920 = vmatmul.mubr.msk.f32.gmra.mrb[26].mxu0 %vm521_vm3, %v9627_v8 }
  0x8f   : > { %7922 = vmatprep.mubr.msk.f32.mxu0 %vm521_vm3, %v9648_v10 }
  0x92   : > { %7923 = vmatmul.mubr.msk.f32.gmra.mrb[28].mxu0 %vm521_vm3, %v9651_v21 }
  0x93   : > { %7925 = vmatprep.mubr.msk.f32.mxu0 %vm521_vm3, %v9673_v1 }
  0x96   : > { %7926 = vmatmul.mubr.msk.f32.gmra.mrb[30].mxu0 %vm521_vm3, %v9670_v13 }
  0x97   : > { %7930 = vmatprep.mubr.msk.f32.mxu0 %vm521_vm3, %v9783_v54 }
  0x9a   : > { %7931 = vmatmul.mubr.msk.f32.vlgmr.msra.gmra.mrb[0].mxu0 %vm521_vm3, %v9792_v20 }
  0x9b   : > { %7979 = vmatpush3.msk.msra.mxu0 %vm582_vm0, %v6721_v49  ;;  %7933 = vmatprep.mubr.msk.f32.mxu0 %vm521_vm3, %v9796_v55  ;;  %v1113_v49 = vrot.slane %v9403_v44, 2  ;;  %v9834_v44 = vsel %vm1099_vm4, %v1115_v5, %v1116_v17  ;;  %v1121_v55 = vrot.slane %v9435_v2, 2  ;;  %v1126_v5 = vrot.slane %v9459_v19, 2 }
  0x9c   : > { %8028 = vmatprep.subr.msk.mxu0 %vm582_vm0, %v9801_v37  ;;  %12767 = vst [vmem:[#allocation30_spill] sm:$0xff] %v9834_v44 }
  0x9e   : > { %7934 = vmatmul.mubr.msk.f32.gmra.mrb[2].mxu0 %vm521_vm3, %v9809_v40  ;;  %v9830_v40 = vsel %vm1099_vm4, %v1111_v30, %v1113_v49  ;;  %v1123_v30 = vrot.slane %v9453_v11, 2  ;;  %v1125_v49 = vrot.slane %v9456_v12, 2 }
  0x9f   : > { %7936 = vmatprep.mubr.msk.f32.mxu0 %vm521_vm3, %v9783_v54  ;;  %v1118_v54 = vrot.slane %v9426_v59, 2  ;;  %v9847_v59 = vsel %vm1099_vm4, %v1120_v25, %v1121_v55  ;;  %v1131_v25 = vrot.slane %v9485_v41, 2 }
  0xa0   : > { %12768 = vst [vmem:[#allocation31_spill] sm:$0xff] %v9847_v59  ;;  %v9860_v11 = vsel %vm1099_vm4, %v1125_v49, %v1126_v5  ;;  %v1136_v49 = vrot.slane %v9507_v3, 2 }
  0xa1   : > { %12769 = vst [vmem:[#allocation32_spill] sm:$0xff] %v9860_v11 }
  0xa2   : > { %7937 = vmatmul.mubr.msk.f32.gmra.mrb[4].mxu0 %vm521_vm3, %v9792_v20 }
  0xa3   : > { %7939 = vmatprep.mubr.msk.f32.mxu0 %vm521_vm3, %v9821_v32  ;;  %v9843_v32 = vsel %vm1099_vm4, %v1116_v17, %v1118_v54  ;;  %v1128_v54 = vrot.slane %v9477_v34, 2  ;;  %v1130_v17 = vrot.slane %v9480_v36, 2 }
  0xa5   : > { %v9873_v34 = vsel %vm1099_vm4, %v1130_v17, %v1131_v25  ;;  %v1141_v17 = vrot.slane %v9523_v14, 2 }
  0xa6   : > { %7940 = vmatmul.mubr.msk.f32.gmra.mrb[6].mxu0 %vm521_vm3, %v9830_v40  ;;  %12770 = vst [vmem:[#allocation33_spill] sm:$0xff] %v9873_v34 }
  0xa7   : > { %7942 = vmatprep.mubr.msk.f32.mxu0 %vm521_vm3, %v9834_v44  ;;  %v9856_v44 = vsel %vm1099_vm4, %v1121_v55, %v1123_v30  ;;  %v1133_v55 = vrot.slane %v9493_v50, 2  ;;  %v1135_v30 = vrot.slane %v9510_v4, 2 }
  0xa9   : > { %v9886_v50 = vsel %vm1099_vm4, %v1135_v30, %v1136_v49  ;;  %v1146_v30 = vrot.slane %v9552_v52, 2 }
  0xaa   : > { %7943 = vmatmul.mubr.msk.f32.gmra.mrb[8].mxu0 %vm521_vm3, %v9843_v32  ;;  %12771 = vst [vmem:[#allocation34_spill] sm:$0xff] %v9886_v50 }
  0xab   : > { %7945 = vmatprep.mubr.msk.f32.mxu0 %vm521_vm3, %v9847_v59  ;;  %v9869_v59 = vsel %vm1099_vm4, %v1126_v5, %v1128_v54  ;;  %v1138_v5 = vrot.slane %v9515_v6, 2  ;;  %v1140_v54 = vrot.slane %v9526_v18, 2 }
  0xad   : > { %v9899_v6 = vsel %vm1099_vm4, %v1140_v54, %v1141_v17  ;;  %v1151_v54 = vrot.slane %v9579_v33, 2 }
  0xae   : > { %7946 = vmatmul.mubr.msk.f32.gmra.mrb[10].mxu0 %vm521_vm3, %v9856_v44  ;;  %12772 = vst [vmem:[#allocation35_spill] sm:$0xff] %v9899_v6 }
  0xaf   : > { %7948 = vmatprep.mubr.msk.f32.mxu0 %vm521_vm3, %v9860_v11  ;;  %v9882_v11 = vsel %vm1099_vm4, %v1131_v25, %v1133_v55  ;;  %v1143_v25 = vrot.slane %v9544_v46, 2  ;;  %v1145_v55 = vrot.slane %v9547_v47, 2 }
  0xb1   : > { %v9912_v46 = vsel %vm1099_vm4, %v1145_v55, %v1146_v30  ;;  %v1156_v55 = vrot.slane %v9600_v45, 2 }
  0xb2   : > { %7949 = vmatmul.mubr.msk.f32.gmra.mrb[12].mxu0 %vm521_vm3, %v9869_v59  ;;  %12773 = vst [vmem:[#allocation36_spill] sm:$0xff] %v9912_v46 }
  0xb3   : > { %7951 = vmatprep.mubr.msk.f32.mxu0 %vm521_vm3, %v9873_v34  ;;  %v9895_v34 = vsel %vm1099_vm4, %v1136_v49, %v1138_v5  ;;  %v1148_v49 = vrot.slane %v9573_v22, 2  ;;  %v1150_v5 = vrot.slane %v9576_v27, 2 }
  0xb5   : > { %v9925_v22 = vsel %vm1099_vm4, %v1150_v5, %v1151_v54  ;;  %v1161_v5 = vrot.slane %v9627_v8, 2 }
  0xb6   : > { %7952 = vmatmul.mubr.msk.f32.gmra.mrb[14].mxu0 %vm521_vm3, %v9882_v11  ;;  %12775 = vst [vmem:[#allocation38_spill] sm:$0xff] %v9925_v22 }
  0xb7   : > { %7954 = vmatprep.mubr.msk.f32.mxu0 %vm521_vm3, %v9886_v50  ;;  %v9908_v50 = vsel %vm1099_vm4, %v1141_v17, %v1143_v25  ;;  %v1153_v17 = vrot.slane %v9597_v61, 2  ;;  %v1155_v25 = vrot.slane %v9603_v7, 2 }
  0xb9   : > { %v9938_v61 = vsel %vm1099_vm4, %v1155_v25, %v1156_v55  ;;  %v1166_v25 = vrot.slane %v9651_v21, 2 }
  0xba   : > { %7955 = vmatmul.mubr.msk.f32.gmra.mrb[16].mxu0 %vm521_vm3, %v9895_v34  ;;  %12776 = vst [vmem:[#allocation39_spill] sm:$0xff] %v9938_v61 }
  0xbb   : > { %7957 = vmatprep.mubr.msk.f32.mxu0 %vm521_vm3, %v9899_v6  ;;  %v9921_v6 = vsel %vm1099_vm4, %v1146_v30, %v1148_v49  ;;  %v1158_v30 = vrot.slane %v9621_v26, 2  ;;  %v1160_v49 = vrot.slane %v9624_v0, 2 }
  0xbc   : > { %12774 = vst [vmem:[#allocation37_spill] sm:$0xff] %v9921_v6 }
  0xbd   : > { %v9951_v26 = vsel %vm1099_vm4, %v1160_v49, %v1161_v5  ;;  %v1171_v49 = vrot.slane %v9670_v13, 2 }
  0xbe   : > { %7958 = vmatmul.mubr.msk.f32.gmra.mrb[18].mxu0 %vm521_vm3, %v9908_v50  ;;  %12778 = vst [vmem:[#allocation41_spill] sm:$0xff] %v9951_v26 }
  0xbf   : > { %7960 = vmatprep.mubr.msk.f32.mxu0 %vm521_vm3, %v9912_v46  ;;  %v9934_v46 = vsel %vm1099_vm4, %v1151_v54, %v1153_v17  ;;  %v1163_v54 = vrot.slane %v9645_v9, 2  ;;  %v1165_v17 = vrot.slane %v9648_v10, 2 }
  0xc1   : > { %v9964_v9 = vsel %vm1099_vm4, %v1165_v17, %v1166_v25  ;;  %v202_v17 = vld [vmem:[%s9337_s21 + $0xf8] sm:$0xff] }
  0xc2   : > { %7961 = vmatmul.mubr.msk.f32.gmra.mrb[20].mxu0 %vm521_vm3, %v9921_v6  ;;  %12779 = vst [vmem:[#allocation42_spill] sm:$0xff] %v9964_v9 }
  0xc3   : > { %7963 = vmatprep.mubr.msk.f32.mxu0 %vm521_vm3, %v9925_v22  ;;  %v9947_v22 = vsel %vm1099_vm4, %v1156_v55, %v1158_v30  ;;  %v1168_v55 = vrot.slane %v9667_v53, 2  ;;  %v1170_v30 = vrot.slane %v9673_v1, 2 }
  0xc4   : > { %12777 = vst [vmem:[#allocation40_spill] sm:$0xff] %v9947_v22 }
  0xc5   : > { %v9977_v53 = vsel %vm1099_vm4, %v1170_v30, %v1171_v49 }
  0xc6   : > { %7964 = vmatmul.mubr.msk.f32.gmra.mrb[22].mxu0 %vm521_vm3, %v9934_v46 }
  0xc7   : > { %7966 = vmatprep.mubr.msk.f32.mxu0 %vm521_vm3, %v9938_v61  ;;  %v9960_v61 = vsel %vm1099_vm4, %v1161_v5, %v1163_v54  ;;  %v1173_v5 = vrot.slane %v9689_v57, 2  ;;  %v6789_v57 = vld [vmem:[%s12535_s1 + $0x14] sm:$0xf] }
  0xc9   : > { %v9984_v54 = vsel %vm1099_vm4, %v1171_v49, %v1173_v5  ;;  %v6823_v49 = vld [vmem:[%s12535_s1 + $0x18] sm:$0xf]  ;;  %v12780_v5 = vld [vmem:[#allocation3_spill] sm:$0xff] }
  0xca   : > { %7967 = vmatmul.mubr.msk.f32.gmra.mrb[24].mxu0 %vm521_vm3, %v9947_v22 }
  0xcb   : > { %7969 = vmatprep.mubr.msk.f32.mxu0 %vm521_vm3, %v9951_v26  ;;  %v9973_v26 = vsel %vm1099_vm4, %v1166_v25, %v1168_v55  ;;  %v314_v25 = vrot.slane %v202_v17, 7 }
  0xce   : > { %7970 = vmatmul.mubr.msk.f32.gmra.mrb[26].mxu0 %vm521_vm3, %v9960_v61 }
  0xcf   : > { %7972 = vmatprep.mubr.msk.f32.mxu0 %vm521_vm3, %v9964_v9 }
  0xd2   : > { %7973 = vmatmul.mubr.msk.f32.gmra.mrb[28].mxu0 %vm521_vm3, %v9973_v26 }
  0xd3   : > { %7975 = vmatprep.mubr.msk.f32.mxu0 %vm521_vm3, %v9977_v53 }
  0xd6   : > { %7976 = vmatmul.mubr.msk.f32.gmra.mrb[30].mxu0 %vm521_vm3, %v9984_v54 }
  0xd7   : > { %7980 = vmatprep.mubr.msk.f32.mxu0 %vm521_vm3, %v9361_v24 }
  0xda   : > { %7981 = vmatmul.mubr.msk.f32.vlgmr.msra.gmra.mrb[0].mxu0 %vm521_vm3, %v9358_v23  ;;  %v201_v23 = vld [vmem:[%s9337_s21 + $0xf0] sm:$0xff] }
  0xdb   : > { %8029 = vmatpush3.msk.msra.mxu0 %vm582_vm0, %v9801_v37  ;;  %7983 = vmatprep.mubr.msk.f32.mxu0 %vm521_vm3, %v9348_v16  ;;  %v234_v24 = vrot.slane %v201_v23, 1  ;;  %v313_v37 = vrot.slane %v201_v23, 7  ;;  %v12781_v23 = vld [vmem:[#allocation4_spill] sm:$0xff] }
  0xdc   : > { %8078 = vmatprep.subr.msk.mxu0 %vm582_vm0, %v6789_v57 }
  0xdd   : > { %v10055_v55 = vsel %vm267_vm1, %v234_v24, %v313_v37  ;;  %v10062_v30 = vsel %vm267_vm1, %v313_v37, %v314_v25  ;;  %v12783_v24 = vld [vmem:[#allocation6_spill] sm:$0xff]  ;;  %v12786_v37 = vld [vmem:[#allocation9_spill] sm:$0xff] }
  0xde   : > { %7984 = vmatmul.mubr.msk.f32.gmra.mrb[2].mxu0 %vm521_vm3, %v9345_v15 }
  0xdf   : > { %7986 = vmatprep.mubr.msk.f32.mxu0 %vm521_vm3, %v9380_v35 }
  0xe2   : > { %7987 = vmatmul.mubr.msk.f32.gmra.mrb[4].mxu0 %vm521_vm3, %v9400_v43 }
  0xe3   : > { %7989 = vmatprep.mubr.msk.f32.mxu0 %vm521_vm3, %v9408_v48 }
  0xe6   : > { %7990 = vmatmul.mubr.msk.f32.gmra.mrb[6].mxu0 %vm521_vm3, %v9414_v51 }
  0xe7   : > { %7992 = vmatprep.mubr.msk.f32.mxu0 %vm521_vm3, %v9432_v63 }
  0xea   : > { %7993 = vmatmul.mubr.msk.f32.gmra.mrb[8].mxu0 %vm521_vm3, %v9435_v2 }
  0xeb   : > { %7995 = vmatprep.mubr.msk.f32.mxu0 %vm521_vm3, %v9456_v12 }
  0xee   : > { %7996 = vmatmul.mubr.msk.f32.gmra.mrb[10].mxu0 %vm521_vm3, %v9459_v19 }
  0xef   : > { %7998 = vmatprep.mubr.msk.f32.mxu0 %vm521_vm3, %v9480_v36 }
  0xf2   : > { %7999 = vmatmul.mubr.msk.f32.gmra.mrb[12].mxu0 %vm521_vm3, %v9485_v41 }
  0xf3   : > { %8001 = vmatprep.mubr.msk.f32.mxu0 %vm521_vm3, %v9510_v4 }
  0xf6   : > { %8002 = vmatmul.mubr.msk.f32.gmra.mrb[14].mxu0 %vm521_vm3, %v9507_v3 }
  0xf7   : > { %8004 = vmatprep.mubr.msk.f32.mxu0 %vm521_vm3, %v9526_v18 }
  0xfa   : > { %8005 = vmatmul.mubr.msk.f32.gmra.mrb[16].mxu0 %vm521_vm3, %v9523_v14 }
  0xfb   : > { %8007 = vmatprep.mubr.msk.f32.mxu0 %vm521_vm3, %v9547_v47 }
  0xfe   : > { %8008 = vmatmul.mubr.msk.f32.gmra.mrb[18].mxu0 %vm521_vm3, %v9552_v52 }
  0xff   : > { %8010 = vmatprep.mubr.msk.f32.mxu0 %vm521_vm3, %v9576_v27 }
 0x102   : > { %8011 = vmatmul.mubr.msk.f32.gmra.mrb[20].mxu0 %vm521_vm3, %v9579_v33 }
 0x103   : > { %8013 = vmatprep.mubr.msk.f32.mxu0 %vm521_vm3, %v9603_v7 }
 0x106   : > { %8014 = vmatmul.mubr.msk.f32.gmra.mrb[22].mxu0 %vm521_vm3, %v9600_v45 }
 0x107   : > { %8016 = vmatprep.mubr.msk.f32.mxu0 %vm521_vm3, %v9624_v0 }
 0x10a   : > { %8017 = vmatmul.mubr.msk.f32.gmra.mrb[24].mxu0 %vm521_vm3, %v9627_v8 }
 0x10b   : > { %8019 = vmatprep.mubr.msk.f32.mxu0 %vm521_vm3, %v9648_v10 }
 0x10e   : > { %8020 = vmatmul.mubr.msk.f32.gmra.mrb[26].mxu0 %vm521_vm3, %v9651_v21 }
 0x10f   : > { %8022 = vmatprep.mubr.msk.f32.mxu0 %vm521_vm3, %v9673_v1 }
 0x112   : > { %8023 = vmatmul.mubr.msk.f32.gmra.mrb[28].mxu0 %vm521_vm3, %v9670_v13 }
 0x113   : > { %8025 = vmatprep.mubr.msk.f32.mxu0 %vm521_vm3, %v10055_v55 }
 0x116   : > { %8026 = vmatmul.mubr.msk.f32.gmra.mrb[30].mxu0 %vm521_vm3, %v10062_v30 }
 0x117   : > { %8030 = vmatprep.mubr.msk.f32.mxu0 %vm521_vm3, %v9390_v38  ;;  %v12782_v38 = vld [vmem:[#allocation5_spill] sm:$0xff] }
 0x11a   : > { %8031 = vmatmul.mubr.msk.f32.vlgmr.msra.gmra.mrb[0].mxu0 %vm521_vm3, %v9397_v42  ;;  %v12784_v42 = vld [vmem:[#allocation7_spill] sm:$0xff] }
 0x11b   : > { %8079 = vmatpush3.msk.msra.mxu0 %vm582_vm0, %v6789_v57  ;;  %8033 = vmatprep.mubr.msk.f32.mxu0 %vm521_vm3, %v9368_v28  ;;  %v12785_v57 = vld [vmem:[#allocation8_spill] sm:$0xff]  ;;  %v12787_v28 = vld [vmem:[#allocation10_spill] sm:$0xff] }
 0x11c   : > { %8128 = vmatprep.subr.msk.mxu0 %vm582_vm0, %v6823_v49 }
 0x11e   : > { %8034 = vmatmul.mubr.msk.f32.gmra.mrb[2].mxu0 %vm521_vm3, %v12780_v5  ;;  %v12788_v5 = vld [vmem:[#allocation11_spill] sm:$0xff] }
 0x11f   : > { %8036 = vmatprep.mubr.msk.f32.mxu0 %vm521_vm3, %v12781_v23  ;;  %v12789_v23 = vld [vmem:[#allocation12_spill] sm:$0xff] }
 0x122   : > { %8037 = vmatmul.mubr.msk.f32.gmra.mrb[4].mxu0 %vm521_vm3, %v12782_v38  ;;  %v12790_v38 = vld [vmem:[#allocation13_spill] sm:$0xff] }
 0x123   : > { %8039 = vmatprep.mubr.msk.f32.mxu0 %vm521_vm3, %v12783_v24  ;;  %v12791_v24 = vld [vmem:[#allocation14_spill] sm:$0xff] }
 0x126   : > { %8040 = vmatmul.mubr.msk.f32.gmra.mrb[6].mxu0 %vm521_vm3, %v12784_v42  ;;  %v12792_v42 = vld [vmem:[#allocation15_spill] sm:$0xff] }
 0x127   : > { %8042 = vmatprep.mubr.msk.f32.mxu0 %vm521_vm3, %v12785_v57  ;;  %v12793_v57 = vld [vmem:[#allocation16_spill] sm:$0xff] }
 0x12a   : > { %8043 = vmatmul.mubr.msk.f32.gmra.mrb[8].mxu0 %vm521_vm3, %v12786_v37  ;;  %v12794_v37 = vld [vmem:[#allocation17_spill] sm:$0xff] }
 0x12b   : > { %8045 = vmatprep.mubr.msk.f32.mxu0 %vm521_vm3, %v12787_v28  ;;  %v12795_v28 = vld [vmem:[#allocation18_spill] sm:$0xff] }
 0x12e   : > { %8046 = vmatmul.mubr.msk.f32.gmra.mrb[10].mxu0 %vm521_vm3, %v12788_v5  ;;  %v12796_v5 = vld [vmem:[#allocation19_spill] sm:$0xff] }
 0x12f   : > { %8048 = vmatprep.mubr.msk.f32.mxu0 %vm521_vm3, %v12789_v23  ;;  %v12797_v23 = vld [vmem:[#allocation20_spill] sm:$0xff] }
 0x132   : > { %8049 = vmatmul.mubr.msk.f32.gmra.mrb[12].mxu0 %vm521_vm3, %v12790_v38  ;;  %v12798_v38 = vld [vmem:[#allocation21_spill] sm:$0xff] }
 0x133   : > { %8051 = vmatprep.mubr.msk.f32.mxu0 %vm521_vm3, %v12791_v24  ;;  %v12799_v24 = vld [vmem:[#allocation22_spill] sm:$0xff] }
 0x136   : > { %8052 = vmatmul.mubr.msk.f32.gmra.mrb[14].mxu0 %vm521_vm3, %v12792_v42 }
 0x137   : > { %8054 = vmatprep.mubr.msk.f32.mxu0 %vm521_vm3, %v12793_v57 }
 0x13a   : > { %8055 = vmatmul.mubr.msk.f32.gmra.mrb[16].mxu0 %vm521_vm3, %v12794_v37  ;;  %v363_v37 = vrot.slane %v202_v17, 5 }
 0x13b   : > { %8057 = vmatprep.mubr.msk.f32.mxu0 %vm521_vm3, %v12795_v28 }
 0x13e   : > { %8058 = vmatmul.mubr.msk.f32.gmra.mrb[18].mxu0 %vm521_vm3, %v12796_v5  ;;  %v411_v5 = vsel %vm267_vm1, %v314_v25, %v363_v37  ;;  %v12800_v25 = vld [vmem:[#allocation27_spill] sm:$0xff]  ;;  %v12801_v37 = vld [vmem:[#allocation28_spill] sm:$0xff] }
 0x13f   : > { %8060 = vmatprep.mubr.msk.f32.mxu0 %vm521_vm3, %v12797_v23  ;;  %v1765_v23 = vrot.slane %v10055_v55, 1 }
 0x142   : > { %8061 = vmatmul.mubr.msk.f32.gmra.mrb[20].mxu0 %vm521_vm3, %v12798_v38  ;;  %v1766_v38 = vrot.slane %v10062_v30, 1 }
 0x143   : > { %8063 = vmatprep.mubr.msk.f32.mxu0 %vm521_vm3, %v12799_v24 }
 0x144   : > { %v10133_v17 = vsel %vm443_vm2, %v1765_v23, %v1766_v38  ;;  %v6857_v23 = vld [vmem:[%s12535_s1 + $0x1c] sm:$0xf] }
 0x146   : > { %8064 = vmatmul.mubr.msk.f32.gmra.mrb[22].mxu0 %vm521_vm3, %v9658_v29 }
 0x147   : > { %8066 = vmatprep.mubr.msk.f32.mxu0 %vm521_vm3, %v9663_v56  ;;  %v1768_v56 = vrot.slane %v411_v5, 1 }
 0x14a   : > { %8067 = vmatmul.mubr.msk.f32.gmra.mrb[24].mxu0 %vm521_vm3, %v9680_v31 }
 0x14b   : > { %8069 = vmatprep.mubr.msk.f32.mxu0 %vm521_vm3, %v9684_v62  ;;  %v10140_v62 = vsel %vm443_vm2, %v1766_v38, %v1768_v56  ;;  %v12803_v56 = vld [vmem:[#allocation29_spill] sm:$0xff]  ;;  %v12804_v38 = vld [vmem:[#allocation30_spill] sm:$0xff] }
 0x14e   : > { %8070 = vmatmul.mubr.msk.f32.gmra.mrb[26].mxu0 %vm521_vm3, %v9696_v39 }
 0x14f   : > { %8072 = vmatprep.mubr.msk.f32.mxu0 %vm521_vm3, %v9700_v60 }
 0x152   : > { %8073 = vmatmul.mubr.msk.f32.gmra.mrb[28].mxu0 %vm521_vm3, %v9707_v58  ;;  %v12802_v58 = vld [vmem:[#allocation26_spill] sm:$0xff] }
 0x153   : > { %8075 = vmatprep.mubr.msk.f32.mxu0 %vm521_vm3, %v10133_v17 }
 0x156   : > { %8076 = vmatmul.mubr.msk.f32.gmra.mrb[30].mxu0 %vm521_vm3, %v10140_v62 }
 0x157   : > { %8080 = vmatprep.mubr.msk.f32.mxu0 %vm521_vm3, %v12800_v25  ;;  %v12806_v25 = vld [vmem:[#allocation32_spill] sm:$0xff] }
 0x15a   : > { %8081 = vmatmul.mubr.msk.f32.vlgmr.msra.gmra.mrb[0].mxu0 %vm521_vm3, %v12801_v37  ;;  %v12807_v37 = vld [vmem:[#allocation33_spill] sm:$0xff] }
 0x15b   : > { %8129 = vmatpush3.msk.msra.mxu0 %vm582_vm0, %v6823_v49  ;;  %8083 = vmatprep.mubr.msk.f32.mxu0 %vm521_vm3, %v12802_v58  ;;  %v12805_v49 = vld [vmem:[#allocation31_spill] sm:$0xff] }
 0x15c   : > { %8178 = vmatprep.subr.msk.mxu0 %vm582_vm0, %v6857_v23 }
 0x15e   : > { %8084 = vmatmul.mubr.msk.f32.gmra.mrb[2].mxu0 %vm521_vm3, %v9792_v20 }
 0x15f   : > { %8086 = vmatprep.mubr.msk.f32.mxu0 %vm521_vm3, %v12803_v56 }
 0x162   : > { %8087 = vmatmul.mubr.msk.f32.gmra.mrb[4].mxu0 %vm521_vm3, %v9830_v40 }
 0x163   : > { %8089 = vmatprep.mubr.msk.f32.mxu0 %vm521_vm3, %v12804_v38  ;;  %v12808_v38 = vld [vmem:[#allocation34_spill] sm:$0xff] }
 0x166   : > { %8090 = vmatmul.mubr.msk.f32.gmra.mrb[6].mxu0 %vm521_vm3, %v9843_v32 }
 0x167   : > { %8092 = vmatprep.mubr.msk.f32.mxu0 %vm521_vm3, %v12805_v49  ;;  %v12809_v49 = vld [vmem:[#allocation35_spill] sm:$0xff] }
 0x16a   : > { %8093 = vmatmul.mubr.msk.f32.gmra.mrb[8].mxu0 %vm521_vm3, %v9856_v44 }
 0x16b   : > { %8095 = vmatprep.mubr.msk.f32.mxu0 %vm521_vm3, %v12806_v25  ;;  %v12810_v25 = vld [vmem:[#allocation36_spill] sm:$0xff] }
 0x16e   : > { %8096 = vmatmul.mubr.msk.f32.gmra.mrb[10].mxu0 %vm521_vm3, %v9869_v59 }
 0x16f   : > { %8098 = vmatprep.mubr.msk.f32.mxu0 %vm521_vm3, %v12807_v37  ;;  %v12811_v37 = vld [vmem:[#allocation38_spill] sm:$0xff] }
 0x172   : > { %8099 = vmatmul.mubr.msk.f32.gmra.mrb[12].mxu0 %vm521_vm3, %v9882_v11 }
 0x173   : > { %8101 = vmatprep.mubr.msk.f32.mxu0 %vm521_vm3, %v12808_v38  ;;  %v12812_v38 = vld [vmem:[#allocation39_spill] sm:$0xff] }
 0x176   : > { %8102 = vmatmul.mubr.msk.f32.gmra.mrb[14].mxu0 %vm521_vm3, %v9895_v34 }
 0x177   : > { %8104 = vmatprep.mubr.msk.f32.mxu0 %vm521_vm3, %v12809_v49  ;;  %v12813_v49 = vld [vmem:[#allocation41_spill] sm:$0xff] }
 0x17a   : > { %8105 = vmatmul.mubr.msk.f32.gmra.mrb[16].mxu0 %vm521_vm3, %v9908_v50 }
 0x17b   : > { %8107 = vmatprep.mubr.msk.f32.mxu0 %vm521_vm3, %v12810_v25 }
 0x17e   : > { %8108 = vmatmul.mubr.msk.f32.gmra.mrb[18].mxu0 %vm521_vm3, %v9921_v6  ;;  %v2037_v6 = vrot.slane %v10062_v30, 2 }
 0x17f   : > { %8110 = vmatprep.mubr.msk.f32.mxu0 %vm521_vm3, %v12811_v37  ;;  %v2036_v37 = vrot.slane %v10055_v55, 2 }
 0x182   : > { %8111 = vmatmul.mubr.msk.f32.gmra.mrb[20].mxu0 %vm521_vm3, %v9934_v46 }
 0x183   : > { %8113 = vmatprep.mubr.msk.f32.mxu0 %vm521_vm3, %v12812_v38  ;;  %v10210_v38 = vsel %vm1099_vm4, %v2036_v37, %v2037_v6 }
 0x186   : > { %8114 = vmatmul.mubr.msk.f32.gmra.mrb[22].mxu0 %vm521_vm3, %v9947_v22  ;;  %v2039_v22 = vrot.slane %v411_v5, 2  ;;  %v6891_v5 = vld [vmem:[%s12535_s1 + $0x20] sm:$0xf] }
 0x187   : > { %8116 = vmatprep.mubr.msk.f32.mxu0 %vm521_vm3, %v12813_v49 }
 0x18a   : > { %8117 = vmatmul.mubr.msk.f32.gmra.mrb[24].mxu0 %vm521_vm3, %v9960_v61 }
 0x18b   : > { %8119 = vmatprep.mubr.msk.f32.mxu0 %vm521_vm3, %v9964_v9  ;;  %v10217_v9 = vsel %vm1099_vm4, %v2037_v6, %v2039_v22 }
 0x18e   : > { %8120 = vmatmul.mubr.msk.f32.gmra.mrb[26].mxu0 %vm521_vm3, %v9973_v26 }
 0x18f   : > { %8122 = vmatprep.mubr.msk.f32.mxu0 %vm521_vm3, %v9977_v53 }
 0x192   : > { %8123 = vmatmul.mubr.msk.f32.gmra.mrb[28].mxu0 %vm521_vm3, %v9984_v54 }
 0x193   : > { %8125 = vmatprep.mubr.msk.f32.mxu0 %vm521_vm3, %v10210_v38 }
 0x196   : > { %8126 = vmatmul.mubr.msk.f32.gmra.mrb[30].mxu0 %vm521_vm3, %v10217_v9 }
 0x197   : > { %8130 = vmatprep.mubr.msk.f32.mxu0 %vm521_vm3, %v9348_v16  ;;  %v12815_v16 = vld [vmem:[#allocation3_spill] sm:$0xff] }
 0x19a   : > { %8131 = vmatmul.mubr.msk.f32.vlgmr.msra.gmra.mrb[0].mxu0 %vm521_vm3, %v9345_v15  ;;  %v12814_v15 = vld [vmem:[#allocation2_spill] sm:$0xff] }
 0x19b   : > { %8179 = vmatpush3.msk.msra.mxu0 %vm582_vm0, %v6857_v23  ;;  %8133 = vmatprep.mubr.msk.f32.mxu0 %vm521_vm3, %v9380_v35  ;;  %v12816_v35 = vld [vmem:[#allocation4_spill] sm:$0xff]  ;;  %v6925_v23 = vld [vmem:[%s12536_s2 + $0x4] sm:$0xf] }
 0x19c   : > { %8228 = vmatprep.subr.msk.mxu0 %vm582_vm0, %v6891_v5  ;;  %8278 = vmatprep.subr.msk.mxu1 %vm582_vm0, %v6925_v23 }
 0x19d   : > { %8279 = vmatpush3.msk.msra.mxu1 %vm582_vm0, %v6925_v23 }
 0x19e   : > { %8134 = vmatmul.mubr.msk.f32.gmra.mrb[2].mxu0 %vm521_vm3, %v9400_v43  ;;  %v12817_v43 = vld [vmem:[#allocation5_spill] sm:$0xff] }
 0x19f   : > { %8136 = vmatprep.mubr.msk.f32.mxu0 %vm521_vm3, %v9408_v48  ;;  %v12818_v48 = vld [vmem:[#allocation6_spill] sm:$0xff] }
 0x1a2   : > { %8137 = vmatmul.mubr.msk.f32.gmra.mrb[4].mxu0 %vm521_vm3, %v9414_v51  ;;  %v12819_v51 = vld [vmem:[#allocation7_spill] sm:$0xff] }
 0x1a3   : > { %8139 = vmatprep.mubr.msk.f32.mxu0 %vm521_vm3, %v9432_v63  ;;  %v12820_v63 = vld [vmem:[#allocation8_spill] sm:$0xff] }
 0x1a6   : > { %8140 = vmatmul.mubr.msk.f32.gmra.mrb[6].mxu0 %vm521_vm3, %v9435_v2  ;;  %v12821_v2 = vld [vmem:[#allocation9_spill] sm:$0xff] }
 0x1a7   : > { %8142 = vmatprep.mubr.msk.f32.mxu0 %vm521_vm3, %v9456_v12  ;;  %v12823_v12 = vld [vmem:[#allocation11_spill] sm:$0xff] }
 0x1aa   : > { %8143 = vmatmul.mubr.msk.f32.gmra.mrb[8].mxu0 %vm521_vm3, %v9459_v19  ;;  %v12824_v19 = vld [vmem:[#allocation12_spill] sm:$0xff] }
 0x1ab   : > { %8145 = vmatprep.mubr.msk.f32.mxu0 %vm521_vm3, %v9480_v36  ;;  %v12825_v36 = vld [vmem:[#allocation13_spill] sm:$0xff] }
 0x1ae   : > { %8146 = vmatmul.mubr.msk.f32.gmra.mrb[10].mxu0 %vm521_vm3, %v9485_v41  ;;  %v12826_v41 = vld [vmem:[#allocation14_spill] sm:$0xff] }
 0x1af   : > { %8148 = vmatprep.mubr.msk.f32.mxu0 %vm521_vm3, %v9510_v4  ;;  %v12828_v4 = vld [vmem:[#allocation19_spill] sm:$0xff] }
 0x1b2   : > { %8149 = vmatmul.mubr.msk.f32.gmra.mrb[12].mxu0 %vm521_vm3, %v9507_v3  ;;  %v12827_v3 = vld [vmem:[#allocation17_spill] sm:$0xff] }
 0x1b3   : > { %8151 = vmatprep.mubr.msk.f32.mxu0 %vm521_vm3, %v9526_v18  ;;  %v12830_v18 = vld [vmem:[#allocation21_spill] sm:$0xff] }
 0x1b6   : > { %8152 = vmatmul.mubr.msk.f32.gmra.mrb[14].mxu0 %vm521_vm3, %v9523_v14  ;;  %v12829_v14 = vld [vmem:[#allocation20_spill] sm:$0xff] }
 0x1b7   : > { %8154 = vmatprep.mubr.msk.f32.mxu0 %vm521_vm3, %v9547_v47  ;;  %v12831_v47 = vld [vmem:[#allocation23_spill] sm:$0xff] }
 0x1ba   : > { %8155 = vmatmul.mubr.msk.f32.gmra.mrb[16].mxu0 %vm521_vm3, %v9552_v52  ;;  %v12833_v52 = vld [vmem:[#allocation25_spill] sm:$0xff] }
 0x1bb   : > { %8157 = vmatprep.mubr.msk.f32.mxu0 %vm521_vm3, %v9576_v27  ;;  %v12836_v27 = vld [vmem:[#allocation32_spill] sm:$0xff] }
 0x1be   : > { %8158 = vmatmul.mubr.msk.f32.gmra.mrb[18].mxu0 %vm521_vm3, %v9579_v33  ;;  %v12837_v33 = vld [vmem:[#allocation33_spill] sm:$0xff] }
 0x1bf   : > { %8160 = vmatprep.mubr.msk.f32.mxu0 %vm521_vm3, %v9603_v7  ;;  %v12839_v7 = vld [vmem:[#allocation35_spill] sm:$0xff] }
 0x1c2   : > { %8161 = vmatmul.mubr.msk.f32.gmra.mrb[20].mxu0 %vm521_vm3, %v9600_v45  ;;  %v12838_v45 = vld [vmem:[#allocation34_spill] sm:$0xff] }
 0x1c3   : > { %8163 = vmatprep.mubr.msk.f32.mxu0 %vm521_vm3, %v9624_v0  ;;  %v12841_v0 = vld [vmem:[#allocation38_spill] sm:$0xff] }
 0x1c6   : > { %8164 = vmatmul.mubr.msk.f32.gmra.mrb[22].mxu0 %vm521_vm3, %v9627_v8  ;;  %v12822_v8 = vld [vmem:[#allocation10_spill] sm:$0xff] }
 0x1c7   : > { %8166 = vmatprep.mubr.msk.f32.mxu0 %vm521_vm3, %v9648_v10  ;;  %v12835_v10 = vld [vmem:[#allocation31_spill] sm:$0xff] }
 0x1ca   : > { %8167 = vmatmul.mubr.msk.f32.gmra.mrb[24].mxu0 %vm521_vm3, %v9651_v21  ;;  %v12840_v21 = vld [vmem:[#allocation37_spill] sm:$0xff] }
 0x1cb   : > { %8169 = vmatprep.mubr.msk.f32.mxu0 %vm521_vm3, %v9673_v1 }
 0x1ce   : > { %8170 = vmatmul.mubr.msk.f32.gmra.mrb[26].mxu0 %vm521_vm3, %v9670_v13 }
 0x1cf   : > { %8172 = vmatprep.mubr.msk.f32.mxu0 %vm521_vm3, %v10055_v55 }
 0x1d2   : > { %8173 = vmatmul.mubr.msk.f32.gmra.mrb[28].mxu0 %vm521_vm3, %v10062_v30 }
 0x1d3   : > { %8175 = vmatprep.mubr.msk.f32.mxu0 %vm521_vm3, %v9673_v1  ;;  %v12843_v1 = vld [vmem:[#allocation40_spill] sm:$0xff] }
 0x1d6   : > { %8176 = vmatmul.mubr.msk.f32.gmra.mrb[30].mxu0 %vm521_vm3, %v9670_v13  ;;  %v12842_v13 = vld [vmem:[#allocation39_spill] sm:$0xff] }
 0x1d7   : > { %8180 = vmatprep.mubr.msk.f32.mxu0 %vm521_vm3, %v12814_v15 }
 0x1da   : > { %8181 = vmatmul.mubr.msk.f32.vlgmr.msra.gmra.mrb[0].mxu0 %vm521_vm3, %v12815_v16 }
 0x1db   : > { %8229 = vmatpush3.msk.msra.mxu0 %vm582_vm0, %v6891_v5  ;;  %8183 = vmatprep.mubr.msk.f32.mxu0 %vm521_vm3, %v12816_v35 }
 0x1de   : > { %8184 = vmatmul.mubr.msk.f32.gmra.mrb[2].mxu0 %vm521_vm3, %v12817_v43 }
 0x1df   : > { %8186 = vmatprep.mubr.msk.f32.mxu0 %vm521_vm3, %v12818_v48 }
 0x1e2   : > { %8187 = vmatmul.mubr.msk.f32.gmra.mrb[4].mxu0 %vm521_vm3, %v12819_v51 }
 0x1e3   : > { %8189 = vmatprep.mubr.msk.f32.mxu0 %vm521_vm3, %v12820_v63  ;;  %v10479_v63 = vld [vmem:[%s12536_s2] sm:$0xf] }
 0x1e4   : > { %8328 = vmatprep.subr.msk.mxu1 %vm582_vm0, %v10479_v63 }
 0x1e6   : > { %8190 = vmatmul.mubr.msk.f32.gmra.mrb[6].mxu0 %vm521_vm3, %v12821_v2 }
 0x1e7   : > { %8192 = vmatprep.mubr.msk.f32.mxu0 %vm521_vm3, %v12822_v8 }
 0x1ea   : > { %8193 = vmatmul.mubr.msk.f32.gmra.mrb[8].mxu0 %vm521_vm3, %v12823_v12 }
 0x1eb   : > { %8195 = vmatprep.mubr.msk.f32.mxu0 %vm521_vm3, %v12824_v19 }
 0x1ee   : > { %8196 = vmatmul.mubr.msk.f32.gmra.mrb[10].mxu0 %vm521_vm3, %v12825_v36 }
 0x1ef   : > { %8198 = vmatprep.mubr.msk.f32.mxu0 %vm521_vm3, %v12826_v41 }
 0x1f2   : > { %8199 = vmatmul.mubr.msk.f32.gmra.mrb[12].mxu0 %vm521_vm3, %v12792_v42 }
 0x1f3   : > { %8201 = vmatprep.mubr.msk.f32.mxu0 %vm521_vm3, %v12793_v57 }
 0x1f6   : > { %8202 = vmatmul.mubr.msk.f32.gmra.mrb[14].mxu0 %vm521_vm3, %v12827_v3 }
 0x1f7   : > { %8204 = vmatprep.mubr.msk.f32.mxu0 %vm521_vm3, %v12795_v28  ;;  %v12832_v28 = vld [vmem:[#allocation24_spill] sm:$0xff] }
 0x1fa   : > { %8205 = vmatmul.mubr.msk.f32.gmra.mrb[16].mxu0 %vm521_vm3, %v12828_v4 }
 0x1fb   : > { %8207 = vmatprep.mubr.msk.f32.mxu0 %vm521_vm3, %v12829_v14 }
 0x1fe   : > { %8208 = vmatmul.mubr.msk.f32.gmra.mrb[18].mxu0 %vm521_vm3, %v12830_v18 }
 0x1ff   : > { %8210 = vmatprep.mubr.msk.f32.mxu0 %vm521_vm3, %v12799_v24 }
 0x202   : > { %8211 = vmatmul.mubr.msk.f32.gmra.mrb[20].mxu0 %vm521_vm3, %v9658_v29  ;;  %v12834_v29 = vld [vmem:[#allocation30_spill] sm:$0xff] }
 0x203   : > { %8213 = vmatprep.mubr.msk.f32.mxu0 %vm521_vm3, %v12831_v47 }
 0x206   : > { %8214 = vmatmul.mubr.msk.f32.gmra.mrb[22].mxu0 %vm521_vm3, %v9680_v31  ;;  %v12844_v31 = vld [vmem:[#allocation42_spill] sm:$0xff] }
 0x207   : > { %8216 = vmatprep.mubr.msk.f32.mxu0 %vm521_vm3, %v12832_v28 }
 0x20a   : > { %8217 = vmatmul.mubr.msk.f32.gmra.mrb[24].mxu0 %vm521_vm3, %v9696_v39 }
 0x20b   : > { %8219 = vmatprep.mubr.msk.f32.mxu0 %vm521_vm3, %v9700_v60 }
 0x20e   : > { %8220 = vmatmul.mubr.msk.f32.gmra.mrb[26].mxu0 %vm521_vm3, %v12833_v52 }
 0x20f   : > { %8222 = vmatprep.mubr.msk.f32.mxu0 %vm521_vm3, %v10133_v17 }
 0x212   : > { %8223 = vmatmul.mubr.msk.f32.gmra.mrb[28].mxu0 %vm521_vm3, %v10140_v62 }
 0x213   : > { %8225 = vmatprep.mubr.msk.f32.mxu0 %vm521_vm3, %v9700_v60 }
 0x216   : > { %8226 = vmatmul.mubr.msk.f32.gmra.mrb[30].mxu0 %vm521_vm3, %v12833_v52 }
 0x217   : > { %8230 = vmatprep.mubr.msk.f32.mxu0 %vm521_vm3, %v12802_v58 }
 0x21a   : > { %8231 = vmatmul.mubr.msk.f32.vlgmr.msra.gmra.mrb[0].mxu0 %vm521_vm3, %v9792_v20 }
 0x21b   : > { %8233 = vmatprep.mubr.msk.f32.mxu0 %vm521_vm3, %v12803_v56 }
 0x21e   : > { %8234 = vmatmul.mubr.msk.f32.gmra.mrb[2].mxu0 %vm521_vm3, %v9830_v40 }
 0x21f   : > { %8236 = vmatprep.mubr.msk.f32.mxu0 %vm521_vm3, %v12834_v29 }
 0x222   : > { %8237 = vmatmul.mubr.msk.f32.gmra.mrb[4].mxu0 %vm521_vm3, %v9843_v32 }
 0x223   : > { %8239 = vmatprep.mubr.msk.f32.mxu0 %vm521_vm3, %v12835_v10 }
 0x226   : > { %8240 = vmatmul.mubr.msk.f32.gmra.mrb[6].mxu0 %vm521_vm3, %v9856_v44 }
 0x227   : > { %8242 = vmatprep.mubr.msk.f32.mxu0 %vm521_vm3, %v12836_v27 }
 0x22a   : > { %8243 = vmatmul.mubr.msk.f32.gmra.mrb[8].mxu0 %vm521_vm3, %v9869_v59 }
 0x22b   : > { %8245 = vmatprep.mubr.msk.f32.mxu0 %vm521_vm3, %v12837_v33 }
 0x22e   : > { %8246 = vmatmul.mubr.msk.f32.gmra.mrb[10].mxu0 %vm521_vm3, %v9882_v11 }
 0x22f   : > { %8248 = vmatprep.mubr.msk.f32.mxu0 %vm521_vm3, %v12838_v45 }
 0x232   : > { %8249 = vmatmul.mubr.msk.f32.gmra.mrb[12].mxu0 %vm521_vm3, %v9895_v34 }
 0x233   : > { %8251 = vmatprep.mubr.msk.f32.mxu0 %vm521_vm3, %v12839_v7 }
 0x236   : > { %8252 = vmatmul.mubr.msk.f32.gmra.mrb[14].mxu0 %vm521_vm3, %v9908_v50 }
 0x237   : > { %8254 = vmatprep.mubr.msk.f32.mxu0 %vm521_vm3, %v12810_v25 }
 0x23a   : > { %8255 = vmatmul.mubr.msk.f32.gmra.mrb[16].mxu0 %vm521_vm3, %v12840_v21 }
 0x23b   : > { %8257 = vmatprep.mubr.msk.f32.mxu0 %vm521_vm3, %v12841_v0 }
 0x23e   : > { %8258 = vmatmul.mubr.msk.f32.gmra.mrb[18].mxu0 %vm521_vm3, %v9934_v46 }
 0x23f   : > { %8260 = vmatprep.mubr.msk.f32.mxu0 %vm521_vm3, %v12842_v13 }
 0x242   : > { %8261 = vmatmul.mubr.msk.f32.gmra.mrb[20].mxu0 %vm521_vm3, %v12843_v1 }
 0x243   : > { %8263 = vmatprep.mubr.msk.f32.mxu0 %vm521_vm3, %v12813_v49 }
 0x246   : > { %8264 = vmatmul.mubr.msk.f32.gmra.mrb[22].mxu0 %vm521_vm3, %v9960_v61 }
 0x247   : > { %8266 = vmatprep.mubr.msk.f32.mxu0 %vm521_vm3, %v12844_v31 }
 0x24a   : > { %8267 = vmatmul.mubr.msk.f32.gmra.mrb[24].mxu0 %vm521_vm3, %v9973_v26 }
 0x24b   : > { %8269 = vmatprep.mubr.msk.f32.mxu0 %vm521_vm3, %v9977_v53 }
 0x24e   : > { %8270 = vmatmul.mubr.msk.f32.gmra.mrb[26].mxu0 %vm521_vm3, %v9984_v54 }
 0x24f   : > { %8272 = vmatprep.mubr.msk.f32.mxu0 %vm521_vm3, %v10210_v38 }
 0x252   : > { %8273 = vmatmul.mubr.msk.f32.gmra.mrb[28].mxu0 %vm521_vm3, %v10217_v9 }
 0x253   : > { %8275 = vmatprep.mubr.msk.f32.mxu0 %vm521_vm3, %v9977_v53 }
 0x256   : > { %8276 = vmatmul.mubr.msk.f32.gmra.mrb[30].mxu0 %vm521_vm3, %v9984_v54 }
 0x2ed   : > { %v10419_v62 = vpop.f32.mrb[0].mxu0 }
 0x2ee   : > { %v3094_v39 = vsel %vm521_vm3, %v10419_v62, 0.0  ;;  %v3163_v60 = vmul.f32 %v10419_v62, %v10419_v62  ;;  %v10425_v58 = vpop.f32.mrb[1].mxu0 }
 0x2ef   : > { %v3093_v20 = vsel %vm521_vm3, %v10425_v58, 0.0  ;;  %v3162_v40 = vmul.f32 %v10425_v58, %v10425_v58 }
 0x2f0   : > { %v3195_v32 = vsel %vm521_vm3, %v3163_v60, 0.0  ;;  %v3095_v44 = vadd.f32 %v3094_v39, %v3093_v20 }
 0x2f1   : > { %v3194_v59 = vsel %vm521_vm3, %v3162_v40, 0.0  ;;  %v10433_v11 = vpop.f32.mrb[2].mxu0 }
 0x2f2   : > { %v3196_v34 = vadd.f32 %v3195_v32, %v3194_v59  ;;  %v10435_v50 = vpop.f32.mrb[3].mxu0  ;;  %v3165_v6 = vmul.f32 %v10433_v11, %v10433_v11  ;;  %v3098_v26 = vsel %vm521_vm3, %v10433_v11, 0.0 }
 0x2f3   : > { %v3096_v46 = vsel %vm521_vm3, %v10435_v50, 0.0  ;;  %v3164_v22 = vmul.f32 %v10435_v50, %v10435_v50 }
 0x2f4   : > { %v3097_v61 = vadd.f32 %v3096_v46, %v3095_v44  ;;  %v3199_v24 = vsel %vm521_vm3, %v3165_v6, 0.0 }
 0x2f5   : > { %v3197_v9 = vsel %vm521_vm3, %v3164_v22, 0.0  ;;  %v10446_v53 = vpop.f32.mrb[4].mxu0 }
 0x2f6   : > { %v3198_v54 = vadd.f32 %v3197_v9, %v3196_v34  ;;  %v10448_v55 = vpop.f32.mrb[5].mxu0  ;;  %v3099_v30 = vadd.f32 %v3098_v26, %v3097_v61  ;;  %v3167_v42 = vmul.f32 %v10446_v53, %v10446_v53  ;;  %v3102_v49 = vsel %vm521_vm3, %v10446_v53, 0.0 }
 0x2f7   : > { %v3100_v57 = vsel %vm521_vm3, %v10448_v55, 0.0  ;;  %v3166_v17 = vmul.f32 %v10448_v55, %v10448_v55 }
 0x2f8   : > { %v3101_v56 = vadd.f32 %v3100_v57, %v3099_v30  ;;  %v3200_v38 = vadd.f32 %v3199_v24, %v3198_v54  ;;  %v3203_v35 = vsel %vm521_vm3, %v3167_v42, 0.0 }
 0x2f9   : > { %v3201_v25 = vsel %vm521_vm3, %v3166_v17, 0.0  ;;  %v10464_v37 = vpop.f32.mrb[6].mxu0 }
 0x2fa   : > { %v3202_v5 = vadd.f32 %v3201_v25, %v3200_v38  ;;  %v10467_v15 = vpop.f32.mrb[7].mxu0  ;;  %v3103_v16 = vadd.f32 %v3102_v49, %v3101_v56  ;;  %v3169_v43 = vmul.f32 %v10464_v37, %v10464_v37  ;;  %v3106_v12 = vsel %vm521_vm3, %v10464_v37, 0.0 }
 0x2fb   : > { %v3104_v48 = vsel %vm521_vm3, %v10467_v15, 0.0  ;;  %v3168_v51 = vmul.f32 %v10467_v15, %v10467_v15 }
 0x2fc   : > { %v3105_v2 = vadd.f32 %v3104_v48, %v3103_v16  ;;  %v3204_v8 = vadd.f32 %v3203_v35, %v3202_v5  ;;  %v3207_v14 = vsel %vm521_vm3, %v3169_v43, 0.0 }
 0x2fd   : > { %v3205_v19 = vsel %vm521_vm3, %v3168_v51, 0.0  ;;  %v10486_v36 = vpop.f32.mrb[8].mxu0 }
 0x2fe   : > { %v3206_v41 = vadd.f32 %v3205_v19, %v3204_v8  ;;  %v10488_v3 = vpop.f32.mrb[9].mxu0  ;;  %v3107_v4 = vadd.f32 %v3106_v12, %v3105_v2  ;;  %v3171_v18 = vmul.f32 %v10486_v36, %v10486_v36  ;;  %v3110_v10 = vsel %vm521_vm3, %v10486_v36, 0.0 }
 0x2ff   : > { %v3108_v47 = vsel %vm521_vm3, %v10488_v3, 0.0  ;;  %v3170_v28 = vmul.f32 %v10488_v3, %v10488_v3 }
 0x300   : > { %v3109_v52 = vadd.f32 %v3108_v47, %v3107_v4  ;;  %v3208_v29 = vadd.f32 %v3207_v14, %v3206_v41  ;;  %v3211_v0 = vsel %vm521_vm3, %v3171_v18, 0.0 }
 0x301   : > { %v3209_v27 = vsel %vm521_vm3, %v3170_v28, 0.0  ;;  %v10500_v33 = vpop.f32.mrb[10].mxu0 }
 0x302   : > { %v3210_v45 = vadd.f32 %v3209_v27, %v3208_v29  ;;  %v10502_v7 = vpop.f32.mrb[11].mxu0  ;;  %v3111_v21 = vadd.f32 %v3110_v10, %v3109_v52  ;;  %v3173_v13 = vmul.f32 %v10500_v33, %v10500_v33  ;;  %v3114_v20 = vsel %vm521_vm3, %v10500_v33, 0.0 }
 0x303   : > { %v3112_v1 = vsel %vm521_vm3, %v10502_v7, 0.0  ;;  %v3172_v31 = vmul.f32 %v10502_v7, %v10502_v7 }
 0x304   : > { %v3113_v39 = vadd.f32 %v3112_v1, %v3111_v21  ;;  %v3212_v60 = vadd.f32 %v3211_v0, %v3210_v45  ;;  %v3215_v6 = vsel %vm521_vm3, %v3173_v13, 0.0 }
 0x305   : > { %v3213_v40 = vsel %vm521_vm3, %v3172_v31, 0.0  ;;  %v10514_v32 = vpop.f32.mrb[12].mxu0 }
 0x306   : > { %v3214_v44 = vadd.f32 %v3213_v40, %v3212_v60  ;;  %v10516_v59 = vpop.f32.mrb[13].mxu0  ;;  %v3115_v34 = vadd.f32 %v3114_v20, %v3113_v39  ;;  %v3175_v46 = vmul.f32 %v10514_v32, %v10514_v32  ;;  %v3118_v54 = vsel %vm521_vm3, %v10514_v32, 0.0 }
 0x307   : > { %v3116_v22 = vsel %vm521_vm3, %v10516_v59, 0.0  ;;  %v3174_v61 = vmul.f32 %v10516_v59, %v10516_v59 }
 0x308   : > { %v3117_v26 = vadd.f32 %v3116_v22, %v3115_v34  ;;  %v3216_v9 = vadd.f32 %v3215_v6, %v3214_v44  ;;  %v3219_v23 = vsel %vm521_vm3, %v3175_v46, 0.0 }
 0x309   : > { %v3217_v30 = vsel %vm521_vm3, %v3174_v61, 0.0  ;;  %v10528_v24 = vpop.f32.mrb[14].mxu0 }
 0x30a   : > { %v3218_v42 = vadd.f32 %v3217_v30, %v3216_v9  ;;  %v10530_v57 = vpop.f32.mrb[15].mxu0  ;;  %v3119_v17 = vadd.f32 %v3118_v54, %v3117_v26  ;;  %v3177_v56 = vmul.f32 %v10528_v24, %v10528_v24  ;;  %v3122_v16 = vsel %vm521_vm3, %v10528_v24, 0.0 }
 0x30b   : > { %v3120_v38 = vsel %vm521_vm3, %v10530_v57, 0.0  ;;  %v3176_v49 = vmul.f32 %v10530_v57, %v10530_v57 }
 0x30c   : > { %v3121_v25 = vadd.f32 %v3120_v38, %v3119_v17  ;;  %v3220_v5 = vadd.f32 %v3219_v23, %v3218_v42  ;;  %v3223_v8 = vsel %vm521_vm3, %v3177_v56, 0.0 }
 0x30d   : > { %v3221_v35 = vsel %vm521_vm3, %v3176_v49, 0.0  ;;  %v10542_v43 = vpop.f32.mrb[16].mxu0 }
 0x30e   : > { %v3222_v48 = vadd.f32 %v3221_v35, %v3220_v5  ;;  %v10544_v51 = vpop.f32.mrb[17].mxu0  ;;  %v3123_v2 = vadd.f32 %v3122_v16, %v3121_v25  ;;  %v3179_v12 = vmul.f32 %v10542_v43, %v10542_v43  ;;  %v3126_v18 = vsel %vm521_vm3, %v10542_v43, 0.0 }
 0x30f   : > { %v3124_v19 = vsel %vm521_vm3, %v10544_v51, 0.0  ;;  %v3178_v41 = vmul.f32 %v10544_v51, %v10544_v51 }
 0x310   : > { %v3125_v4 = vadd.f32 %v3124_v19, %v3123_v2  ;;  %v3224_v14 = vadd.f32 %v3223_v8, %v3222_v48  ;;  %v3227_v27 = vsel %vm521_vm3, %v3179_v12, 0.0 }
 0x311   : > { %v3225_v47 = vsel %vm521_vm3, %v3178_v41, 0.0  ;;  %v10556_v28 = vpop.f32.mrb[18].mxu0 }
 0x312   : > { %v3226_v52 = vadd.f32 %v3225_v47, %v3224_v14  ;;  %v10558_v29 = vpop.f32.mrb[19].mxu0  ;;  %v3127_v10 = vadd.f32 %v3126_v18, %v3125_v4  ;;  %v3181_v45 = vmul.f32 %v10556_v28, %v10556_v28  ;;  %v3130_v31 = vsel %vm521_vm3, %v10556_v28, 0.0 }
 0x313   : > { %v3128_v21 = vsel %vm521_vm3, %v10558_v29, 0.0  ;;  %v3180_v0 = vmul.f32 %v10558_v29, %v10558_v29 }
 0x314   : > { %v3129_v13 = vadd.f32 %v3128_v21, %v3127_v10  ;;  %v3228_v1 = vadd.f32 %v3227_v27, %v3226_v52  ;;  %v3231_v34 = vsel %vm521_vm3, %v3181_v45, 0.0 }
 0x315   : > { %v3229_v39 = vsel %vm521_vm3, %v3180_v0, 0.0  ;;  %v10570_v60 = vpop.f32.mrb[20].mxu0 }
 0x316   : > { %v3230_v20 = vadd.f32 %v3229_v39, %v3228_v1  ;;  %v10572_v40 = vpop.f32.mrb[21].mxu0  ;;  %v3131_v44 = vadd.f32 %v3130_v31, %v3129_v13  ;;  %v3183_v6 = vmul.f32 %v10570_v60, %v10570_v60  ;;  %v3134_v9 = vsel %vm521_vm3, %v10570_v60, 0.0 }
 0x317   : > { %v3132_v46 = vsel %vm521_vm3, %v10572_v40, 0.0  ;;  %v3182_v22 = vmul.f32 %v10572_v40, %v10572_v40 }
 0x318   : > { %v3133_v61 = vadd.f32 %v3132_v46, %v3131_v44  ;;  %v3232_v26 = vadd.f32 %v3231_v34, %v3230_v20  ;;  %v3235_v56 = vsel %vm521_vm3, %v3183_v6, 0.0 }
 0x319   : > { %v3233_v54 = vsel %vm521_vm3, %v3182_v22, 0.0  ;;  %v10584_v30 = vpop.f32.mrb[22].mxu0 }
 0x31a   : > { %v3234_v42 = vadd.f32 %v3233_v54, %v3232_v26  ;;  %v10586_v17 = vpop.f32.mrb[23].mxu0  ;;  %v3135_v23 = vadd.f32 %v3134_v9, %v3133_v61  ;;  %v3185_v38 = vmul.f32 %v10584_v30, %v10584_v30  ;;  %v3138_v35 = vsel %vm521_vm3, %v10584_v30, 0.0 }
 0x31b   : > { %v3136_v49 = vsel %vm521_vm3, %v10586_v17, 0.0  ;;  %v3184_v25 = vmul.f32 %v10586_v17, %v10586_v17 }
 0x31c   : > { %v3137_v5 = vadd.f32 %v3136_v49, %v3135_v23  ;;  %v3236_v16 = vadd.f32 %v3235_v56, %v3234_v42  ;;  %v3239_v41 = vsel %vm521_vm3, %v3185_v38, 0.0 }
 0x31d   : > { %v3237_v48 = vsel %vm521_vm3, %v3184_v25, 0.0  ;;  %v10598_v2 = vpop.f32.mrb[24].mxu0 }
 0x31e   : > { %v3238_v8 = vadd.f32 %v3237_v48, %v3236_v16  ;;  %v10600_v12 = vpop.f32.mrb[25].mxu0  ;;  %v3139_v19 = vadd.f32 %v3138_v35, %v3137_v5  ;;  %v3187_v4 = vmul.f32 %v10598_v2, %v10598_v2  ;;  %v3142_v10 = vsel %vm521_vm3, %v10598_v2, 0.0 }
 0x31f   : > { %v3140_v14 = vsel %vm521_vm3, %v10600_v12, 0.0  ;;  %v3186_v18 = vmul.f32 %v10600_v12, %v10600_v12 }
 0x320   : > { %v3141_v47 = vadd.f32 %v3140_v14, %v3139_v19  ;;  %v3240_v52 = vadd.f32 %v3239_v41, %v3238_v8  ;;  %v3243_v1 = vsel %vm521_vm3, %v3187_v4, 0.0 }
 0x321   : > { %v3241_v27 = vsel %vm521_vm3, %v3186_v18, 0.0  ;;  %v10612_v45 = vpop.f32.mrb[26].mxu0 }
 0x322   : > { %v3242_v21 = vadd.f32 %v3241_v27, %v3240_v52  ;;  %v10614_v0 = vpop.f32.mrb[27].mxu0  ;;  %v3143_v13 = vadd.f32 %v3142_v10, %v3141_v47  ;;  %v3189_v31 = vmul.f32 %v10612_v45, %v10612_v45  ;;  %v3146_v6 = vsel %vm521_vm3, %v10612_v45, 0.0 }
 0x323   : > { %v3144_v39 = vsel %vm521_vm3, %v10614_v0, 0.0  ;;  %v3188_v20 = vmul.f32 %v10614_v0, %v10614_v0 }
 0x324   : > { %v3145_v44 = vadd.f32 %v3144_v39, %v3143_v13  ;;  %v3244_v34 = vadd.f32 %v3243_v1, %v3242_v21  ;;  %v3247_v54 = vsel %vm521_vm3, %v3189_v31, 0.0 }
 0x325   : > { %v3245_v46 = vsel %vm521_vm3, %v3188_v20, 0.0  ;;  %v10626_v22 = vpop.f32.mrb[28].mxu0 }
 0x326   : > { %v3246_v61 = vadd.f32 %v3245_v46, %v3244_v34  ;;  %v10628_v26 = vpop.f32.mrb[29].mxu0  ;;  %v3147_v9 = vadd.f32 %v3146_v6, %v3145_v44  ;;  %v3191_v42 = vmul.f32 %v10626_v22, %v10626_v22  ;;  %v3150_v25 = vsel %vm521_vm3, %v10626_v22, 0.0 }
 0x327   : > { %v3148_v23 = vsel %vm521_vm3, %v10628_v26, 0.0  ;;  %v3190_v56 = vmul.f32 %v10628_v26, %v10628_v26 }
 0x328   : > { %v3149_v38 = vadd.f32 %v3148_v23, %v3147_v9  ;;  %v3248_v49 = vadd.f32 %v3247_v54, %v3246_v61  ;;  %v3251_v19 = vsel %vm521_vm3, %v3191_v42, 0.0 }
 0x329   : > { %v3249_v5 = vsel %vm521_vm3, %v3190_v56, 0.0  ;;  %v10640_v16 = vpop.f32.mrb[30].mxu0 }
 0x32a   : > { %v3250_v35 = vadd.f32 %v3249_v5, %v3248_v49  ;;  %v10642_v48 = vpop.f32.mrb[31].mxu0  ;;  %v3151_v8 = vadd.f32 %v3150_v25, %v3149_v38  ;;  %v3193_v41 = vmul.f32 %v10640_v16, %v10640_v16  ;;  %v3154_v52 = vsel %vm521_vm3, %v10640_v16, 0.0 }
 0x32b   : > { %v3152_v4 = vsel %vm521_vm3, %v10642_v48, 0.0  ;;  %v3192_v14 = vmul.f32 %v10642_v48, %v10642_v48 }
 0x32c   : > { %v3153_v18 = vadd.f32 %v3152_v4, %v3151_v8  ;;  %v3252_v47 = vadd.f32 %v3251_v19, %v3250_v35  ;;  %v3255_v13 = vsel %vm521_vm3, %v3193_v41, 0.0 }
 0x32d   : > { %v3253_v10 = vsel %vm521_vm3, %v3192_v14, 0.0 }
 0x32e   : > { %v3155_v27 = vadd.f32 %v3154_v52, %v3153_v18  ;;  %v3254_v21 = vadd.f32 %v3253_v10, %v3252_v47 }
 0x330   : > { %v3156_v1 = vrot.slane %v3155_v27, 4  ;;  %v3256_v31 = vadd.f32 %v3255_v13, %v3254_v21 }
 0x332   : > { %v3157_v39 = vadd.f32 %v3156_v1, %v3155_v27  ;;  %v3257_v20 = vrot.slane %v3256_v31, 4 }
 0x334   : > { %v3158_v44 = vrot.slane %v3157_v39, 2  ;;  %v3258_v34 = vadd.f32 %v3257_v20, %v3256_v31 }
 0x336   : > { %v3159_v6 = vadd.f32 %v3158_v44, %v3157_v39  ;;  %v3259_v46 = vrot.slane %v3258_v34, 2 }
 0x338   : > { %v3160_v61 = vrot.slane %v3159_v6, 1  ;;  %v3260_v9 = vadd.f32 %v3259_v46, %v3258_v34 }
 0x33a   : > { %v3161_v54 = vadd.f32 %v3160_v61, %v3159_v6  ;;  %v3261_v42 = vrot.slane %v3260_v9, 1 }
 0x33c   : > { %v3262_v23 = vadd.f32 %v3261_v42, %v3260_v9  ;;  %v10655_v56 = vmul.f32 0.00390625, %v3161_v54 }
 0x33e   : > { %v3264_v38 = vmul.f32 0.00390625, %v3262_v23  ;;  %v3265_v49 = vmul.f32 %v10655_v56, %v10655_v56  ;;  %v3298_v25 = vsub.f32 %v10642_v48, %v10655_v56  ;;  %v3268_v5 = vsub.f32 %v10425_v58, %v10655_v56 }
 0x33f   : > { %v3269_v35 = vsub.f32 %v10419_v62, %v10655_v56  ;;  %v3270_v8 = vsub.f32 %v10435_v50, %v10655_v56  ;;  %v3271_v19 = vsub.f32 %v10433_v11, %v10655_v56  ;;  %v3272_v41 = vsub.f32 %v10448_v55, %v10655_v56 }
 0x340   : > { %v3266_v4 = vsub.f32 %v3264_v38, %v3265_v49  ;;  %v3273_v14 = vsub.f32 %v10446_v53, %v10655_v56  ;;  %v3274_v48 = vsub.f32 %v10467_v15, %v10655_v56  ;;  %v3275_v58 = vsub.f32 %v10464_v37, %v10655_v56 }
 0x341   : > { %v3276_v62 = vsub.f32 %v10488_v3, %v10655_v56  ;;  %v3277_v50 = vsub.f32 %v10486_v36, %v10655_v56  ;;  %v3278_v11 = vsub.f32 %v10502_v7, %v10655_v56  ;;  %v3279_v55 = vsub.f32 %v10500_v33, %v10655_v56 }
 0x342   : > { %v3267_v18 = vmax.f32 %v3266_v4, 0.0  ;;  %v3280_v53 = vsub.f32 %v10516_v59, %v10655_v56  ;;  %v3281_v15 = vsub.f32 %v10514_v32, %v10655_v56  ;;  %v3282_v37 = vsub.f32 %v10530_v57, %v10655_v56 }
 0x343   : > { %v3283_v3 = vsub.f32 %v10528_v24, %v10655_v56  ;;  %v3284_v36 = vsub.f32 %v10544_v51, %v10655_v56  ;;  %v3285_v7 = vsub.f32 %v10542_v43, %v10655_v56  ;;  %v3286_v33 = vsub.f32 %v10558_v29, %v10655_v56 }
 0x344   : > { %v3300_v47 = vadd.f32 1e-05, %v3267_v18  ;;  %v3287_v59 = vsub.f32 %v10556_v28, %v10655_v56  ;;  %v3288_v32 = vsub.f32 %v10572_v40, %v10655_v56  ;;  %v3289_v57 = vsub.f32 %v10570_v60, %v10655_v56 }
 0x345   : > { %v3290_v24 = vsub.f32 %v10586_v17, %v10655_v56  ;;  %v3291_v51 = vsub.f32 %v10584_v30, %v10655_v56  ;;  %v3292_v43 = vsub.f32 %v10600_v12, %v10655_v56  ;;  %v3293_v29 = vsub.f32 %v10598_v2, %v10655_v56 }
 0x346   : > { %9248 = vrsqrt.f32 %v3300_v47  ;;  %v3294_v28 = vsub.f32 %v10614_v0, %v10655_v56  ;;  %v3295_v40 = vsub.f32 %v10612_v45, %v10655_v56  ;;  %v3296_v60 = vsub.f32 %v10628_v26, %v10655_v56 }
 0x347   : > { %v3297_v17 = vsub.f32 %v10626_v22, %v10655_v56  ;;  %v3299_v30 = vsub.f32 %v10640_v16, %v10655_v56 }
 0x350   : > { %v9249_v12 = vpop.eup %9248 }
 0x351   : > { %v10723_v52 = vmul.f32 %v9249_v12, %v3298_v25  ;;  %v10725_v2 = vmul.f32 %v9249_v12, %v3268_v5  ;;  %v10727_v10 = vmul.f32 %v9249_v12, %v3269_v35  ;;  %v10729_v0 = vmul.f32 %v9249_v12, %v3270_v8 }
 0x352   : > { %v10731_v27 = vmul.f32 %v9249_v12, %v3271_v19  ;;  %v10733_v45 = vmul.f32 %v9249_v12, %v3272_v41  ;;  %v10735_v26 = vmul.f32 %v9249_v12, %v3273_v14  ;;  %v10737_v21 = vmul.f32 %v9249_v12, %v3274_v48 }
 0x353   : > { %12845 = vst [vmem:[#allocation15_spill] sm:$0xff] %v10723_v52  ;;  %v10739_v22 = vmul.f32 %v9249_v12, %v3275_v58  ;;  %v10741_v16 = vmul.f32 %v9249_v12, %v3276_v62  ;;  %v10743_v13 = vmul.f32 %v9249_v12, %v3277_v50  ;;  %v10745_v1 = vmul.f32 %v9249_v12, %v3278_v11 }
 0x354   : > { %v10747_v31 = vmul.f32 %v9249_v12, %v3279_v55  ;;  %v10749_v39 = vmul.f32 %v9249_v12, %v3280_v53  ;;  %v10751_v20 = vmul.f32 %v9249_v12, %v3281_v15  ;;  %v10753_v44 = vmul.f32 %v9249_v12, %v3282_v37 }
 0x355   : > { %v10755_v34 = vmul.f32 %v9249_v12, %v3283_v3  ;;  %v10757_v6 = vmul.f32 %v9249_v12, %v3284_v36  ;;  %v10759_v46 = vmul.f32 %v9249_v12, %v3285_v7  ;;  %v10761_v61 = vmul.f32 %v9249_v12, %v3286_v33 }
 0x356   : > { %v10763_v9 = vmul.f32 %v9249_v12, %v3287_v59  ;;  %v10765_v54 = vmul.f32 %v9249_v12, %v3288_v32  ;;  %v10767_v42 = vmul.f32 %v9249_v12, %v3289_v57  ;;  %v10769_v23 = vmul.f32 %v9249_v12, %v3290_v24 }
 0x357   : > { %v10771_v56 = vmul.f32 %v9249_v12, %v3291_v51  ;;  %v10773_v38 = vmul.f32 %v9249_v12, %v3292_v43  ;;  %v10775_v49 = vmul.f32 %v9249_v12, %v3293_v29  ;;  %v10777_v25 = vmul.f32 %v9249_v12, %v3294_v28 }
 0x358   : > { %12846 = vst [vmem:[#allocation16_spill] sm:$0xff] %v10765_v54  ;;  %12847 = vst [vmem:[#allocation18_spill] sm:$0xff] %v10767_v42  ;;  %v10779_v5 = vmul.f32 %v9249_v12, %v3295_v40  ;;  %v10781_v35 = vmul.f32 %v9249_v12, %v3296_v60  ;;  %v10783_v8 = vmul.f32 %v9249_v12, %v3297_v17  ;;  %v12613_v41 = vmax.f32 %v10729_v0, 0.0 }
 0x359   : > { %12848 = vst [vmem:[#allocation22_spill] sm:$0xff] %v10769_v23  ;;  %12849 = vst [vmem:[#allocation27_spill] sm:$0xff] %v10771_v56  ;;  %v10785_v19 = vmul.f32 %v9249_v12, %v3299_v30  ;;  %v12612_v4 = vmax.f32 %v10731_v27, 0.0  ;;  %v12614_v14 = vmax.f32 %v10733_v45, 0.0  ;;  %v12616_v48 = vmax.f32 %v10735_v26, 0.0 }
 0x35a   : > { %12850 = vst [vmem:[#allocation28_spill] sm:$0xff] %v10773_v38  ;;  %12851 = vst [vmem:[#allocation26_spill] sm:$0xff] %v10775_v49  ;;  %v12615_v58 = vmax.f32 %v10737_v21, 0.0  ;;  %v12617_v62 = vmax.f32 %v10739_v22, 0.0  ;;  %v12618_v50 = vmax.f32 %v10741_v16, 0.0  ;;  %v12619_v11 = vmax.f32 %v10743_v13, 0.0 }
 0x35b   : > { %12852 = vst [vmem:[#allocation29_spill] sm:$0xff] %v10777_v25  ;;  %12853 = vst [vmem:[#allocation36_spill] sm:$0xff] %v10779_v5  ;;  %v12620_v55 = vmax.f32 %v10745_v1, 0.0  ;;  %v12621_v18 = vmax.f32 %v10747_v31, 0.0  ;;  %v12622_v53 = vmax.f32 %v10749_v39, 0.0  ;;  %v12623_v15 = vmax.f32 %v10751_v20, 0.0 }
 0x35c   : > { %12854 = vst [vmem:[#allocation41_spill] sm:$0xff] %v10781_v35  ;;  %12855 = vst [vmem:[#allocation2_spill] sm:$0xff] %v10783_v8  ;;  %v12624_v37 = vmax.f32 %v10753_v44, 0.0  ;;  %v12625_v3 = vmax.f32 %v10755_v34, 0.0  ;;  %v12626_v36 = vmax.f32 %v10757_v6, 0.0  ;;  %v12627_v7 = vmax.f32 %v10759_v46, 0.0 }
 0x35d   : > { %12856 = vst [vmem:[#allocation3_spill] sm:$0xff] %v10785_v19  ;;  %v12628_v33 = vmax.f32 %v10761_v61, 0.0  ;;  %v12629_v47 = vmax.f32 %v10763_v9, 0.0  ;;  %v12631_v59 = vmax.f32 %v10765_v54, 0.0  ;;  %v12636_v32 = vmax.f32 %v10767_v42, 0.0 }
 0x35e   : > { %v3430_v60 = vrot.slane %v12613_v41, 7  ;;  %v3431_v17 = vrot.slane %v12612_v4, 7  ;;  %v10821_v12 = vrot.slane %v12614_v14, 7  ;;  %v10825_v43 = vrot.slane %v12616_v48, 7 }
 0x35f   : > { %v10829_v28 = vrot.slane %v12615_v58, 7  ;;  %v10836_v4 = vrot.slane %v12617_v62, 7  ;;  %v10840_v41 = vrot.slane %v12618_v50, 7  ;;  %v10844_v14 = vrot.slane %v12619_v11, 7 }
 0x360   : > { %v10832_v40 = vsel %vm267_vm1, %v3430_v60, %v3431_v17  ;;  %v10849_v58 = vsel %vm267_vm1, %v10821_v12, %v10825_v43  ;;  %v10853_v48 = vrot.slane %v12620_v55, 7  ;;  %v10857_v62 = vrot.slane %v12621_v18, 7 }
 0x361   : > { %12857 = vst [vmem:[#allocation4_spill] sm:$0xff] %v10832_v40  ;;  %v10861_v50 = vrot.slane %v12622_v53, 7  ;;  %v10866_v11 = vsel %vm267_vm1, %v10829_v28, %v10836_v4  ;;  %v10871_v30 = vsel %vm267_vm1, %v10840_v41, %v10844_v14  ;;  %v10875_v55 = vrot.slane %v12623_v15, 7 }
 0x362   : > { %v10879_v18 = vrot.slane %v12624_v37, 7  ;;  %v10884_v53 = vsel %vm267_vm1, %v10853_v48, %v10857_v62  ;;  %v10888_v29 = vrot.slane %v12625_v3, 7  ;;  %v10892_v51 = vrot.slane %v12626_v36, 7 }
 0x363   : > { %v10896_v15 = vrot.slane %v12627_v7, 7  ;;  %v10901_v37 = vsel %vm267_vm1, %v10861_v50, %v10875_v55  ;;  %v10905_v24 = vrot.slane %v12628_v33, 7  ;;  %v10909_v3 = vrot.slane %v12629_v47, 7 }
 0x364   : > { %v10913_v36 = vrot.slane %v12631_v59, 7  ;;  %v10918_v7 = vsel %vm267_vm1, %v10879_v18, %v10888_v29  ;;  %v10927_v33 = vrot.slane %v12636_v32, 7  ;;  %v12861_v47 = vmax.f32 %v10769_v23, 0.0 }
 0x365   : > { %12858 = vst [vmem:[#allocation5_spill] sm:$0xff] %v10896_v15  ;;  %12859 = vst [vmem:[#allocation6_spill] sm:$0xff] %v10909_v3  ;;  %v10923_v57 = vsel %vm267_vm1, %v10892_v51, %v10896_v15  ;;  %v10936_v59 = vsel %vm267_vm1, %v10905_v24, %v10909_v3  ;;  %v12862_v52 = vmax.f32 %v10771_v56, 0.0  ;;  %v12864_v15 = vmax.f32 %v10773_v38, 0.0 }
 0x366   : > { %12860 = vst [vmem:[#allocation7_spill] sm:$0xff] %v10923_v57  ;;  %v10931_v19 = vrot.slane %v12861_v47, 7  ;;  %v12866_v32 = vmax.f32 %v10775_v49, 0.0  ;;  %v10953_v47 = vsel %vm267_vm1, %v10913_v36, %v10927_v33  ;;  %v12868_v23 = vmax.f32 %v10777_v25, 0.0 }
 0x367   : > { %v10940_v54 = vrot.slane %v12862_v52, 7  ;;  %v10944_v57 = vrot.slane %v12864_v15, 7  ;;  %v12869_v52 = vmax.f32 %v10779_v5, 0.0  ;;  %v12871_v15 = vmax.f32 %v10781_v35, 0.0 }
 0x368   : > { %v10948_v42 = vrot.slane %v12866_v32, 7  ;;  %v10957_v3 = vrot.slane %v12868_v23, 7  ;;  %v3334_v32 = vmax.f32 %v10725_v2, 0.0  ;;  %v12873_v5 = vmax.f32 %v10783_v8, 0.0 }
 0x369   : > { %12863 = vst [vmem:[#allocation8_spill] sm:$0xff] %v10940_v54  ;;  %12865 = vst [vmem:[#allocation9_spill] sm:$0xff] %v10944_v57  ;;  %v10961_v56 = vrot.slane %v12869_v52, 7  ;;  %v10965_v38 = vrot.slane %v12871_v15, 7  ;;  %v10971_v49 = vsel %vm267_vm1, %v10931_v19, %v10940_v54  ;;  %v3335_v35 = vmax.f32 %v10727_v10, 0.0 }
 0x36a   : > { %12867 = vst [vmem:[#allocation10_spill] sm:$0xff] %v10948_v42  ;;  %v10976_v23 = vsel %vm267_vm1, %v10944_v57, %v10948_v42  ;;  %v10980_v52 = vrot.slane %v12873_v5, 7  ;;  %v12875_v15 = vmax.f32 %v10729_v0, 0.0  ;;  %v3383_v42 = vrot.slane %v3334_v32, 1 }
 0x36b   : > { %12870 = vst [vmem:[#allocation11_spill] sm:$0xff] %v10961_v56  ;;  %12872 = vst [vmem:[#allocation12_spill] sm:$0xff] %v10976_v23  ;;  %v10988_v2 = vsel %vm267_vm1, %v10957_v3, %v10961_v56  ;;  %v3433_v23 = vrot.slane %v3334_v32, 7  ;;  %v3434_v8 = vrot.slane %v3335_v35, 7  ;;  %v12877_v5 = vmax.f32 %v10731_v27, 0.0 }
 0x36c   : > { %12874 = vst [vmem:[#allocation13_spill] sm:$0xff] %v10980_v52  ;;  %v3382_v25 = vrot.slane %v12875_v15, 1  ;;  %12876 = vst [vmem:[#allocation14_spill] sm:$0xff] %v10988_v2  ;;  %v10993_v54 = vsel %vm267_vm1, %v10965_v38, %v10980_v52  ;;  %v3511_v0 = vrot.slane %v3335_v35, 5  ;;  %v3606_v56 = vrot.slane %v10832_v40, 1 }
 0x36d   : > { %v3510_v57 = vrot.slane %v12877_v5, 5  ;;  %v11006_v52 = vsel %vm267_vm1, %v3433_v23, %v3434_v8  ;;  %v11009_v32 = vsel %vm267_vm1, %v3383_v42, %v3433_v23  ;;  %v12878_v27 = vmax.f32 %v10733_v45, 0.0 }
 0x36e   : > { %v10998_v10 = vsel %vm267_vm1, %v3382_v25, %v3430_v60  ;;  %v3610_v35 = vrot.slane %v11009_v32, 1  ;;  %v3611_v60 = vrot.slane %v11006_v52, 1  ;;  %v12881_v23 = vmax.f32 %v10735_v26, 0.0 }
 0x36f   : > { %v3605_v15 = vrot.slane %v10998_v10, 1  ;;  %v11003_v2 = vsel %vm267_vm1, %v3431_v17, %v3510_v57  ;;  %v3384_v5 = vrot.slane %v12878_v27, 1  ;;  %v11020_v57 = vsel %vm267_vm1, %v3434_v8, %v3511_v0  ;;  %v11031_v17 = vld [vmem:[%s12536_s2 + $0x8] sm:$0xf] }
 0x370   : > { %v3608_v25 = vrot.slane %v11003_v2, 1  ;;  %v3613_v45 = vrot.slane %v11020_v57, 1  ;;  %v11038_v8 = vsel %vm443_vm2, %v3610_v35, %v3611_v60  ;;  %v12882_v0 = vmax.f32 %v10737_v21, 0.0 }
 0x371   : > { %v11017_v40 = vsel %vm443_vm2, %v3605_v15, %v3606_v56  ;;  %v3512_v15 = vrot.slane %v12881_v23, 5  ;;  %v11044_v27 = vsel %vm267_vm1, %v3384_v5, %v10821_v12  ;;  %v3616_v5 = vrot.slane %v10849_v58, 1 }
 0x372   : > { %12879 = vst [vmem:[#allocation17_spill] sm:$0xff] %v11017_v40  ;;  %8280 = vmatprep.mubr.msk.f32.mxu1 %vm521_vm3, %v11017_v40  ;;  %v11025_v42 = vsel %vm443_vm2, %v3606_v56, %v3608_v25  ;;  %v3385_v56 = vrot.slane %v12882_v0, 1  ;;  %v11053_v26 = vsel %vm443_vm2, %v3611_v60, %v3613_v45  ;;  %v12884_v25 = vmax.f32 %v10739_v22, 0.0 }
 0x373   : > { %12880 = vst [vmem:[#allocation19_spill] sm:$0xff] %v11025_v42  ;;  %8281 = vmatmul.mubr.msk.f32.vlgmr.msra.gmra.mrb[0].mxu1 %vm521_vm3, %v11025_v42  ;;  %12883 = vst [vmem:[#allocation20_spill] sm:$0xff] %v11053_v26  ;;  %v3615_v12 = vrot.slane %v11044_v27, 1  ;;  %v12885_v35 = vmax.f32 %v10741_v16, 0.0  ;;  %v12886_v22 = vmax.f32 %v10743_v13, 0.0 }
 0x374   : > { %8329 = vmatpush3.msk.msra.mxu1 %vm582_vm0, %v10479_v63  ;;  %8283 = vmatprep.mubr.msk.f32.mxu1 %vm521_vm3, %v11038_v8  ;;  %v3513_v21 = vrot.slane %v12884_v25, 5  ;;  %v11063_v63 = vsel %vm267_vm1, %v10825_v43, %v3512_v15  ;;  %v11069_v60 = vsel %vm267_vm1, %v3385_v56, %v10829_v28  ;;  %v3621_v15 = vrot.slane %v10866_v11, 1 }
 0x375   : > { %8378 = vmatprep.subr.msk.mxu1 %vm582_vm0, %v11031_v17  ;;  %v3386_v23 = vrot.slane %v12885_v35, 1  ;;  %v3514_v45 = vrot.slane %v12886_v22, 5  ;;  %v3618_v0 = vrot.slane %v11063_v63, 1  ;;  %v11079_v43 = vsel %vm443_vm2, %v3615_v12, %v3616_v5 }
 0x376   : > { %12887 = vst [vmem:[#allocation21_spill] sm:$0xff] %v11079_v43  ;;  %v3620_v16 = vrot.slane %v11069_v60, 1  ;;  %v11085_v28 = vsel %vm267_vm1, %v10836_v4, %v3513_v21  ;;  %v12888_v56 = vmax.f32 %v10745_v1, 0.0  ;;  %v12889_v12 = vmax.f32 %v10747_v31, 0.0 }
 0x377   : > { %8284 = vmatmul.mubr.msk.f32.gmra.mrb[2].mxu1 %vm521_vm3, %v11053_v26  ;;  %v11091_v25 = vsel %vm267_vm1, %v3386_v23, %v10840_v41  ;;  %v11098_v22 = vsel %vm443_vm2, %v3616_v5, %v3618_v0  ;;  %v3626_v4 = vrot.slane %v10871_v30, 1  ;;  %v11110_v21 = vsel %vm267_vm1, %v10844_v14, %v3514_v45 }
 0x378   : > { %8286 = vmatprep.mubr.msk.f32.mxu1 %vm521_vm3, %v11017_v40  ;;  %v3387_v13 = vrot.slane %v12888_v56, 1  ;;  %v3515_v35 = vrot.slane %v12889_v12, 5  ;;  %12890 = vst [vmem:[#allocation23_spill] sm:$0xff] %v11098_v22  ;;  %v11104_v1 = vsel %vm443_vm2, %v3620_v16, %v3621_v15  ;;  %v3625_v41 = vrot.slane %v11091_v25, 1 }
 0x379   : > { %12891 = vst [vmem:[#allocation24_spill] sm:$0xff] %v11104_v1  ;;  %v12892_v31 = vmax.f32 %v10749_v39, 0.0  ;;  %v12893_v0 = vmax.f32 %v10751_v20, 0.0  ;;  %v3628_v12 = vrot.slane %v11110_v21, 1  ;;  %v12896_v20 = vmax.f32 %v10753_v44, 0.0 }
 0x37a   : > { %v11116_v23 = vsel %vm267_vm1, %v3387_v13, %v10853_v48  ;;  %v11129_v39 = vsel %vm443_vm2, %v3625_v41, %v3626_v4  ;;  %v3631_v48 = vrot.slane %v10884_v53, 1  ;;  %v11135_v45 = vsel %vm267_vm1, %v10857_v62, %v3515_v35 }
 0x37b   : > { %8287 = vmatmul.mubr.msk.f32.gmra.mrb[4].mxu1 %vm521_vm3, %v11025_v42  ;;  %v3623_v42 = vrot.slane %v11085_v28, 1  ;;  %v3388_v5 = vrot.slane %v12892_v31, 1  ;;  %v3516_v16 = vrot.slane %v12893_v0, 5  ;;  %12895 = vst [vmem:[#allocation30_spill] sm:$0xff] %v11129_v39  ;;  %v3630_v14 = vrot.slane %v11116_v23, 1 }
 0x37c   : > { %8289 = vmatprep.mubr.msk.f32.mxu1 %vm521_vm3, %v11079_v43  ;;  %v12897_v13 = vmax.f32 %v10755_v34, 0.0  ;;  %v11148_v31 = vsel %vm443_vm2, %v3626_v4, %v3628_v12  ;;  %v3633_v0 = vrot.slane %v11135_v45, 1  ;;  %v12900_v34 = vmax.f32 %v10757_v6, 0.0 }
 0x37d   : > { %v11123_v56 = vsel %vm443_vm2, %v3621_v15, %v3623_v42  ;;  %v3389_v42 = vrot.slane %v12896_v20, 1  ;;  %v11141_v15 = vsel %vm267_vm1, %v3388_v5, %v10861_v50  ;;  %12898 = vst [vmem:[#allocation31_spill] sm:$0xff] %v11148_v31  ;;  %v11154_v44 = vsel %vm443_vm2, %v3630_v14, %v3631_v48 }
 0x37e   : > { %12894 = vst [vmem:[#allocation25_spill] sm:$0xff] %v11123_v56  ;;  %v3517_v41 = vrot.slane %v12897_v13, 5  ;;  %12899 = vst [vmem:[#allocation32_spill] sm:$0xff] %v11154_v44  ;;  %v3635_v62 = vrot.slane %v11141_v15, 1  ;;  %v3636_v50 = vrot.slane %v10901_v37, 1  ;;  %v11160_v35 = vsel %vm267_vm1, %v10875_v55, %v3516_v16 }
 0x37f   : > { %8290 = vmatmul.mubr.msk.f32.gmra.mrb[6].mxu1 %vm521_vm3, %v11098_v22  ;;  %v3390_v4 = vrot.slane %v12900_v34, 1  ;;  %v11166_v5 = vsel %vm267_vm1, %v3389_v42, %v10879_v18  ;;  %v12901_v12 = vmax.f32 %v10759_v46, 0.0  ;;  %v11173_v20 = vsel %vm443_vm2, %v3631_v48, %v3633_v0 }
 0x380   : > { %8292 = vmatprep.mubr.msk.f32.mxu1 %vm521_vm3, %v11104_v1  ;;  %12902 = vst [vmem:[#allocation33_spill] sm:$0xff] %v11173_v20  ;;  %v3638_v13 = vrot.slane %v11160_v35, 1  ;;  %v11179_v6 = vsel %vm443_vm2, %v3635_v62, %v3636_v50  ;;  %v3640_v55 = vrot.slane %v11166_v5, 1  ;;  %v3641_v18 = vrot.slane %v10918_v7, 1 }
 0x381   : > { %v3518_v14 = vrot.slane %v12901_v12, 5  ;;  %12903 = vst [vmem:[#allocation34_spill] sm:$0xff] %v11179_v6  ;;  %v11185_v16 = vsel %vm267_vm1, %v10888_v29, %v3517_v41  ;;  %v12904_v46 = vmax.f32 %v10761_v61, 0.0  ;;  %v11191_v42 = vsel %vm267_vm1, %v3390_v4, %v10892_v51  ;;  %v12908_v29 = vld [vmem:[#allocation7_spill] sm:$0xff]  ;;  %v12909_v4 = vld [vmem:[#allocation5_spill] sm:$0xff] }
 0x382   : > { %v12905_v0 = vmax.f32 %v10763_v9, 0.0  ;;  %v11198_v34 = vsel %vm443_vm2, %v3636_v50, %v3638_v13  ;;  %v3643_v12 = vrot.slane %v11185_v16, 1  ;;  %v11204_v61 = vsel %vm443_vm2, %v3640_v55, %v3641_v18  ;;  %v12910_v9 = vld [vmem:[#allocation16_spill] sm:$0xff]  ;;  %v12912_v55 = vld [vmem:[#allocation15_spill] sm:$0xff] }
 0x383   : > { %8293 = vmatmul.mubr.msk.f32.gmra.mrb[8].mxu1 %vm521_vm3, %v11123_v56  ;;  %v3391_v48 = vrot.slane %v12904_v46, 1  ;;  %12906 = vst [vmem:[#allocation35_spill] sm:$0xff] %v11198_v34  ;;  %12907 = vst [vmem:[#allocation37_spill] sm:$0xff] %v11204_v61  ;;  %v3645_v51 = vrot.slane %v11191_v42, 1  ;;  %v3646_v41 = vrot.slane %v12908_v29, 1  ;;  %v11210_v46 = vsel %vm267_vm1, %v12909_v4, %v3518_v14 }
 0x384   : > { %8295 = vmatprep.mubr.msk.f32.mxu1 %vm521_vm3, %v11129_v39  ;;  %v3519_v62 = vrot.slane %v12905_v0, 5  ;;  %v12911_v0 = vmax.f32 %v12910_v9, 0.0  ;;  %v3648_v14 = vrot.slane %v11210_v46, 1  ;;  %v12917_v9 = vld [vmem:[#allocation6_spill] sm:$0xff]  ;;  %v12922_v39 = vld [vmem:[#allocation27_spill] sm:$0xff] }
 0x385   : > { %v11216_v13 = vsel %vm267_vm1, %v3391_v48, %v10905_v24  ;;  %v11230_v4 = vsel %vm443_vm2, %v3645_v51, %v3646_v41  ;;  %v3651_v48 = vrot.slane %v10936_v59, 1  ;;  %v12921_v51 = vmax.f32 %v12912_v55, 0.0 }
 0x386   : > { %v3392_v50 = vrot.slane %v12911_v0, 1  ;;  %12916 = vst [vmem:[#allocation39_spill] sm:$0xff] %v11230_v4  ;;  %v3650_v24 = vrot.slane %v11216_v13, 1  ;;  %v11236_v0 = vsel %vm267_vm1, %v12917_v9, %v3519_v62  ;;  %v12923_v56 = vmax.f32 %v12922_v39, 0.0 }
 0x387   : > { %8296 = vmatmul.mubr.msk.f32.gmra.mrb[10].mxu1 %vm521_vm3, %v11148_v31  ;;  %v11224_v31 = vsel %vm443_vm2, %v3641_v18, %v3643_v12  ;;  %v12919_v18 = vld [vmem:[#allocation22_spill] sm:$0xff]  ;;  %v11254_v9 = vsel %vm443_vm2, %v3646_v41, %v3648_v14 }
 0x388   : > { %8298 = vmatprep.mubr.msk.f32.mxu1 %vm521_vm3, %v11154_v44  ;;  %12915 = vst [vmem:[#allocation38_spill] sm:$0xff] %v11224_v31  ;;  %v12920_v12 = vmax.f32 %v12919_v18, 0.0  ;;  %v3521_v62 = vrot.slane %v12923_v56, 5  ;;  %12924 = vst [vmem:[#allocation40_spill] sm:$0xff] %v11254_v9  ;;  %v3653_v18 = vrot.slane %v11236_v0, 1  ;;  %v12926_v56 = vld [vmem:[#allocation28_spill] sm:$0xff] }
 0x389   : > { %v12927_v39 = vmax.f32 %v12926_v56, 0.0 }
 0x38b   : > { %8299 = vmatmul.mubr.msk.f32.gmra.mrb[12].mxu1 %vm521_vm3, %v11173_v20  ;;  %v3394_v41 = vrot.slane %v12927_v39, 1 }
 0x38c   : > { %8301 = vmatprep.mubr.msk.f32.mxu1 %vm521_vm3, %v11179_v6  ;;  %v12913_v6 = vld [vmem:[#allocation18_spill] sm:$0xff] }
 0x38d   : > { %v12914_v20 = vmax.f32 %v12913_v6, 0.0 }
 0x38f   : > { %8302 = vmatmul.mubr.msk.f32.gmra.mrb[14].mxu1 %vm521_vm3, %v11198_v34  ;;  %v3520_v44 = vrot.slane %v12914_v20, 5  ;;  %v12918_v20 = vld [vmem:[#allocation3_spill] sm:$0xff]  ;;  %v3393_v34 = vrot.slane %v12920_v12, 1  ;;  %v3656_v12 = vrot.slane %v10953_v47, 1 }
 0x390   : > { %8304 = vmatprep.mubr.msk.f32.mxu1 %vm521_vm3, %v11204_v61  ;;  %v12682_v6 = vmax.f32 %v12918_v20, 0.0  ;;  %v11243_v61 = vsel %vm267_vm1, %v3392_v50, %v10913_v36  ;;  %v11260_v36 = vsel %vm443_vm2, %v3650_v24, %v3651_v48  ;;  %v12936_v20 = vld [vmem:[#allocation9_spill] sm:$0xff] }
 0x391   : > { %12925 = vst [vmem:[#allocation42_spill] sm:$0xff] %v11260_v36  ;;  %v3655_v50 = vrot.slane %v11243_v61, 1  ;;  %v11272_v14 = vsel %vm267_vm1, %v3393_v34, %v10931_v19 }
 0x392   : > { %v11278_v24 = vrot.slane %v12682_v6, 7  ;;  %v3660_v56 = vrot.slane %v11272_v14, 1 }
 0x393   : > { %8305 = vmatmul.mubr.msk.f32.gmra.mrb[16].mxu1 %vm521_vm3, %v11224_v31  ;;  %v11249_v31 = vrot.slane %v12921_v51, 7  ;;  %v11266_v51 = vsel %vm267_vm1, %v10927_v33, %v3520_v44  ;;  %v11283_v33 = vsel %vm443_vm2, %v3651_v48, %v3653_v18  ;;  %v11294_v34 = vsel %vm443_vm2, %v3655_v50, %v3656_v12  ;;  %v12934_v18 = vld [vmem:[#allocation29_spill] sm:$0xff]  ;;  %v12937_v50 = vld [vmem:[#allocation36_spill] sm:$0xff] }
 0x394   : > { %8307 = vmatprep.mubr.msk.f32.mxu1 %vm521_vm3, %v11230_v4  ;;  %12928 = vst [vmem:[#allocation7_spill] sm:$0xff] %v11278_v24  ;;  %12931 = vst [vmem:[#allocation5_spill] sm:$0xff] %v11283_v33  ;;  %v3658_v44 = vrot.slane %v11266_v51, 1  ;;  %v12935_v39 = vmax.f32 %v12934_v18, 0.0  ;;  %v12942_v18 = vld [vmem:[#allocation10_spill] sm:$0xff] }
 0x395   : > { %v11289_v19 = vsel %vm267_vm1, %v11249_v31, %v11278_v24  ;;  %12932 = vst [vmem:[#allocation16_spill] sm:$0xff] %v11294_v34  ;;  %v11306_v24 = vsel %vm267_vm1, %v3394_v41, %v12936_v20  ;;  %v12941_v41 = vld [vmem:[#allocation12_spill] sm:$0xff] }
 0x396   : > { %v3395_v6 = vrot.slane %v12935_v39, 1  ;;  %v11313_v22 = vsel %vm443_vm2, %v3656_v12, %v3658_v44  ;;  %v3665_v20 = vrot.slane %v11306_v24, 1 }
 0x397   : > { %8308 = vmatmul.mubr.msk.f32.gmra.mrb[18].mxu1 %vm521_vm3, %v11254_v9  ;;  %v12929_v9 = vld [vmem:[#allocation26_spill] sm:$0xff]  ;;  %12939 = vst [vmem:[#allocation15_spill] sm:$0xff] %v11313_v22 }
 0x398   : > { %8310 = vmatprep.mubr.msk.f32.mxu1 %vm521_vm3, %v11260_v36  ;;  %v12930_v4 = vmax.f32 %v12929_v9, 0.0  ;;  %v12933_v9 = vld [vmem:[#allocation8_spill] sm:$0xff]  ;;  %v11331_v44 = vsel %vm267_vm1, %v3395_v6, %v10957_v3  ;;  %v12949_v6 = vld [vmem:[#allocation14_spill] sm:$0xff] }
 0x399   : > { %v11300_v48 = vsel %vm267_vm1, %v12933_v9, %v3521_v62  ;;  %v3666_v9 = vrot.slane %v12941_v41, 1  ;;  %v3670_v3 = vrot.slane %v11331_v44, 1 }
 0x39a   : > { %v3522_v1 = vrot.slane %v12930_v4, 5  ;;  %v3661_v4 = vrot.slane %v10971_v49, 1  ;;  %v3663_v43 = vrot.slane %v11300_v48, 1 }
 0x39b   : > { %8311 = vmatmul.mubr.msk.f32.gmra.mrb[20].mxu1 %vm521_vm3, %v11283_v33  ;;  %v12938_v33 = vmax.f32 %v12937_v50, 0.0 }
 0x39c   : > { %8313 = vmatprep.mubr.msk.f32.mxu1 %vm521_vm3, %v11294_v34  ;;  %v11319_v62 = vsel %vm443_vm2, %v3660_v56, %v3661_v4  ;;  %v11325_v39 = vsel %vm267_vm1, %v12942_v18, %v3522_v1  ;;  %v12945_v56 = vld [vmem:[#allocation2_spill] sm:$0xff]  ;;  %v11338_v40 = vsel %vm443_vm2, %v3661_v4, %v3663_v43  ;;  %v11344_v1 = vsel %vm443_vm2, %v3665_v20, %v3666_v9 }
 0x39d   : > { %v3523_v36 = vrot.slane %v12938_v33, 5  ;;  %12940 = vst [vmem:[#allocation18_spill] sm:$0xff] %v11319_v62  ;;  %v12943_v33 = vld [vmem:[#allocation41_spill] sm:$0xff]  ;;  %12947 = vst [vmem:[#allocation6_spill] sm:$0xff] %v11338_v40  ;;  %v3668_v26 = vrot.slane %v11325_v39, 1  ;;  %v3671_v18 = vrot.slane %v12949_v6, 1 }
 0x39e   : > { %v12944_v50 = vmax.f32 %v12943_v33, 0.0  ;;  %12948 = vst [vmem:[#allocation22_spill] sm:$0xff] %v11344_v1  ;;  %v12950_v33 = vld [vmem:[#allocation11_spill] sm:$0xff] }
 0x39f   : > { %8314 = vmatmul.mubr.msk.f32.gmra.mrb[22].mxu1 %vm521_vm3, %v11313_v22  ;;  %v12946_v22 = vmax.f32 %v12945_v56, 0.0  ;;  %v11365_v20 = vsel %vm443_vm2, %v3670_v3, %v3671_v18  ;;  %v3676_v56 = vrot.slane %v10993_v54, 1 }
 0x3a0   : > { %v3396_v12 = vrot.slane %v12944_v50, 1  ;;  %8316 = vmatprep.mubr.msk.f32.mxu1 %vm521_vm3, %v11319_v62  ;;  %v11350_v50 = vsel %vm267_vm1, %v12950_v33, %v3523_v36  ;;  %12952 = vst [vmem:[#allocation28_spill] sm:$0xff] %v11365_v20  ;;  %v12956_v33 = vld [vmem:[#allocation4_spill] sm:$0xff] }
 0x3a1   : > { %v3524_v34 = vrot.slane %v12946_v22, 5  ;;  %v11359_v22 = vsel %vm443_vm2, %v3666_v9, %v3668_v26  ;;  %v3673_v4 = vrot.slane %v11350_v50, 1 }
 0x3a2   : > { %v11354_v43 = vsel %vm267_vm1, %v3396_v12, %v10965_v38  ;;  %12951 = vst [vmem:[#allocation27_spill] sm:$0xff] %v11359_v22  ;;  %v12953_v38 = vld [vmem:[#allocation13_spill] sm:$0xff] }
 0x3a3   : > { %8317 = vmatmul.mubr.msk.f32.gmra.mrb[24].mxu1 %vm521_vm3, %v11338_v40  ;;  %v3675_v36 = vrot.slane %v11354_v43, 1  ;;  %v11371_v12 = vsel %vm267_vm1, %v12953_v38, %v3524_v34  ;;  %v11376_v26 = vsel %vm443_vm2, %v3671_v18, %v3673_v4  ;;  %v7026_v18 = vld [vmem:[%s12536_s2 + $0xc] sm:$0xf]  ;;  %v4259_v4 = vrot.slane %v12956_v33, 2 }
 0x3a4   : > { %8319 = vmatprep.mubr.msk.f32.mxu1 %vm521_vm3, %v11344_v1  ;;  %v3678_v9 = vrot.slane %v11371_v12, 1  ;;  %v4263_v38 = vrot.slane %v11009_v32, 2 }
 0x3a5   : > { %v11382_v3 = vsel %vm443_vm2, %v3675_v36, %v3676_v56  ;;  %v4261_v36 = vrot.slane %v11003_v2, 2  ;;  %v11478_v2 = vld [vmem:[%s12536_s2 + $0x10] sm:$0xf] }
 0x3a6   : > { %12954 = vst [vmem:[#allocation26_spill] sm:$0xff] %v11382_v3  ;;  %v11387_v34 = vsel %vm443_vm2, %v3676_v56, %v3678_v9  ;;  %v4264_v9 = vrot.slane %v11006_v52, 2 }
 0x3a7   : > { %8320 = vmatmul.mubr.msk.f32.gmra.mrb[26].mxu1 %vm521_vm3, %v11359_v22  ;;  %12955 = vst [vmem:[#allocation8_spill] sm:$0xff] %v11387_v34 }
 0x3a8   : > { %8322 = vmatprep.mubr.msk.f32.mxu1 %vm521_vm3, %v11365_v20 }
 0x3ab   : > { %8323 = vmatmul.mubr.msk.f32.gmra.mrb[28].mxu1 %vm521_vm3, %v11376_v26 }
 0x3ac   : > { %8325 = vmatprep.mubr.msk.f32.mxu1 %vm521_vm3, %v11382_v3  ;;  %v4266_v3 = vrot.slane %v11020_v57, 2 }
 0x3ae   : > { %v11491_v57 = vsel %vm1099_vm4, %v4264_v9, %v4266_v3  ;;  %v4273_v3 = vrot.slane %v11069_v60, 2 }
 0x3af   : > { %8326 = vmatmul.mubr.msk.f32.gmra.mrb[30].mxu1 %vm521_vm3, %v11387_v34  ;;  %v11472_v34 = vsel %vm1099_vm4, %v4259_v4, %v4261_v36  ;;  %12959 = vst [vmem:[#allocation36_spill] sm:$0xff] %v11491_v57  ;;  %v4269_v36 = vrot.slane %v10849_v58, 2 }
 0x3b0   : > { %8330 = vmatprep.mubr.msk.f32.mxu1 %vm521_vm3, %v10998_v10  ;;  %12958 = vst [vmem:[#allocation9_spill] sm:$0xff] %v11472_v34 }
 0x3b3   : > { %8331 = vmatmul.mubr.msk.f32.vlgmr.msra.gmra.mrb[0].mxu1 %vm521_vm3, %v12956_v33 }
 0x3b4   : > { %8379 = vmatpush3.msk.msra.mxu1 %vm582_vm0, %v11031_v17  ;;  %8333 = vmatprep.mubr.msk.f32.mxu1 %vm521_vm3, %v11009_v32  ;;  %v4258_v17 = vrot.slane %v10998_v10, 2 }
 0x3b5   : > { %8428 = vmatprep.subr.msk.mxu1 %vm582_vm0, %v7026_v18 }
 0x3b6   : > { %v11465_v56 = vsel %vm1099_vm4, %v4258_v17, %v4259_v4  ;;  %v11483_v17 = vsel %vm1099_vm4, %v4263_v38, %v4264_v9  ;;  %v4268_v4 = vrot.slane %v11044_v27, 2  ;;  %v4274_v9 = vrot.slane %v10866_v11, 2 }
 0x3b7   : > { %8334 = vmatmul.mubr.msk.f32.gmra.mrb[2].mxu1 %vm521_vm3, %v11006_v52  ;;  %12957 = vst [vmem:[#allocation29_spill] sm:$0xff] %v11465_v56 }
 0x3b8   : > { %8336 = vmatprep.mubr.msk.f32.mxu1 %vm521_vm3, %v10998_v10  ;;  %v11503_v38 = vsel %vm1099_vm4, %v4268_v4, %v4269_v36  ;;  %v4278_v4 = vrot.slane %v11091_v25, 2 }
 0x3b9   : > { %12960 = vst [vmem:[#allocation12_spill] sm:$0xff] %v11503_v38 }
 0x3bb   : > { %8337 = vmatmul.mubr.msk.f32.gmra.mrb[4].mxu1 %vm521_vm3, %v12956_v33 }
 0x3bc   : > { %8339 = vmatprep.mubr.msk.f32.mxu1 %vm521_vm3, %v11044_v27 }
 0x3bf   : > { %8340 = vmatmul.mubr.msk.f32.gmra.mrb[6].mxu1 %vm521_vm3, %v10849_v58 }
 0x3c0   : > { %8342 = vmatprep.mubr.msk.f32.mxu1 %vm521_vm3, %v11069_v60 }
 0x3c3   : > { %8343 = vmatmul.mubr.msk.f32.gmra.mrb[8].mxu1 %vm521_vm3, %v10866_v11 }
 0x3c4   : > { %8345 = vmatprep.mubr.msk.f32.mxu1 %vm521_vm3, %v11091_v25 }
 0x3c7   : > { %8346 = vmatmul.mubr.msk.f32.gmra.mrb[10].mxu1 %vm521_vm3, %v10871_v30 }
 0x3c8   : > { %8348 = vmatprep.mubr.msk.f32.mxu1 %vm521_vm3, %v11116_v23 }
 0x3cb   : > { %8349 = vmatmul.mubr.msk.f32.gmra.mrb[12].mxu1 %vm521_vm3, %v10884_v53 }
 0x3cc   : > { %8351 = vmatprep.mubr.msk.f32.mxu1 %vm521_vm3, %v11141_v15 }
 0x3cf   : > { %8352 = vmatmul.mubr.msk.f32.gmra.mrb[14].mxu1 %vm521_vm3, %v10901_v37 }
 0x3d0   : > { %8354 = vmatprep.mubr.msk.f32.mxu1 %vm521_vm3, %v11166_v5 }
 0x3d3   : > { %8355 = vmatmul.mubr.msk.f32.gmra.mrb[16].mxu1 %vm521_vm3, %v10918_v7 }
 0x3d4   : > { %8357 = vmatprep.mubr.msk.f32.mxu1 %vm521_vm3, %v11191_v42 }
 0x3d7   : > { %8358 = vmatmul.mubr.msk.f32.gmra.mrb[18].mxu1 %vm521_vm3, %v12908_v29 }
 0x3d8   : > { %8360 = vmatprep.mubr.msk.f32.mxu1 %vm521_vm3, %v11216_v13 }
 0x3db   : > { %8361 = vmatmul.mubr.msk.f32.gmra.mrb[20].mxu1 %vm521_vm3, %v10936_v59 }
 0x3dc   : > { %8363 = vmatprep.mubr.msk.f32.mxu1 %vm521_vm3, %v11243_v61 }
 0x3df   : > { %8364 = vmatmul.mubr.msk.f32.gmra.mrb[22].mxu1 %vm521_vm3, %v10953_v47 }
 0x3e0   : > { %8366 = vmatprep.mubr.msk.f32.mxu1 %vm521_vm3, %v11272_v14 }
 0x3e3   : > { %8367 = vmatmul.mubr.msk.f32.gmra.mrb[24].mxu1 %vm521_vm3, %v10971_v49 }
 0x3e4   : > { %8369 = vmatprep.mubr.msk.f32.mxu1 %vm521_vm3, %v11306_v24 }
 0x3e7   : > { %8370 = vmatmul.mubr.msk.f32.gmra.mrb[26].mxu1 %vm521_vm3, %v12941_v41 }
 0x3e8   : > { %8372 = vmatprep.mubr.msk.f32.mxu1 %vm521_vm3, %v11331_v44 }
 0x3eb   : > { %8373 = vmatmul.mubr.msk.f32.gmra.mrb[28].mxu1 %vm521_vm3, %v12949_v6 }
 0x3ec   : > { %8375 = vmatprep.mubr.msk.f32.mxu1 %vm521_vm3, %v11354_v43 }
 0x3ef   : > { %8376 = vmatmul.mubr.msk.f32.gmra.mrb[30].mxu1 %vm521_vm3, %v10993_v54 }
 0x3f0   : > { %8380 = vmatprep.mubr.msk.f32.mxu1 %vm521_vm3, %v11465_v56 }
 0x3f3   : > { %8381 = vmatmul.mubr.msk.f32.vlgmr.msra.gmra.mrb[0].mxu1 %vm521_vm3, %v11472_v34 }
 0x3f4   : > { %8429 = vmatpush3.msk.msra.mxu1 %vm582_vm0, %v7026_v18  ;;  %8383 = vmatprep.mubr.msk.f32.mxu1 %vm521_vm3, %v11483_v17  ;;  %v4271_v18 = vrot.slane %v11063_v63, 2  ;;  %v11516_v63 = vsel %vm1099_vm4, %v4273_v3, %v4274_v9  ;;  %v4284_v3 = vrot.slane %v10884_v53, 2 }
 0x3f5   : > { %8478 = vmatprep.subr.msk.mxu1 %vm582_vm0, %v11478_v2  ;;  %12961 = vst [vmem:[#allocation10_spill] sm:$0xff] %v11516_v63 }
 0x3f7   : > { %8384 = vmatmul.mubr.msk.f32.gmra.mrb[2].mxu1 %vm521_vm3, %v11491_v57  ;;  %v11510_v57 = vsel %vm1099_vm4, %v4269_v36, %v4271_v18  ;;  %v4281_v36 = vrot.slane %v11110_v21, 2  ;;  %v4283_v18 = vrot.slane %v11116_v23, 2 }
 0x3f8   : > { %8386 = vmatprep.mubr.msk.f32.mxu1 %vm521_vm3, %v11465_v56  ;;  %v4276_v56 = vrot.slane %v11085_v28, 2 }
 0x3f9   : > { %v11542_v21 = vsel %vm1099_vm4, %v4283_v18, %v4284_v3  ;;  %v4294_v18 = vrot.slane %v10918_v7, 2 }
 0x3fa   : > { %12963 = vst [vmem:[#allocation2_spill] sm:$0xff] %v11542_v21 }
 0x3fb   : > { %8387 = vmatmul.mubr.msk.f32.gmra.mrb[4].mxu1 %vm521_vm3, %v11472_v34  ;;  %v4279_v34 = vrot.slane %v10871_v30, 2 }
 0x3fc   : > { %8389 = vmatprep.mubr.msk.f32.mxu1 %vm521_vm3, %v11503_v38  ;;  %v11523_v38 = vsel %vm1099_vm4, %v4274_v9, %v4276_v56  ;;  %v4286_v56 = vrot.slane %v11135_v45, 2  ;;  %v4288_v9 = vrot.slane %v11141_v15, 2 }
 0x3fd   : > { %v11529_v28 = vsel %vm1099_vm4, %v4278_v4, %v4279_v34  ;;  %v4289_v4 = vrot.slane %v10901_v37, 2 }
 0x3fe   : > { %12962 = vst [vmem:[#allocation41_spill] sm:$0xff] %v11529_v28 }
 0x3ff   : > { %8390 = vmatmul.mubr.msk.f32.gmra.mrb[6].mxu1 %vm521_vm3, %v11510_v57  ;;  %v11555_v45 = vsel %vm1099_vm4, %v4288_v9, %v4289_v4  ;;  %v4299_v9 = vrot.slane %v12908_v29, 2 }
 0x400   : > { %8392 = vmatprep.mubr.msk.f32.mxu1 %vm521_vm3, %v11516_v63  ;;  %v11536_v63 = vsel %vm1099_vm4, %v4279_v34, %v4281_v36  ;;  %v4291_v34 = vrot.slane %v11160_v35, 2  ;;  %12964 = vst [vmem:[#allocation14_spill] sm:$0xff] %v11555_v45  ;;  %v4293_v36 = vrot.slane %v11166_v5, 2 }
 0x402   : > { %v11568_v35 = vsel %vm1099_vm4, %v4293_v36, %v4294_v18  ;;  %v4304_v36 = vrot.slane %v10936_v59, 2 }
 0x403   : > { %8393 = vmatmul.mubr.msk.f32.gmra.mrb[8].mxu1 %vm521_vm3, %v11523_v38  ;;  %12965 = vst [vmem:[#allocation11_spill] sm:$0xff] %v11568_v35 }
 0x404   : > { %8395 = vmatprep.mubr.msk.f32.mxu1 %vm521_vm3, %v11529_v28  ;;  %v11549_v28 = vsel %vm1099_vm4, %v4284_v3, %v4286_v56  ;;  %v4296_v3 = vrot.slane %v11185_v16, 2  ;;  %v4298_v56 = vrot.slane %v11191_v42, 2 }
 0x406   : > { %v11581_v16 = vsel %vm1099_vm4, %v4298_v56, %v4299_v9  ;;  %v4309_v56 = vrot.slane %v10953_v47, 2 }
 0x407   : > { %8396 = vmatmul.mubr.msk.f32.gmra.mrb[10].mxu1 %vm521_vm3, %v11536_v63  ;;  %12966 = vst [vmem:[#allocation13_spill] sm:$0xff] %v11581_v16 }
 0x408   : > { %8398 = vmatprep.mubr.msk.f32.mxu1 %vm521_vm3, %v11542_v21  ;;  %v11562_v21 = vsel %vm1099_vm4, %v4289_v4, %v4291_v34  ;;  %v4301_v4 = vrot.slane %v11210_v46, 2  ;;  %v4303_v34 = vrot.slane %v11216_v13, 2 }
 0x40a   : > { %v11594_v46 = vsel %vm1099_vm4, %v4303_v34, %v4304_v36  ;;  %v4314_v34 = vrot.slane %v10971_v49, 2 }
 0x40b   : > { %8399 = vmatmul.mubr.msk.f32.gmra.mrb[12].mxu1 %vm521_vm3, %v11549_v28  ;;  %12967 = vst [vmem:[#allocation4_spill] sm:$0xff] %v11594_v46 }
 0x40c   : > { %8401 = vmatprep.mubr.msk.f32.mxu1 %vm521_vm3, %v11555_v45  ;;  %v11575_v45 = vsel %vm1099_vm4, %v4294_v18, %v4296_v3  ;;  %v4306_v18 = vrot.slane %v11236_v0, 2  ;;  %v4308_v3 = vrot.slane %v11243_v61, 2 }
 0x40e   : > { %v11607_v0 = vsel %vm1099_vm4, %v4308_v3, %v4309_v56  ;;  %v4319_v3 = vrot.slane %v12941_v41, 2 }
 0x40f   : > { %8402 = vmatmul.mubr.msk.f32.gmra.mrb[14].mxu1 %vm521_vm3, %v11562_v21  ;;  %12969 = vst [vmem:[#allocation44_spill] sm:$0xff] %v11607_v0 }
 0x410   : > { %8404 = vmatprep.mubr.msk.f32.mxu1 %vm521_vm3, %v11568_v35  ;;  %v11588_v35 = vsel %vm1099_vm4, %v4299_v9, %v4301_v4  ;;  %v4311_v9 = vrot.slane %v11266_v51, 2  ;;  %v4313_v4 = vrot.slane %v11272_v14, 2 }
 0x412   : > { %v11620_v51 = vsel %vm1099_vm4, %v4313_v4, %v4314_v34  ;;  %v4324_v4 = vrot.slane %v12949_v6, 2 }
 0x413   : > { %8405 = vmatmul.mubr.msk.f32.gmra.mrb[16].mxu1 %vm521_vm3, %v11575_v45  ;;  %12970 = vst [vmem:[#allocation45_spill] sm:$0xff] %v11620_v51 }
 0x414   : > { %8407 = vmatprep.mubr.msk.f32.mxu1 %vm521_vm3, %v11581_v16  ;;  %v11601_v16 = vsel %vm1099_vm4, %v4304_v36, %v4306_v18  ;;  %v4316_v36 = vrot.slane %v11300_v48, 2  ;;  %v4318_v18 = vrot.slane %v11306_v24, 2 }
 0x415   : > { %12968 = vst [vmem:[#allocation43_spill] sm:$0xff] %v11601_v16 }
 0x416   : > { %v11633_v48 = vsel %vm1099_vm4, %v4318_v18, %v4319_v3  ;;  %v4329_v18 = vrot.slane %v10993_v54, 2 }
 0x417   : > { %8408 = vmatmul.mubr.msk.f32.gmra.mrb[18].mxu1 %vm521_vm3, %v11588_v35  ;;  %12972 = vst [vmem:[#allocation47_spill] sm:$0xff] %v11633_v48 }
 0x418   : > { %8410 = vmatprep.mubr.msk.f32.mxu1 %vm521_vm3, %v11594_v46  ;;  %v11614_v46 = vsel %vm1099_vm4, %v4309_v56, %v4311_v9  ;;  %v4321_v56 = vrot.slane %v11325_v39, 2  ;;  %v4323_v9 = vrot.slane %v11331_v44, 2 }
 0x41a   : > { %v11646_v39 = vsel %vm1099_vm4, %v4323_v9, %v4324_v4  ;;  %v12975_v9 = vld [vmem:[#allocation20_spill] sm:$0xff] }
 0x41b   : > { %8411 = vmatmul.mubr.msk.f32.gmra.mrb[20].mxu1 %vm521_vm3, %v11601_v16  ;;  %12973 = vst [vmem:[#allocation48_spill] sm:$0xff] %v11646_v39 }
 0x41c   : > { %8413 = vmatprep.mubr.msk.f32.mxu1 %vm521_vm3, %v11607_v0  ;;  %v11627_v0 = vsel %vm1099_vm4, %v4314_v34, %v4316_v36  ;;  %v4326_v34 = vrot.slane %v11350_v50, 2  ;;  %v4328_v36 = vrot.slane %v11354_v43, 2 }
 0x41d   : > { %12971 = vst [vmem:[#allocation46_spill] sm:$0xff] %v11627_v0 }
 0x41e   : > { %v11659_v50 = vsel %vm1099_vm4, %v4328_v36, %v4329_v18  ;;  %v12980_v36 = vld [vmem:[#allocation24_spill] sm:$0xff] }
 0x41f   : > { %8414 = vmatmul.mubr.msk.f32.gmra.mrb[22].mxu1 %vm521_vm3, %v11614_v46 }
 0x420   : > { %8416 = vmatprep.mubr.msk.f32.mxu1 %vm521_vm3, %v11620_v51  ;;  %v11640_v51 = vsel %vm1099_vm4, %v4319_v3, %v4321_v56  ;;  %v4331_v3 = vrot.slane %v11371_v12, 2  ;;  %v7094_v12 = vld [vmem:[%s12536_s2 + $0x14] sm:$0xf] }
 0x422   : > { %v11664_v56 = vsel %vm1099_vm4, %v4329_v18, %v4331_v3  ;;  %v12981_v18 = vld [vmem:[#allocation25_spill] sm:$0xff]  ;;  %v12982_v3 = vld [vmem:[#allocation30_spill] sm:$0xff] }
 0x423   : > { %8417 = vmatmul.mubr.msk.f32.gmra.mrb[24].mxu1 %vm521_vm3, %v11627_v0 }
 0x424   : > { %8419 = vmatprep.mubr.msk.f32.mxu1 %vm521_vm3, %v11633_v48  ;;  %v11653_v48 = vsel %vm1099_vm4, %v4324_v4, %v4326_v34  ;;  %v12977_v4 = vld [vmem:[#allocation19_spill] sm:$0xff]  ;;  %v12978_v34 = vld [vmem:[#allocation21_spill] sm:$0xff] }
 0x427   : > { %8420 = vmatmul.mubr.msk.f32.gmra.mrb[26].mxu1 %vm521_vm3, %v11640_v51 }
 0x428   : > { %8422 = vmatprep.mubr.msk.f32.mxu1 %vm521_vm3, %v11646_v39 }
 0x42b   : > { %8423 = vmatmul.mubr.msk.f32.gmra.mrb[28].mxu1 %vm521_vm3, %v11653_v48 }
 0x42c   : > { %8425 = vmatprep.mubr.msk.f32.mxu1 %vm521_vm3, %v11659_v50 }
 0x42f   : > { %8426 = vmatmul.mubr.msk.f32.gmra.mrb[30].mxu1 %vm521_vm3, %v11664_v56 }
 0x430   : > { %8430 = vmatprep.mubr.msk.f32.mxu1 %vm521_vm3, %v11009_v32 }
 0x433   : > { %8431 = vmatmul.mubr.msk.f32.vlgmr.msra.gmra.mrb[0].mxu1 %vm521_vm3, %v11006_v52  ;;  %v12974_v52 = vmax.f32 %v12912_v55, 0.0  ;;  %v7128_v55 = vld [vmem:[%s12536_s2 + $0x18] sm:$0xf] }
 0x434   : > { %8479 = vmatpush3.msk.msra.mxu1 %vm582_vm0, %v11478_v2  ;;  %8433 = vmatprep.mubr.msk.f32.mxu1 %vm521_vm3, %v10998_v10 }
 0x435   : > { %8528 = vmatprep.subr.msk.mxu1 %vm582_vm0, %v7094_v12  ;;  %v3397_v32 = vrot.slane %v12974_v52, 1  ;;  %v12984_v52 = vld [vmem:[#allocation32_spill] sm:$0xff] }
 0x437   : > { %8434 = vmatmul.mubr.msk.f32.gmra.mrb[2].mxu1 %vm521_vm3, %v12956_v33  ;;  %v11738_v2 = vsel %vm267_vm1, %v3397_v32, %v11249_v31  ;;  %v12976_v31 = vld [vmem:[#allocation17_spill] sm:$0xff] }
 0x438   : > { %8436 = vmatprep.mubr.msk.f32.mxu1 %vm521_vm3, %v11044_v27  ;;  %v12985_v32 = vld [vmem:[#allocation33_spill] sm:$0xff] }
 0x43b   : > { %8437 = vmatmul.mubr.msk.f32.gmra.mrb[4].mxu1 %vm521_vm3, %v10849_v58 }
 0x43c   : > { %8439 = vmatprep.mubr.msk.f32.mxu1 %vm521_vm3, %v11069_v60 }
 0x43f   : > { %8440 = vmatmul.mubr.msk.f32.gmra.mrb[6].mxu1 %vm521_vm3, %v10866_v11 }
 0x440   : > { %8442 = vmatprep.mubr.msk.f32.mxu1 %vm521_vm3, %v11091_v25 }
 0x443   : > { %8443 = vmatmul.mubr.msk.f32.gmra.mrb[8].mxu1 %vm521_vm3, %v10871_v30 }
 0x444   : > { %8445 = vmatprep.mubr.msk.f32.mxu1 %vm521_vm3, %v11116_v23 }
 0x447   : > { %8446 = vmatmul.mubr.msk.f32.gmra.mrb[10].mxu1 %vm521_vm3, %v10884_v53 }
 0x448   : > { %8448 = vmatprep.mubr.msk.f32.mxu1 %vm521_vm3, %v11141_v15 }
 0x44b   : > { %8449 = vmatmul.mubr.msk.f32.gmra.mrb[12].mxu1 %vm521_vm3, %v10901_v37 }
 0x44c   : > { %8451 = vmatprep.mubr.msk.f32.mxu1 %vm521_vm3, %v11166_v5 }
 0x44f   : > { %8452 = vmatmul.mubr.msk.f32.gmra.mrb[14].mxu1 %vm521_vm3, %v10918_v7 }
 0x450   : > { %8454 = vmatprep.mubr.msk.f32.mxu1 %vm521_vm3, %v11191_v42 }
 0x453   : > { %8455 = vmatmul.mubr.msk.f32.gmra.mrb[16].mxu1 %vm521_vm3, %v12908_v29 }
 0x454   : > { %8457 = vmatprep.mubr.msk.f32.mxu1 %vm521_vm3, %v11216_v13 }
 0x457   : > { %8458 = vmatmul.mubr.msk.f32.gmra.mrb[18].mxu1 %vm521_vm3, %v10936_v59 }
 0x458   : > { %8460 = vmatprep.mubr.msk.f32.mxu1 %vm521_vm3, %v11243_v61 }
 0x45b   : > { %8461 = vmatmul.mubr.msk.f32.gmra.mrb[20].mxu1 %vm521_vm3, %v10953_v47 }
 0x45c   : > { %8463 = vmatprep.mubr.msk.f32.mxu1 %vm521_vm3, %v11272_v14 }
 0x45f   : > { %8464 = vmatmul.mubr.msk.f32.gmra.mrb[22].mxu1 %vm521_vm3, %v10971_v49 }
 0x460   : > { %8466 = vmatprep.mubr.msk.f32.mxu1 %vm521_vm3, %v11306_v24 }
 0x463   : > { %8467 = vmatmul.mubr.msk.f32.gmra.mrb[24].mxu1 %vm521_vm3, %v12941_v41 }
 0x464   : > { %8469 = vmatprep.mubr.msk.f32.mxu1 %vm521_vm3, %v11331_v44 }
 0x467   : > { %8470 = vmatmul.mubr.msk.f32.gmra.mrb[26].mxu1 %vm521_vm3, %v12949_v6 }
 0x468   : > { %8472 = vmatprep.mubr.msk.f32.mxu1 %vm521_vm3, %v11354_v43 }
 0x46b   : > { %8473 = vmatmul.mubr.msk.f32.gmra.mrb[28].mxu1 %vm521_vm3, %v10993_v54 }
 0x46c   : > { %8475 = vmatprep.mubr.msk.f32.mxu1 %vm521_vm3, %v11738_v2 }
 0x46f   : > { %8476 = vmatmul.mubr.msk.f32.gmra.mrb[30].mxu1 %vm521_vm3, %v11289_v19 }
 0x470   : > { %8480 = vmatprep.mubr.msk.f32.mxu1 %vm521_vm3, %v11038_v8  ;;  %v12979_v8 = vld [vmem:[#allocation23_spill] sm:$0xff] }
 0x473   : > { %8481 = vmatmul.mubr.msk.f32.vlgmr.msra.gmra.mrb[0].mxu1 %vm521_vm3, %v12975_v9  ;;  %v12986_v9 = vld [vmem:[#allocation34_spill] sm:$0xff] }
 0x474   : > { %8529 = vmatpush3.msk.msra.mxu1 %vm582_vm0, %v7094_v12  ;;  %8483 = vmatprep.mubr.msk.f32.mxu1 %vm521_vm3, %v12976_v31  ;;  %v12983_v12 = vld [vmem:[#allocation31_spill] sm:$0xff] }
 0x475   : > { %8578 = vmatprep.subr.msk.mxu1 %vm582_vm0, %v7128_v55 }
 0x477   : > { %8484 = vmatmul.mubr.msk.f32.gmra.mrb[2].mxu1 %vm521_vm3, %v12977_v4 }
 0x478   : > { %8486 = vmatprep.mubr.msk.f32.mxu1 %vm521_vm3, %v12978_v34 }
 0x47b   : > { %8487 = vmatmul.mubr.msk.f32.gmra.mrb[4].mxu1 %vm521_vm3, %v12979_v8  ;;  %v12987_v8 = vld [vmem:[#allocation35_spill] sm:$0xff] }
 0x47c   : > { %8489 = vmatprep.mubr.msk.f32.mxu1 %vm521_vm3, %v12980_v36  ;;  %v12988_v36 = vld [vmem:[#allocation37_spill] sm:$0xff] }
 0x47f   : > { %8490 = vmatmul.mubr.msk.f32.gmra.mrb[6].mxu1 %vm521_vm3, %v12981_v18  ;;  %v12989_v18 = vld [vmem:[#allocation38_spill] sm:$0xff] }
 0x480   : > { %8492 = vmatprep.mubr.msk.f32.mxu1 %vm521_vm3, %v12982_v3  ;;  %v12990_v3 = vld [vmem:[#allocation39_spill] sm:$0xff] }
 0x483   : > { %8493 = vmatmul.mubr.msk.f32.gmra.mrb[8].mxu1 %vm521_vm3, %v12983_v12  ;;  %v12991_v12 = vld [vmem:[#allocation40_spill] sm:$0xff] }
 0x484   : > { %8495 = vmatprep.mubr.msk.f32.mxu1 %vm521_vm3, %v12984_v52  ;;  %v12992_v52 = vld [vmem:[#allocation42_spill] sm:$0xff] }
 0x487   : > { %8496 = vmatmul.mubr.msk.f32.gmra.mrb[10].mxu1 %vm521_vm3, %v12985_v32  ;;  %v12993_v32 = vld [vmem:[#allocation5_spill] sm:$0xff] }
 0x488   : > { %8498 = vmatprep.mubr.msk.f32.mxu1 %vm521_vm3, %v12986_v9  ;;  %v12994_v9 = vld [vmem:[#allocation16_spill] sm:$0xff] }
 0x48b   : > { %8499 = vmatmul.mubr.msk.f32.gmra.mrb[12].mxu1 %vm521_vm3, %v12987_v8  ;;  %v12995_v8 = vld [vmem:[#allocation15_spill] sm:$0xff] }
 0x48c   : > { %8501 = vmatprep.mubr.msk.f32.mxu1 %vm521_vm3, %v12988_v36 }
 0x48f   : > { %8502 = vmatmul.mubr.msk.f32.gmra.mrb[14].mxu1 %vm521_vm3, %v12989_v18 }
 0x490   : > { %8504 = vmatprep.mubr.msk.f32.mxu1 %vm521_vm3, %v12990_v3 }
 0x493   : > { %8505 = vmatmul.mubr.msk.f32.gmra.mrb[16].mxu1 %vm521_vm3, %v12991_v12  ;;  %v12996_v12 = vld [vmem:[#allocation3_spill] sm:$0xff] }
 0x494   : > { %8507 = vmatprep.mubr.msk.f32.mxu1 %vm521_vm3, %v12992_v52  ;;  %v12997_v52 = vmax.f32 %v12996_v12, 0.0 }
 0x496   : > { %v3525_v3 = vrot.slane %v12997_v52, 5  ;;  %v13000_v52 = vld [vmem:[#allocation8_spill] sm:$0xff] }
 0x497   : > { %8508 = vmatmul.mubr.msk.f32.gmra.mrb[18].mxu1 %vm521_vm3, %v12993_v32 }
 0x498   : > { %8510 = vmatprep.mubr.msk.f32.mxu1 %vm521_vm3, %v12994_v9  ;;  %v4924_v9 = vrot.slane %v11289_v19, 1 }
 0x49b   : > { %8511 = vmatmul.mubr.msk.f32.gmra.mrb[20].mxu1 %vm521_vm3, %v12995_v8  ;;  %v4923_v8 = vrot.slane %v11738_v2, 1 }
 0x49c   : > { %8513 = vmatprep.mubr.msk.f32.mxu1 %vm521_vm3, %v11319_v62 }
 0x49f   : > { %8514 = vmatmul.mubr.msk.f32.gmra.mrb[22].mxu1 %vm521_vm3, %v11338_v40  ;;  %v12998_v40 = vld [vmem:[#allocation7_spill] sm:$0xff] }
 0x4a0   : > { %8516 = vmatprep.mubr.msk.f32.mxu1 %vm521_vm3, %v11344_v1  ;;  %v3573_v62 = vsel %vm267_vm1, %v12998_v40, %v3525_v3  ;;  %v12999_v1 = vld [vmem:[#allocation26_spill] sm:$0xff]  ;;  %v7162_v40 = vld [vmem:[%s12536_s2 + $0x1c] sm:$0xf]  ;;  %v13001_v3 = vld [vmem:[#allocation36_spill] sm:$0xff] }
 0x4a1   : > { %v4926_v12 = vrot.slane %v3573_v62, 1 }
 0x4a3   : > { %8517 = vmatmul.mubr.msk.f32.gmra.mrb[24].mxu1 %vm521_vm3, %v11359_v22  ;;  %v11816_v22 = vsel %vm443_vm2, %v4923_v8, %v4924_v9  ;;  %v13002_v8 = vld [vmem:[#allocation29_spill] sm:$0xff] }
 0x4a4   : > { %8519 = vmatprep.mubr.msk.f32.mxu1 %vm521_vm3, %v11365_v20  ;;  %v11821_v20 = vsel %vm443_vm2, %v4924_v9, %v4926_v12  ;;  %v13003_v9 = vld [vmem:[#allocation9_spill] sm:$0xff]  ;;  %v13004_v12 = vld [vmem:[#allocation12_spill] sm:$0xff] }
 0x4a7   : > { %8520 = vmatmul.mubr.msk.f32.gmra.mrb[26].mxu1 %vm521_vm3, %v11376_v26 }
 0x4a8   : > { %8522 = vmatprep.mubr.msk.f32.mxu1 %vm521_vm3, %v12999_v1 }
 0x4ab   : > { %8523 = vmatmul.mubr.msk.f32.gmra.mrb[28].mxu1 %vm521_vm3, %v13000_v52 }
 0x4ac   : > { %8525 = vmatprep.mubr.msk.f32.mxu1 %vm521_vm3, %v11816_v22 }
 0x4af   : > { %8526 = vmatmul.mubr.msk.f32.gmra.mrb[30].mxu1 %vm521_vm3, %v11821_v20 }
 0x4b0   : > { %8530 = vmatprep.mubr.msk.f32.mxu1 %vm521_vm3, %v11483_v17  ;;  %v13005_v17 = vld [vmem:[#allocation10_spill] sm:$0xff] }
 0x4b3   : > { %8531 = vmatmul.mubr.msk.f32.vlgmr.msra.gmra.mrb[0].mxu1 %vm521_vm3, %v13001_v3  ;;  %v13007_v3 = vld [vmem:[#allocation2_spill] sm:$0xff] }
 0x4b4   : > { %8579 = vmatpush3.msk.msra.mxu1 %vm582_vm0, %v7128_v55  ;;  %8533 = vmatprep.mubr.msk.f32.mxu1 %vm521_vm3, %v13002_v8  ;;  %v13006_v55 = vld [vmem:[#allocation41_spill] sm:$0xff] }
 0x4b5   : > { %8628 = vmatprep.subr.msk.mxu1 %vm582_vm0, %v7162_v40 }
 0x4b7   : > { %8534 = vmatmul.mubr.msk.f32.gmra.mrb[2].mxu1 %vm521_vm3, %v13003_v9 }
 0x4b8   : > { %8536 = vmatprep.mubr.msk.f32.mxu1 %vm521_vm3, %v13004_v12  ;;  %v13008_v12 = vld [vmem:[#allocation14_spill] sm:$0xff] }
 0x4bb   : > { %8537 = vmatmul.mubr.msk.f32.gmra.mrb[4].mxu1 %vm521_vm3, %v11510_v57 }
 0x4bc   : > { %8539 = vmatprep.mubr.msk.f32.mxu1 %vm521_vm3, %v13005_v17  ;;  %v13009_v17 = vld [vmem:[#allocation11_spill] sm:$0xff] }
 0x4bf   : > { %8540 = vmatmul.mubr.msk.f32.gmra.mrb[6].mxu1 %vm521_vm3, %v11523_v38 }
 0x4c0   : > { %8542 = vmatprep.mubr.msk.f32.mxu1 %vm521_vm3, %v13006_v55  ;;  %v13010_v55 = vld [vmem:[#allocation13_spill] sm:$0xff] }
 0x4c3   : > { %8543 = vmatmul.mubr.msk.f32.gmra.mrb[8].mxu1 %vm521_vm3, %v11536_v63 }
 0x4c4   : > { %8545 = vmatprep.mubr.msk.f32.mxu1 %vm521_vm3, %v13007_v3  ;;  %v13011_v3 = vld [vmem:[#allocation4_spill] sm:$0xff] }
 0x4c7   : > { %8546 = vmatmul.mubr.msk.f32.gmra.mrb[10].mxu1 %vm521_vm3, %v11549_v28 }
 0x4c8   : > { %8548 = vmatprep.mubr.msk.f32.mxu1 %vm521_vm3, %v13008_v12  ;;  %v13012_v12 = vld [vmem:[#allocation44_spill] sm:$0xff] }
 0x4cb   : > { %8549 = vmatmul.mubr.msk.f32.gmra.mrb[12].mxu1 %vm521_vm3, %v11562_v21 }
 0x4cc   : > { %8551 = vmatprep.mubr.msk.f32.mxu1 %vm521_vm3, %v13009_v17  ;;  %v13013_v17 = vld [vmem:[#allocation45_spill] sm:$0xff] }
 0x4cf   : > { %8552 = vmatmul.mubr.msk.f32.gmra.mrb[14].mxu1 %vm521_vm3, %v11575_v45 }
 0x4d0   : > { %8554 = vmatprep.mubr.msk.f32.mxu1 %vm521_vm3, %v13010_v55  ;;  %v13014_v55 = vld [vmem:[#allocation47_spill] sm:$0xff] }
 0x4d3   : > { %8555 = vmatmul.mubr.msk.f32.gmra.mrb[16].mxu1 %vm521_vm3, %v11588_v35 }
 0x4d4   : > { %8557 = vmatprep.mubr.msk.f32.mxu1 %vm521_vm3, %v13011_v3 }
 0x4d7   : > { %8558 = vmatmul.mubr.msk.f32.gmra.mrb[18].mxu1 %vm521_vm3, %v11601_v16  ;;  %v5195_v16 = vrot.slane %v11289_v19, 2 }
 0x4d8   : > { %8560 = vmatprep.mubr.msk.f32.mxu1 %vm521_vm3, %v13012_v12  ;;  %v5194_v12 = vrot.slane %v11738_v2, 2 }
 0x4db   : > { %8561 = vmatmul.mubr.msk.f32.gmra.mrb[20].mxu1 %vm521_vm3, %v11614_v46 }
 0x4dc   : > { %8563 = vmatprep.mubr.msk.f32.mxu1 %vm521_vm3, %v13013_v17 }
 0x4df   : > { %8564 = vmatmul.mubr.msk.f32.gmra.mrb[22].mxu1 %vm521_vm3, %v11627_v0  ;;  %v5197_v0 = vrot.slane %v3573_v62, 2  ;;  %v7196_v62 = vld [vmem:[%s12536_s2 + $0x20] sm:$0xf] }
 0x4e0   : > { %8566 = vmatprep.mubr.msk.f32.mxu1 %vm521_vm3, %v13014_v55  ;;  %v11893_v55 = vsel %vm1099_vm4, %v5194_v12, %v5195_v16 }
 0x4e3   : > { %8567 = vmatmul.mubr.msk.f32.gmra.mrb[24].mxu1 %vm521_vm3, %v11640_v51 }
 0x4e4   : > { %8569 = vmatprep.mubr.msk.f32.mxu1 %vm521_vm3, %v11646_v39  ;;  %v11898_v39 = vsel %vm1099_vm4, %v5195_v16, %v5197_v0 }
 0x4e7   : > { %8570 = vmatmul.mubr.msk.f32.gmra.mrb[26].mxu1 %vm521_vm3, %v11653_v48 }
 0x4e8   : > { %8572 = vmatprep.mubr.msk.f32.mxu1 %vm521_vm3, %v11659_v50 }
 0x4eb   : > { %8573 = vmatmul.mubr.msk.f32.gmra.mrb[28].mxu1 %vm521_vm3, %v11664_v56 }
 0x4ec   : > { %8575 = vmatprep.mubr.msk.f32.mxu1 %vm521_vm3, %v11893_v55 }
 0x4ef   : > { %8576 = vmatmul.mubr.msk.f32.gmra.mrb[30].mxu1 %vm521_vm3, %v11898_v39 }
 0x4f0   : > { %8580 = vmatprep.mubr.msk.f32.mxu1 %vm521_vm3, %v10998_v10  ;;  %v13025_v10 = vld [vmem:[#allocation40_spill] sm:$0xff] }
 0x4f3   : > { %8581 = vmatmul.mubr.msk.f32.vlgmr.msra.gmra.mrb[0].mxu1 %vm521_vm3, %v12956_v33 }
 0x4f4   : > { %8629 = vmatpush3.msk.msra.mxu1 %vm582_vm0, %v7162_v40  ;;  %8583 = vmatprep.mubr.msk.f32.mxu1 %vm521_vm3, %v11044_v27  ;;  %v13026_v27 = vld [vmem:[#allocation42_spill] sm:$0xff] }
 0x4f5   : > { %8678 = vmatprep.subr.msk.mxu1 %vm582_vm0, %v7196_v62 }
 0x4f7   : > { %8584 = vmatmul.mubr.msk.f32.gmra.mrb[2].mxu1 %vm521_vm3, %v10849_v58  ;;  %v13016_v58 = vld [vmem:[#allocation24_spill] sm:$0xff] }
 0x4f8   : > { %8586 = vmatprep.mubr.msk.f32.mxu1 %vm521_vm3, %v11069_v60  ;;  %v13027_v60 = vld [vmem:[#allocation16_spill] sm:$0xff] }
 0x4fb   : > { %8587 = vmatmul.mubr.msk.f32.gmra.mrb[4].mxu1 %vm521_vm3, %v10866_v11  ;;  %v13017_v11 = vld [vmem:[#allocation25_spill] sm:$0xff] }
 0x4fc   : > { %8589 = vmatprep.mubr.msk.f32.mxu1 %vm521_vm3, %v11091_v25  ;;  %v13028_v25 = vld [vmem:[#allocation15_spill] sm:$0xff] }
 0x4ff   : > { %8590 = vmatmul.mubr.msk.f32.gmra.mrb[6].mxu1 %vm521_vm3, %v10871_v30  ;;  %v13023_v30 = vld [vmem:[#allocation35_spill] sm:$0xff] }
 0x500   : > { %8592 = vmatprep.mubr.msk.f32.mxu1 %vm521_vm3, %v11116_v23  ;;  %v13029_v23 = vld [vmem:[#allocation18_spill] sm:$0xff] }
 0x503   : > { %8593 = vmatmul.mubr.msk.f32.gmra.mrb[8].mxu1 %vm521_vm3, %v10884_v53  ;;  %v13019_v53 = vld [vmem:[#allocation31_spill] sm:$0xff] }
 0x504   : > { %8595 = vmatprep.mubr.msk.f32.mxu1 %vm521_vm3, %v11141_v15  ;;  %v13030_v15 = vld [vmem:[#allocation6_spill] sm:$0xff] }
 0x507   : > { %8596 = vmatmul.mubr.msk.f32.gmra.mrb[10].mxu1 %vm521_vm3, %v10901_v37  ;;  %v13020_v37 = vld [vmem:[#allocation32_spill] sm:$0xff] }
 0x508   : > { %8598 = vmatprep.mubr.msk.f32.mxu1 %vm521_vm3, %v11166_v5  ;;  %v13031_v5 = vld [vmem:[#allocation22_spill] sm:$0xff] }
 0x50b   : > { %8599 = vmatmul.mubr.msk.f32.gmra.mrb[12].mxu1 %vm521_vm3, %v10918_v7  ;;  %v13021_v7 = vld [vmem:[#allocation33_spill] sm:$0xff] }
 0x50c   : > { %8601 = vmatprep.mubr.msk.f32.mxu1 %vm521_vm3, %v11191_v42  ;;  %v13032_v42 = vld [vmem:[#allocation27_spill] sm:$0xff] }
 0x50f   : > { %8602 = vmatmul.mubr.msk.f32.gmra.mrb[14].mxu1 %vm521_vm3, %v12908_v29  ;;  %v13034_v29 = vld [vmem:[#allocation12_spill] sm:$0xff] }
 0x510   : > { %8604 = vmatprep.mubr.msk.f32.mxu1 %vm521_vm3, %v11216_v13  ;;  %v13035_v13 = vld [vmem:[#allocation10_spill] sm:$0xff] }
 0x513   : > { %8605 = vmatmul.mubr.msk.f32.gmra.mrb[16].mxu1 %vm521_vm3, %v10936_v59  ;;  %v13022_v59 = vld [vmem:[#allocation34_spill] sm:$0xff] }
 0x514   : > { %8607 = vmatprep.mubr.msk.f32.mxu1 %vm521_vm3, %v11243_v61  ;;  %v13033_v61 = vld [vmem:[#allocation28_spill] sm:$0xff] }
 0x517   : > { %8608 = vmatmul.mubr.msk.f32.gmra.mrb[18].mxu1 %vm521_vm3, %v10953_v47  ;;  %v13024_v47 = vld [vmem:[#allocation39_spill] sm:$0xff] }
 0x518   : > { %8610 = vmatprep.mubr.msk.f32.mxu1 %vm521_vm3, %v11272_v14  ;;  %v13036_v14 = vld [vmem:[#allocation41_spill] sm:$0xff] }
 0x51b   : > { %8611 = vmatmul.mubr.msk.f32.gmra.mrb[20].mxu1 %vm521_vm3, %v10971_v49  ;;  %v13015_v49 = vld [vmem:[#allocation23_spill] sm:$0xff] }
 0x51c   : > { %8613 = vmatprep.mubr.msk.f32.mxu1 %vm521_vm3, %v11306_v24  ;;  %v13037_v24 = vld [vmem:[#allocation2_spill] sm:$0xff] }
 0x51f   : > { %8614 = vmatmul.mubr.msk.f32.gmra.mrb[22].mxu1 %vm521_vm3, %v12941_v41  ;;  %v13039_v41 = vld [vmem:[#allocation11_spill] sm:$0xff] }
 0x520   : > { %8616 = vmatprep.mubr.msk.f32.mxu1 %vm521_vm3, %v11331_v44  ;;  %v13040_v44 = vld [vmem:[#allocation13_spill] sm:$0xff] }
 0x523   : > { %8617 = vmatmul.mubr.msk.f32.gmra.mrb[24].mxu1 %vm521_vm3, %v12949_v6  ;;  %v13042_v6 = vld [vmem:[#allocation44_spill] sm:$0xff] }
 0x524   : > { %8619 = vmatprep.mubr.msk.f32.mxu1 %vm521_vm3, %v11354_v43 }
 0x527   : > { %8620 = vmatmul.mubr.msk.f32.gmra.mrb[26].mxu1 %vm521_vm3, %v10993_v54 }
 0x528   : > { %8622 = vmatprep.mubr.msk.f32.mxu1 %vm521_vm3, %v11738_v2 }
 0x52b   : > { %8623 = vmatmul.mubr.msk.f32.gmra.mrb[28].mxu1 %vm521_vm3, %v11289_v19  ;;  %v13038_v19 = vld [vmem:[#allocation14_spill] sm:$0xff] }
 0x52c   : > { %8625 = vmatprep.mubr.msk.f32.mxu1 %vm521_vm3, %v11354_v43  ;;  %v13043_v43 = vld [vmem:[#allocation46_spill] sm:$0xff] }
 0x52f   : > { %8626 = vmatmul.mubr.msk.f32.gmra.mrb[30].mxu1 %vm521_vm3, %v10993_v54  ;;  %v13018_v54 = vld [vmem:[#allocation30_spill] sm:$0xff] }
 0x530   : > { %8630 = vmatprep.mubr.msk.f32.mxu1 %vm521_vm3, %v12976_v31 }
 0x533   : > { %8631 = vmatmul.mubr.msk.f32.vlgmr.msra.gmra.mrb[0].mxu1 %vm521_vm3, %v12977_v4 }
 0x534   : > { %8679 = vmatpush3.msk.msra.mxu1 %vm582_vm0, %v7196_v62  ;;  %8633 = vmatprep.mubr.msk.f32.mxu1 %vm521_vm3, %v12978_v34 }
 0x537   : > { %8634 = vmatmul.mubr.msk.f32.gmra.mrb[2].mxu1 %vm521_vm3, %v13015_v49 }
 0x538   : > { %8636 = vmatprep.mubr.msk.f32.mxu1 %vm521_vm3, %v13016_v58 }
 0x53b   : > { %8637 = vmatmul.mubr.msk.f32.gmra.mrb[4].mxu1 %vm521_vm3, %v13017_v11 }
 0x53c   : > { %8639 = vmatprep.mubr.msk.f32.mxu1 %vm521_vm3, %v13018_v54 }
 0x53f   : > { %8640 = vmatmul.mubr.msk.f32.gmra.mrb[6].mxu1 %vm521_vm3, %v13019_v53 }
 0x540   : > { %8642 = vmatprep.mubr.msk.f32.mxu1 %vm521_vm3, %v13020_v37 }
 0x543   : > { %8643 = vmatmul.mubr.msk.f32.gmra.mrb[8].mxu1 %vm521_vm3, %v13021_v7 }
 0x544   : > { %8645 = vmatprep.mubr.msk.f32.mxu1 %vm521_vm3, %v13022_v59 }
 0x547   : > { %8646 = vmatmul.mubr.msk.f32.gmra.mrb[10].mxu1 %vm521_vm3, %v13023_v30 }
 0x548   : > { %8648 = vmatprep.mubr.msk.f32.mxu1 %vm521_vm3, %v12988_v36 }
 0x54b   : > { %8649 = vmatmul.mubr.msk.f32.gmra.mrb[12].mxu1 %vm521_vm3, %v12989_v18 }
 0x54c   : > { %8651 = vmatprep.mubr.msk.f32.mxu1 %vm521_vm3, %v13024_v47 }
 0x54f   : > { %8652 = vmatmul.mubr.msk.f32.gmra.mrb[14].mxu1 %vm521_vm3, %v13025_v10 }
 0x550   : > { %8654 = vmatprep.mubr.msk.f32.mxu1 %vm521_vm3, %v13026_v27 }
 0x553   : > { %8655 = vmatmul.mubr.msk.f32.gmra.mrb[16].mxu1 %vm521_vm3, %v12993_v32 }
 0x554   : > { %8657 = vmatprep.mubr.msk.f32.mxu1 %vm521_vm3, %v13027_v60 }
 0x557   : > { %8658 = vmatmul.mubr.msk.f32.gmra.mrb[18].mxu1 %vm521_vm3, %v13028_v25 }
 0x558   : > { %8660 = vmatprep.mubr.msk.f32.mxu1 %vm521_vm3, %v13029_v23 }
 0x55b   : > { %8661 = vmatmul.mubr.msk.f32.gmra.mrb[20].mxu1 %vm521_vm3, %v13030_v15 }
 0x55c   : > { %8663 = vmatprep.mubr.msk.f32.mxu1 %vm521_vm3, %v13031_v5 }
 0x55f   : > { %8664 = vmatmul.mubr.msk.f32.gmra.mrb[22].mxu1 %vm521_vm3, %v13032_v42 }
 0x560   : > { %8666 = vmatprep.mubr.msk.f32.mxu1 %vm521_vm3, %v13033_v61 }
 0x563   : > { %8667 = vmatmul.mubr.msk.f32.gmra.mrb[24].mxu1 %vm521_vm3, %v11376_v26 }
 0x564   : > { %8669 = vmatprep.mubr.msk.f32.mxu1 %vm521_vm3, %v12999_v1 }
 0x567   : > { %8670 = vmatmul.mubr.msk.f32.gmra.mrb[26].mxu1 %vm521_vm3, %v13000_v52 }
 0x568   : > { %8672 = vmatprep.mubr.msk.f32.mxu1 %vm521_vm3, %v11816_v22  ;;  %v13044_v22 = vld [vmem:[#allocation47_spill] sm:$0xff] }
 0x56b   : > { %8673 = vmatmul.mubr.msk.f32.gmra.mrb[28].mxu1 %vm521_vm3, %v11821_v20  ;;  %v13045_v20 = vld [vmem:[#allocation48_spill] sm:$0xff] }
 0x56c   : > { %8675 = vmatprep.mubr.msk.f32.mxu1 %vm521_vm3, %v12999_v1  ;;  %v13041_v1 = vld [vmem:[#allocation43_spill] sm:$0xff] }
 0x56f   : > { %8676 = vmatmul.mubr.msk.f32.gmra.mrb[30].mxu1 %vm521_vm3, %v13000_v52 }
 0x570   : > { %8680 = vmatprep.mubr.msk.f32.mxu1 %vm521_vm3, %v13002_v8 }
 0x573   : > { %8681 = vmatmul.mubr.msk.f32.vlgmr.msra.gmra.mrb[0].mxu1 %vm521_vm3, %v13003_v9 }
 0x574   : > { %8683 = vmatprep.mubr.msk.f32.mxu1 %vm521_vm3, %v13034_v29 }
 0x577   : > { %8684 = vmatmul.mubr.msk.f32.gmra.mrb[2].mxu1 %vm521_vm3, %v11510_v57 }
 0x578   : > { %8686 = vmatprep.mubr.msk.f32.mxu1 %vm521_vm3, %v13035_v13 }
 0x57b   : > { %8687 = vmatmul.mubr.msk.f32.gmra.mrb[4].mxu1 %vm521_vm3, %v11523_v38 }
 0x57c   : > { %8689 = vmatprep.mubr.msk.f32.mxu1 %vm521_vm3, %v13036_v14 }
 0x57f   : > { %8690 = vmatmul.mubr.msk.f32.gmra.mrb[6].mxu1 %vm521_vm3, %v11536_v63 }
 0x580   : > { %8692 = vmatprep.mubr.msk.f32.mxu1 %vm521_vm3, %v13037_v24 }
 0x583   : > { %8693 = vmatmul.mubr.msk.f32.gmra.mrb[8].mxu1 %vm521_vm3, %v11549_v28 }
 0x584   : > { %8695 = vmatprep.mubr.msk.f32.mxu1 %vm521_vm3, %v13038_v19 }
 0x587   : > { %8696 = vmatmul.mubr.msk.f32.gmra.mrb[10].mxu1 %vm521_vm3, %v11562_v21 }
 0x588   : > { %8698 = vmatprep.mubr.msk.f32.mxu1 %vm521_vm3, %v13039_v41 }
 0x58b   : > { %8699 = vmatmul.mubr.msk.f32.gmra.mrb[12].mxu1 %vm521_vm3, %v11575_v45 }
 0x58c   : > { %8701 = vmatprep.mubr.msk.f32.mxu1 %vm521_vm3, %v13040_v44 }
 0x58f   : > { %8702 = vmatmul.mubr.msk.f32.gmra.mrb[14].mxu1 %vm521_vm3, %v11588_v35 }
 0x590   : > { %8704 = vmatprep.mubr.msk.f32.mxu1 %vm521_vm3, %v13011_v3 }
 0x593   : > { %8705 = vmatmul.mubr.msk.f32.gmra.mrb[16].mxu1 %vm521_vm3, %v13041_v1 }
 0x594   : > { %8707 = vmatprep.mubr.msk.f32.mxu1 %vm521_vm3, %v13042_v6 }
 0x597   : > { %8708 = vmatmul.mubr.msk.f32.gmra.mrb[18].mxu1 %vm521_vm3, %v11614_v46 }
 0x598   : > { %8710 = vmatprep.mubr.msk.f32.mxu1 %vm521_vm3, %v13013_v17 }
 0x59b   : > { %8711 = vmatmul.mubr.msk.f32.gmra.mrb[20].mxu1 %vm521_vm3, %v13043_v43 }
 0x59c   : > { %8713 = vmatprep.mubr.msk.f32.mxu1 %vm521_vm3, %v13044_v22 }
 0x59f   : > { %8714 = vmatmul.mubr.msk.f32.gmra.mrb[22].mxu1 %vm521_vm3, %v11640_v51 }
 0x5a0   : > { %8716 = vmatprep.mubr.msk.f32.mxu1 %vm521_vm3, %v13045_v20 }
 0x5a3   : > { %8717 = vmatmul.mubr.msk.f32.gmra.mrb[24].mxu1 %vm521_vm3, %v11653_v48 }
 0x5a4   : > { %8719 = vmatprep.mubr.msk.f32.mxu1 %vm521_vm3, %v11659_v50 }
 0x5a7   : > { %8720 = vmatmul.mubr.msk.f32.gmra.mrb[26].mxu1 %vm521_vm3, %v11664_v56 }
 0x5a8   : > { %8722 = vmatprep.mubr.msk.f32.mxu1 %vm521_vm3, %v11893_v55 }
 0x5ab   : > { %8723 = vmatmul.mubr.msk.f32.gmra.mrb[28].mxu1 %vm521_vm3, %v11898_v39 }
 0x5ac   : > { %8725 = vmatprep.mubr.msk.f32.mxu1 %vm521_vm3, %v11659_v50 }
 0x5af   : > { %8726 = vmatmul.mubr.msk.f32.gmra.mrb[30].mxu1 %vm521_vm3, %v11664_v56 }
 0x646   : > { %v12100_v26 = vpop.f32.mrb[0].mxu1 }
 0x647   : > { %v6252_v33 = vsel %vm521_vm3, %v12100_v26, 0.0  ;;  %v6321_v57 = vmul.f32 %v12100_v26, %v12100_v26  ;;  %v12106_v38 = vpop.f32.mrb[1].mxu1 }
 0x648   : > { %v6251_v63 = vsel %vm521_vm3, %v12106_v38, 0.0  ;;  %v6320_v28 = vmul.f32 %v12106_v38, %v12106_v38 }
 0x649   : > { %v6353_v21 = vsel %vm521_vm3, %v6321_v57, 0.0  ;;  %v6253_v45 = vadd.f32 %v6252_v33, %v6251_v63 }
 0x64a   : > { %v6352_v35 = vsel %vm521_vm3, %v6320_v28, 0.0  ;;  %v12114_v16 = vpop.f32.mrb[2].mxu1 }
 0x64b   : > { %v6354_v46 = vadd.f32 %v6353_v21, %v6352_v35  ;;  %v12116_v0 = vpop.f32.mrb[3].mxu1  ;;  %v6323_v51 = vmul.f32 %v12114_v16, %v12114_v16  ;;  %v6256_v56 = vsel %vm521_vm3, %v12114_v16, 0.0 }
 0x64c   : > { %v6254_v48 = vsel %vm521_vm3, %v12116_v0, 0.0  ;;  %v6322_v39 = vmul.f32 %v12116_v0, %v12116_v0 }
 0x64d   : > { %v6255_v50 = vadd.f32 %v6254_v48, %v6253_v45  ;;  %v6357_v18 = vsel %vm521_vm3, %v6323_v51, 0.0 }
 0x64e   : > { %v6355_v2 = vsel %vm521_vm3, %v6322_v39, 0.0  ;;  %v12127_v31 = vpop.f32.mrb[4].mxu1 }
 0x64f   : > { %v6356_v4 = vadd.f32 %v6355_v2, %v6354_v46  ;;  %v12129_v34 = vpop.f32.mrb[5].mxu1  ;;  %v6257_v36 = vadd.f32 %v6256_v56, %v6255_v50  ;;  %v6325_v32 = vmul.f32 %v12127_v31, %v12127_v31  ;;  %v6260_v12 = vsel %vm521_vm3, %v12127_v31, 0.0 }
 0x650   : > { %v6258_v52 = vsel %vm521_vm3, %v12129_v34, 0.0  ;;  %v6324_v40 = vmul.f32 %v12129_v34, %v12129_v34 }
 0x651   : > { %v6259_v8 = vadd.f32 %v6258_v52, %v6257_v36  ;;  %v6358_v9 = vadd.f32 %v6357_v18, %v6356_v4  ;;  %v6361_v58 = vsel %vm521_vm3, %v6325_v32, 0.0 }
 0x652   : > { %v6359_v17 = vsel %vm521_vm3, %v6324_v40, 0.0  ;;  %v12141_v55 = vpop.f32.mrb[6].mxu1 }
 0x653   : > { %v6360_v3 = vadd.f32 %v6359_v17, %v6358_v9  ;;  %v12143_v62 = vpop.f32.mrb[7].mxu1  ;;  %v6261_v49 = vadd.f32 %v6260_v12, %v6259_v8  ;;  %v6327_v11 = vmul.f32 %v12141_v55, %v12141_v55  ;;  %v6264_v59 = vsel %vm521_vm3, %v12141_v55, 0.0 }
 0x654   : > { %v6262_v54 = vsel %vm521_vm3, %v12143_v62, 0.0  ;;  %v6326_v53 = vmul.f32 %v12143_v62, %v12143_v62 }
 0x655   : > { %v6263_v37 = vadd.f32 %v6262_v54, %v6261_v49  ;;  %v6362_v7 = vadd.f32 %v6361_v58, %v6360_v3  ;;  %v6365_v25 = vsel %vm521_vm3, %v6327_v11, 0.0 }
 0x656   : > { %v6363_v30 = vsel %vm521_vm3, %v6326_v53, 0.0  ;;  %v12155_v47 = vpop.f32.mrb[8].mxu1 }
 0x657   : > { %v6364_v10 = vadd.f32 %v6363_v30, %v6362_v7  ;;  %v12157_v27 = vpop.f32.mrb[9].mxu1  ;;  %v6265_v60 = vadd.f32 %v6264_v59, %v6263_v37  ;;  %v6329_v23 = vmul.f32 %v12155_v47, %v12155_v47  ;;  %v6268_v29 = vsel %vm521_vm3, %v12155_v47, 0.0 }
 0x658   : > { %v6266_v15 = vsel %vm521_vm3, %v12157_v27, 0.0  ;;  %v6328_v5 = vmul.f32 %v12157_v27, %v12157_v27 }
 0x659   : > { %v6267_v42 = vadd.f32 %v6266_v15, %v6265_v60  ;;  %v6366_v61 = vadd.f32 %v6365_v25, %v6364_v10  ;;  %v6369_v44 = vsel %vm521_vm3, %v6329_v23, 0.0 }
 0x65a   : > { %v6367_v13 = vsel %vm521_vm3, %v6328_v5, 0.0  ;;  %v12169_v14 = vpop.f32.mrb[10].mxu1 }
 0x65b   : > { %v6368_v24 = vadd.f32 %v6367_v13, %v6366_v61  ;;  %v12171_v19 = vpop.f32.mrb[11].mxu1  ;;  %v6269_v41 = vadd.f32 %v6268_v29, %v6267_v42  ;;  %v6331_v1 = vmul.f32 %v12169_v14, %v12169_v14  ;;  %v6272_v33 = vsel %vm521_vm3, %v12169_v14, 0.0 }
 0x65c   : > { %v6270_v6 = vsel %vm521_vm3, %v12171_v19, 0.0  ;;  %v6330_v43 = vmul.f32 %v12171_v19, %v12171_v19 }
 0x65d   : > { %v6271_v22 = vadd.f32 %v6270_v6, %v6269_v41  ;;  %v6370_v20 = vadd.f32 %v6369_v44, %v6368_v24  ;;  %v6373_v35 = vsel %vm521_vm3, %v6331_v1, 0.0 }
 0x65e   : > { %v6371_v57 = vsel %vm521_vm3, %v6330_v43, 0.0  ;;  %v12183_v63 = vpop.f32.mrb[12].mxu1 }
 0x65f   : > { %v6372_v28 = vadd.f32 %v6371_v57, %v6370_v20  ;;  %v12185_v21 = vpop.f32.mrb[13].mxu1  ;;  %v6273_v45 = vadd.f32 %v6272_v33, %v6271_v22  ;;  %v6333_v46 = vmul.f32 %v12183_v63, %v12183_v63  ;;  %v6276_v56 = vsel %vm521_vm3, %v12183_v63, 0.0 }
 0x660   : > { %v6274_v51 = vsel %vm521_vm3, %v12185_v21, 0.0  ;;  %v6332_v48 = vmul.f32 %v12185_v21, %v12185_v21 }
 0x661   : > { %v6275_v39 = vadd.f32 %v6274_v51, %v6273_v45  ;;  %v6374_v50 = vadd.f32 %v6373_v35, %v6372_v28  ;;  %v6377_v52 = vsel %vm521_vm3, %v6333_v46, 0.0 }
 0x662   : > { %v6375_v2 = vsel %vm521_vm3, %v6332_v48, 0.0  ;;  %v12197_v4 = vpop.f32.mrb[14].mxu1 }
 0x663   : > { %v6376_v36 = vadd.f32 %v6375_v2, %v6374_v50  ;;  %v12199_v18 = vpop.f32.mrb[15].mxu1  ;;  %v6277_v32 = vadd.f32 %v6276_v56, %v6275_v39  ;;  %v6335_v40 = vmul.f32 %v12197_v4, %v12197_v4  ;;  %v6280_v3 = vsel %vm521_vm3, %v12197_v4, 0.0 }
 0x664   : > { %v6278_v8 = vsel %vm521_vm3, %v12199_v18, 0.0  ;;  %v6334_v9 = vmul.f32 %v12199_v18, %v12199_v18 }
 0x665   : > { %v6279_v12 = vadd.f32 %v6278_v8, %v6277_v32  ;;  %v6378_v17 = vadd.f32 %v6377_v52, %v6376_v36  ;;  %v6381_v37 = vsel %vm521_vm3, %v6335_v40, 0.0 }
 0x666   : > { %v6379_v49 = vsel %vm521_vm3, %v6334_v9, 0.0  ;;  %v12211_v58 = vpop.f32.mrb[16].mxu1 }
 0x667   : > { %v6380_v11 = vadd.f32 %v6379_v49, %v6378_v17  ;;  %v12213_v54 = vpop.f32.mrb[17].mxu1  ;;  %v6281_v53 = vadd.f32 %v6280_v3, %v6279_v12  ;;  %v6337_v7 = vmul.f32 %v12211_v58, %v12211_v58  ;;  %v6284_v25 = vsel %vm521_vm3, %v12211_v58, 0.0 }
 0x668   : > { %v6282_v59 = vsel %vm521_vm3, %v12213_v54, 0.0  ;;  %v6336_v30 = vmul.f32 %v12213_v54, %v12213_v54 }
 0x669   : > { %v6283_v10 = vadd.f32 %v6282_v59, %v6281_v53  ;;  %v6382_v60 = vadd.f32 %v6381_v37, %v6380_v11  ;;  %v6385_v29 = vsel %vm521_vm3, %v6337_v7, 0.0 }
 0x66a   : > { %v6383_v23 = vsel %vm521_vm3, %v6336_v30, 0.0  ;;  %v12225_v15 = vpop.f32.mrb[18].mxu1 }
 0x66b   : > { %v6384_v5 = vadd.f32 %v6383_v23, %v6382_v60  ;;  %v12227_v42 = vpop.f32.mrb[19].mxu1  ;;  %v6285_v61 = vadd.f32 %v6284_v25, %v6283_v10  ;;  %v6339_v13 = vmul.f32 %v12225_v15, %v12225_v15  ;;  %v6288_v6 = vsel %vm521_vm3, %v12225_v15, 0.0 }
 0x66c   : > { %v6286_v24 = vsel %vm521_vm3, %v12227_v42, 0.0  ;;  %v6338_v41 = vmul.f32 %v12227_v42, %v12227_v42 }
 0x66d   : > { %v6287_v44 = vadd.f32 %v6286_v24, %v6285_v61  ;;  %v6386_v1 = vadd.f32 %v6385_v29, %v6384_v5  ;;  %v6389_v28 = vsel %vm521_vm3, %v6339_v13, 0.0 }
 0x66e   : > { %v6387_v43 = vsel %vm521_vm3, %v6338_v41, 0.0  ;;  %v12239_v22 = vpop.f32.mrb[20].mxu1 }
 0x66f   : > { %v6388_v20 = vadd.f32 %v6387_v43, %v6386_v1  ;;  %v12241_v33 = vpop.f32.mrb[21].mxu1  ;;  %v6289_v57 = vadd.f32 %v6288_v6, %v6287_v44  ;;  %v6341_v45 = vmul.f32 %v12239_v22, %v12239_v22  ;;  %v6292_v39 = vsel %vm521_vm3, %v12239_v22, 0.0 }
 0x670   : > { %v6290_v35 = vsel %vm521_vm3, %v12241_v33, 0.0  ;;  %v6340_v46 = vmul.f32 %v12241_v33, %v12241_v33 }
 0x671   : > { %v6291_v51 = vadd.f32 %v6290_v35, %v6289_v57  ;;  %v6390_v48 = vadd.f32 %v6389_v28, %v6388_v20  ;;  %v6393_v52 = vsel %vm521_vm3, %v6341_v45, 0.0 }
 0x672   : > { %v6391_v50 = vsel %vm521_vm3, %v6340_v46, 0.0  ;;  %v12253_v56 = vpop.f32.mrb[22].mxu1 }
 0x673   : > { %v6392_v2 = vadd.f32 %v6391_v50, %v6390_v48  ;;  %v12255_v36 = vpop.f32.mrb[23].mxu1  ;;  %v6293_v32 = vadd.f32 %v6292_v39, %v6291_v51  ;;  %v6343_v40 = vmul.f32 %v12253_v56, %v12253_v56  ;;  %v6296_v3 = vsel %vm521_vm3, %v12253_v56, 0.0 }
 0x674   : > { %v6294_v8 = vsel %vm521_vm3, %v12255_v36, 0.0  ;;  %v6342_v9 = vmul.f32 %v12255_v36, %v12255_v36 }
 0x675   : > { %v6295_v12 = vadd.f32 %v6294_v8, %v6293_v32  ;;  %v6394_v17 = vadd.f32 %v6393_v52, %v6392_v2  ;;  %v6397_v59 = vsel %vm521_vm3, %v6343_v40, 0.0 }
 0x676   : > { %v6395_v49 = vsel %vm521_vm3, %v6342_v9, 0.0  ;;  %v12267_v11 = vpop.f32.mrb[24].mxu1 }
 0x677   : > { %v6396_v53 = vadd.f32 %v6395_v49, %v6394_v17  ;;  %v12269_v37 = vpop.f32.mrb[25].mxu1  ;;  %v6297_v7 = vadd.f32 %v6296_v3, %v6295_v12  ;;  %v6345_v30 = vmul.f32 %v12267_v11, %v12267_v11  ;;  %v6300_v5 = vsel %vm521_vm3, %v12267_v11, 0.0 }
 0x678   : > { %v6298_v10 = vsel %vm521_vm3, %v12269_v37, 0.0  ;;  %v6344_v60 = vmul.f32 %v12269_v37, %v12269_v37 }
 0x679   : > { %v6299_v25 = vadd.f32 %v6298_v10, %v6297_v7  ;;  %v6398_v23 = vadd.f32 %v6397_v59, %v6396_v53  ;;  %v6401_v44 = vsel %vm521_vm3, %v6345_v30, 0.0 }
 0x67a   : > { %v6399_v61 = vsel %vm521_vm3, %v6344_v60, 0.0  ;;  %v12281_v29 = vpop.f32.mrb[26].mxu1 }
 0x67b   : > { %v6400_v13 = vadd.f32 %v6399_v61, %v6398_v23  ;;  %v12283_v24 = vpop.f32.mrb[27].mxu1  ;;  %v6301_v41 = vadd.f32 %v6300_v5, %v6299_v25  ;;  %v6347_v1 = vmul.f32 %v12281_v29, %v12281_v29  ;;  %v6304_v28 = vsel %vm521_vm3, %v12281_v29, 0.0 }
 0x67c   : > { %v6302_v6 = vsel %vm521_vm3, %v12283_v24, 0.0  ;;  %v6346_v43 = vmul.f32 %v12283_v24, %v12283_v24 }
 0x67d   : > { %v6303_v20 = vadd.f32 %v6302_v6, %v6301_v41  ;;  %v6402_v57 = vadd.f32 %v6401_v44, %v6400_v13  ;;  %v6405_v39 = vsel %vm521_vm3, %v6347_v1, 0.0 }
 0x67e   : > { %v6403_v45 = vsel %vm521_vm3, %v6346_v43, 0.0  ;;  %v12295_v35 = vpop.f32.mrb[28].mxu1 }
 0x67f   : > { %v6404_v46 = vadd.f32 %v6403_v45, %v6402_v57  ;;  %v12297_v51 = vpop.f32.mrb[29].mxu1  ;;  %v6305_v48 = vadd.f32 %v6304_v28, %v6303_v20  ;;  %v6349_v50 = vmul.f32 %v12295_v35, %v12295_v35  ;;  %v6308_v8 = vsel %vm521_vm3, %v12295_v35, 0.0 }
 0x680   : > { %v6306_v2 = vsel %vm521_vm3, %v12297_v51, 0.0  ;;  %v6348_v32 = vmul.f32 %v12297_v51, %v12297_v51 }
 0x681   : > { %v6307_v52 = vadd.f32 %v6306_v2, %v6305_v48  ;;  %v6406_v40 = vadd.f32 %v6405_v39, %v6404_v46  ;;  %v6409_v53 = vsel %vm521_vm3, %v6349_v50, 0.0 }
 0x682   : > { %v6407_v9 = vsel %vm521_vm3, %v6348_v32, 0.0  ;;  %v12309_v12 = vpop.f32.mrb[30].mxu1 }
 0x683   : > { %v6408_v17 = vadd.f32 %v6407_v9, %v6406_v40  ;;  %v12311_v3 = vpop.f32.mrb[31].mxu1  ;;  %v6309_v49 = vadd.f32 %v6308_v8, %v6307_v52  ;;  %v6351_v7 = vmul.f32 %v12309_v12, %v12309_v12  ;;  %v6312_v25 = vsel %vm521_vm3, %v12309_v12, 0.0 }
 0x684   : > { %v6310_v59 = vsel %vm521_vm3, %v12311_v3, 0.0  ;;  %v6350_v30 = vmul.f32 %v12311_v3, %v12311_v3 }
 0x685   : > { %v6311_v10 = vadd.f32 %v6310_v59, %v6309_v49  ;;  %v6410_v60 = vadd.f32 %v6409_v53, %v6408_v17  ;;  %v6413_v13 = vsel %vm521_vm3, %v6351_v7, 0.0 }
 0x686   : > { %v6411_v23 = vsel %vm521_vm3, %v6350_v30, 0.0 }
 0x687   : > { %v6313_v5 = vadd.f32 %v6312_v25, %v6311_v10  ;;  %v6412_v61 = vadd.f32 %v6411_v23, %v6410_v60 }
 0x689   : > { %v6314_v41 = vrot.slane %v6313_v5, 4  ;;  %v6414_v44 = vadd.f32 %v6413_v13, %v6412_v61 }
 0x68b   : > { %v6315_v1 = vadd.f32 %v6314_v41, %v6313_v5  ;;  %v6415_v6 = vrot.slane %v6414_v44, 4 }
 0x68d   : > { %v6316_v43 = vrot.slane %v6315_v1, 2  ;;  %v6416_v20 = vadd.f32 %v6415_v6, %v6414_v44 }
 0x68f   : > { %v6317_v57 = vadd.f32 %v6316_v43, %v6315_v1  ;;  %v6417_v28 = vrot.slane %v6416_v20, 2 }
 0x691   : > { %v6318_v45 = vrot.slane %v6317_v57, 1  ;;  %v6418_v46 = vadd.f32 %v6417_v28, %v6416_v20 }
 0x693   : > { %v6319_v48 = vadd.f32 %v6318_v45, %v6317_v57  ;;  %v6419_v39 = vrot.slane %v6418_v46, 1 }
 0x695   : > { %v6420_v50 = vadd.f32 %v6419_v39, %v6418_v46  ;;  %v12324_v2 = vmul.f32 0.00390625, %v6319_v48 }
 0x697   : > { %v6422_v32 = vmul.f32 0.00390625, %v6420_v50  ;;  %v6423_v52 = vmul.f32 %v12324_v2, %v12324_v2  ;;  %v6426_v40 = vsub.f32 %v12106_v38, %v12324_v2  ;;  %v6427_v8 = vsub.f32 %v12100_v26, %v12324_v2 }
 0x698   : > { %v6428_v9 = vsub.f32 %v12116_v0, %v12324_v2  ;;  %v6429_v17 = vsub.f32 %v12114_v16, %v12324_v2  ;;  %v6430_v49 = vsub.f32 %v12129_v34, %v12324_v2  ;;  %v6431_v53 = vsub.f32 %v12127_v31, %v12324_v2 }
 0x699   : > { %v6424_v7 = vsub.f32 %v6422_v32, %v6423_v52  ;;  %v6432_v59 = vsub.f32 %v12143_v62, %v12324_v2  ;;  %v6433_v38 = vsub.f32 %v12141_v55, %v12324_v2  ;;  %v6434_v26 = vsub.f32 %v12157_v27, %v12324_v2 }
 0x69a   : > { %v6435_v0 = vsub.f32 %v12155_v47, %v12324_v2  ;;  %v6436_v16 = vsub.f32 %v12171_v19, %v12324_v2  ;;  %v6437_v34 = vsub.f32 %v12169_v14, %v12324_v2  ;;  %v6438_v31 = vsub.f32 %v12185_v21, %v12324_v2 }
 0x69b   : > { %v6425_v30 = vmax.f32 %v6424_v7, 0.0  ;;  %v6439_v62 = vsub.f32 %v12183_v63, %v12324_v2  ;;  %v6440_v55 = vsub.f32 %v12199_v18, %v12324_v2  ;;  %v6441_v27 = vsub.f32 %v12197_v4, %v12324_v2  ;;  %v9253_v7 = vld [vmem:[%s9337_s21 + $0x8] sm:$0xff] }
 0x69c   : > { %v6442_v47 = vsub.f32 %v12213_v54, %v12324_v2  ;;  %v6443_v19 = vsub.f32 %v12211_v58, %v12324_v2  ;;  %v6444_v14 = vsub.f32 %v12227_v42, %v12324_v2  ;;  %v6445_v21 = vsub.f32 %v12225_v15, %v12324_v2 }
 0x69d   : > { %v6446_v63 = vsub.f32 %v12241_v33, %v12324_v2  ;;  %v6447_v18 = vsub.f32 %v12239_v22, %v12324_v2  ;;  %v6448_v4 = vsub.f32 %v12255_v36, %v12324_v2  ;;  %v6449_v54 = vsub.f32 %v12253_v56, %v12324_v2 }
 0x69e   : > { %v6450_v58 = vsub.f32 %v12269_v37, %v12324_v2  ;;  %v6451_v42 = vsub.f32 %v12267_v11, %v12324_v2  ;;  %v6452_v15 = vsub.f32 %v12283_v24, %v12324_v2  ;;  %v6453_v33 = vsub.f32 %v12281_v29, %v12324_v2 }
 0x69f   : > { %v6454_v22 = vsub.f32 %v12297_v51, %v12324_v2  ;;  %v6455_v36 = vsub.f32 %v12295_v35, %v12324_v2  ;;  %v6456_v56 = vsub.f32 %v12311_v3, %v12324_v2  ;;  %v6457_v37 = vsub.f32 %v12309_v12, %v12324_v2 }
 0x6a0   : > { %v6458_v10 = vadd.f32 1e-05, %v6425_v30  ;;  %v9257_v30 = vld [vmem:[%s9337_s21 + $0x28] sm:$0xff] }
 0x6a2   : > { %9250 = vrsqrt.f32 %v6458_v10  ;;  %v9267_v10 = vld [vmem:[%s9337_s21 + $0x78] sm:$0xff] }
 0x6ac   : > { %v9251_v11 = vpop.eup %9250 }
 0x6ad   : > { %v6460_v60 = vmul.f32 %v9251_v11, %v6426_v40  ;;  %v6461_v24 = vmul.f32 %v9251_v11, %v6427_v8  ;;  %v6462_v25 = vmul.f32 %v9251_v11, %v6428_v9  ;;  %v6463_v23 = vmul.f32 %v9251_v11, %v6429_v17 }
 0x6ae   : > { %v6464_v29 = vmul.f32 %v9251_v11, %v6430_v49  ;;  %v6465_v5 = vmul.f32 %v9251_v11, %v6431_v53  ;;  %v6466_v61 = vmul.f32 %v9251_v11, %v6432_v59  ;;  %v6467_v51 = vmul.f32 %v9251_v11, %v6433_v38  ;;  %v9252_v49 = vld [vmem:[%s9337_s21] sm:$0xff]  ;;  %v9254_v38 = vld [vmem:[%s9337_s21 + $0x10] sm:$0xff] }
 0x6af   : > { %v6468_v13 = vmul.f32 %v9251_v11, %v6434_v26  ;;  %v6469_v41 = vmul.f32 %v9251_v11, %v6435_v0  ;;  %v6470_v35 = vmul.f32 %v9251_v11, %v6436_v16  ;;  %v6471_v44 = vmul.f32 %v9251_v11, %v6437_v34  ;;  %v9255_v0 = vld [vmem:[%s9337_s21 + $0x18] sm:$0xff]  ;;  %v9256_v34 = vld [vmem:[%s9337_s21 + $0x20] sm:$0xff] }
 0x6b0   : > { %v6472_v1 = vmul.f32 %v9251_v11, %v6438_v31  ;;  %v6473_v3 = vmul.f32 %v9251_v11, %v6439_v62  ;;  %v6474_v6 = vmul.f32 %v9251_v11, %v6440_v55  ;;  %v6475_v12 = vmul.f32 %v9251_v11, %v6441_v27  ;;  %v9258_v55 = vld [vmem:[%s9337_s21 + $0x30] sm:$0xff] }
 0x6b1   : > { %v6476_v43 = vmul.f32 %v9251_v11, %v6442_v47  ;;  %v6477_v20 = vmul.f32 %v9251_v11, %v6443_v19  ;;  %v6478_v57 = vmul.f32 %v9251_v11, %v6444_v14  ;;  %v6479_v28 = vmul.f32 %v9251_v11, %v6445_v21  ;;  %v9259_v47 = vld [vmem:[%s9337_s21 + $0x38] sm:$0xff]  ;;  %v9260_v14 = vld [vmem:[%s9337_s21 + $0x40] sm:$0xff] }
 0x6b2   : > { %v12392_v45 = vmul.f32 %v9251_v11, %v6446_v63  ;;  %v12394_v46 = vmul.f32 %v9251_v11, %v6447_v18  ;;  %v12396_v48 = vmul.f32 %v9251_v11, %v6448_v4  ;;  %v12398_v39 = vmul.f32 %v9251_v11, %v6449_v54  ;;  %v9261_v63 = vld [vmem:[%s9337_s21 + $0x48] sm:$0xff]  ;;  %v9262_v4 = vld [vmem:[%s9337_s21 + $0x50] sm:$0xff] }
 0x6b3   : > { %v12400_v50 = vmul.f32 %v9251_v11, %v6450_v58  ;;  %v12402_v2 = vmul.f32 %v9251_v11, %v6451_v42  ;;  %v12404_v32 = vmul.f32 %v9251_v11, %v6452_v15  ;;  %v12406_v52 = vmul.f32 %v9251_v11, %v6453_v33  ;;  %v9263_v58 = vld [vmem:[%s9337_s21 + $0x58] sm:$0xff]  ;;  %v9264_v15 = vld [vmem:[%s9337_s21 + $0x60] sm:$0xff] }
 0x6b4   : > { %v12415_v40 = vmul.f32 %v9251_v11, %v6454_v22  ;;  %v12417_v8 = vmul.f32 %v9251_v11, %v6455_v36  ;;  %v12419_v9 = vmul.f32 %v9251_v11, %v6456_v56  ;;  %v12421_v17 = vmul.f32 %v9251_v11, %v6457_v37  ;;  %v9265_v22 = vld [vmem:[%s9337_s21 + $0x68] sm:$0xff]  ;;  %v9266_v56 = vld [vmem:[%s9337_s21 + $0x70] sm:$0xff] }
 0x6b5   : > { %v6492_v53 = vadd.f32 %v9252_v49, %v6460_v60  ;;  %v6493_v59 = vadd.f32 %v9253_v7, %v6461_v24  ;;  %v6494_v26 = vadd.f32 %v9254_v38, %v6462_v25  ;;  %v6495_v16 = vadd.f32 %v9255_v0, %v6463_v23  ;;  %v9268_v60 = vld [vmem:[%s9337_s21 + $0x80] sm:$0xff]  ;;  %v9269_v25 = vld [vmem:[%s9337_s21 + $0x88] sm:$0xff]  ;;  %v9282_v49 = vld [vmem:[%s9337_s21 + $0xf0] sm:$0xff] }
 0x6b6   : > { %v6496_v31 = vadd.f32 %v9256_v34, %v6464_v29  ;;  %v6497_v62 = vadd.f32 %v9257_v30, %v6465_v5  ;;  %v6498_v27 = vadd.f32 %v9258_v55, %v6466_v61  ;;  %v6499_v19 = vadd.f32 %v9259_v47, %v6467_v51  ;;  %v9270_v29 = vld [vmem:[%s9337_s21 + $0x90] sm:$0xff]  ;;  %v9271_v61 = vld [vmem:[%s9337_s21 + $0x98] sm:$0xff] }
 0x6b7   : > { %v6500_v21 = vadd.f32 %v9260_v14, %v6468_v13  ;;  %v6501_v18 = vadd.f32 %v9261_v63, %v6469_v41  ;;  %v6502_v54 = vadd.f32 %v9262_v4, %v6470_v35  ;;  %v6503_v42 = vadd.f32 %v9263_v58, %v6471_v44  ;;  %6524 = vst.msk [vmem:[%s12413_s6] sm:$0xff] %vm521_vm3, %v6492_v53  ;;  %v9272_v13 = vld [vmem:[%s9337_s21 + $0xa0] sm:$0xff]  ;;  %v9273_v35 = vld [vmem:[%s9337_s21 + $0xa8] sm:$0xff]  ;;  %v9283_v7 = vld [vmem:[%s9337_s21 + $0xf8] sm:$0xff] }
 0x6b8   : > { %6525 = vst.msk [vmem:[%s12413_s6 + $0x8] sm:$0xff] %vm521_vm3, %v6493_v59  ;;  %6526 = vst.msk [vmem:[%s12413_s6 + $0x10] sm:$0xff] %vm521_vm3, %v6494_v26  ;;  %v6504_v33 = vadd.f32 %v9264_v15, %v6472_v1  ;;  %v6505_v36 = vadd.f32 %v9265_v22, %v6473_v3  ;;  %v6506_v37 = vadd.f32 %v9266_v56, %v6474_v6  ;;  %v9274_v1 = vld [vmem:[%s9337_s21 + $0xb0] sm:$0xff]  ;;  %v9275_v6 = vld [vmem:[%s9337_s21 + $0xb8] sm:$0xff] }
 0x6b9   : > { %6527 = vst.msk [vmem:[%s12413_s6 + $0x18] sm:$0xff] %vm521_vm3, %v6495_v16  ;;  %v6507_v11 = vadd.f32 %v9267_v10, %v6475_v12  ;;  %6528 = vst.msk [vmem:[%s12413_s6 + $0x20] sm:$0xff] %vm521_vm3, %v6496_v31  ;;  %v6508_v24 = vadd.f32 %v9268_v60, %v6476_v43  ;;  %v6509_v23 = vadd.f32 %v9269_v25, %v6477_v20  ;;  %v9276_v43 = vld [vmem:[%s9337_s21 + $0xc0] sm:$0xff] }
 0x6ba   : > { %6529 = vst.msk [vmem:[%s12413_s6 + $0x28] sm:$0xff] %vm521_vm3, %v6497_v62  ;;  %6530 = vst.msk [vmem:[%s12413_s6 + $0x30] sm:$0xff] %vm521_vm3, %v6498_v27  ;;  %v6510_v5 = vadd.f32 %v9270_v29, %v6478_v57  ;;  %v6511_v51 = vadd.f32 %v9271_v61, %v6479_v28  ;;  %v6512_v41 = vadd.f32 %v9272_v13, %v12392_v45  ;;  %v9277_v57 = vld [vmem:[%s9337_s21 + $0xc8] sm:$0xff]  ;;  %v9278_v45 = vld [vmem:[%s9337_s21 + $0xd0] sm:$0xff] }
 0x6bb   : > { %6531 = vst.msk [vmem:[%s12413_s6 + $0x38] sm:$0xff] %vm521_vm3, %v6499_v19  ;;  %6532 = vst.msk [vmem:[%s12413_s6 + $0x40] sm:$0xff] %vm521_vm3, %v6500_v21  ;;  %v6513_v44 = vadd.f32 %v9273_v35, %v12394_v46  ;;  %v6514_v3 = vadd.f32 %v9274_v1, %v12396_v48  ;;  %v6515_v12 = vadd.f32 %v9275_v6, %v12398_v39  ;;  %v9279_v48 = vld [vmem:[%s9337_s21 + $0xd8] sm:$0xff] }
 0x6bc   : > { %6533 = vst.msk [vmem:[%s12413_s6 + $0x48] sm:$0xff] %vm521_vm3, %v6501_v18  ;;  %6534 = vst.msk [vmem:[%s12413_s6 + $0x50] sm:$0xff] %vm521_vm3, %v6502_v54  ;;  %v6516_v20 = vadd.f32 %v9276_v43, %v12400_v50  ;;  %v6517_v28 = vadd.f32 %v9277_v57, %v12402_v2  ;;  %v6518_v46 = vadd.f32 %v9278_v45, %v12404_v32  ;;  %v9280_v50 = vld [vmem:[%s9337_s21 + $0xe0] sm:$0xff]  ;;  %v9281_v32 = vld [vmem:[%s9337_s21 + $0xe8] sm:$0xff] }
 0x6bd   : > { %6535 = vst.msk [vmem:[%s12413_s6 + $0x58] sm:$0xff] %vm521_vm3, %v6503_v42  ;;  %6536 = vst.msk [vmem:[%s12413_s6 + $0x60] sm:$0xff] %vm521_vm3, %v6504_v33  ;;  %v6519_v39 = vadd.f32 %v9279_v48, %v12406_v52  ;;  %v6520_v2 = vadd.f32 %v9280_v50, %v12415_v40  ;;  %v6521_v52 = vadd.f32 %v9281_v32, %v12417_v8 }
 0x6be   : > { %6537 = vst.msk [vmem:[%s12413_s6 + $0x68] sm:$0xff] %vm521_vm3, %v6505_v36  ;;  %6538 = vst.msk [vmem:[%s12413_s6 + $0x70] sm:$0xff] %vm521_vm3, %v6506_v37  ;;  %v6522_v53 = vadd.f32 %v9282_v49, %v12419_v9  ;;  %v6523_v59 = vadd.f32 %v9283_v7, %v12421_v17 }
 0x6bf   : > { %6539 = vst.msk [vmem:[%s12413_s6 + $0x78] sm:$0xff] %vm521_vm3, %v6507_v11  ;;  %6540 = vst.msk [vmem:[%s12413_s6 + $0x80] sm:$0xff] %vm521_vm3, %v6508_v24 }
 0x6c0   : > { %6541 = vst.msk [vmem:[%s12413_s6 + $0x88] sm:$0xff] %vm521_vm3, %v6509_v23  ;;  %6542 = vst.msk [vmem:[%s12413_s6 + $0x90] sm:$0xff] %vm521_vm3, %v6510_v5 }
 0x6c1   : > { %6543 = vst.msk [vmem:[%s12413_s6 + $0x98] sm:$0xff] %vm521_vm3, %v6511_v51  ;;  %6544 = vst.msk [vmem:[%s12413_s6 + $0xa0] sm:$0xff] %vm521_vm3, %v6512_v41 }
 0x6c2   : > { %6545 = vst.msk [vmem:[%s12413_s6 + $0xa8] sm:$0xff] %vm521_vm3, %v6513_v44  ;;  %6546 = vst.msk [vmem:[%s12413_s6 + $0xb0] sm:$0xff] %vm521_vm3, %v6514_v3 }
 0x6c3   : > { %6547 = vst.msk [vmem:[%s12413_s6 + $0xb8] sm:$0xff] %vm521_vm3, %v6515_v12  ;;  %6548 = vst.msk [vmem:[%s12413_s6 + $0xc0] sm:$0xff] %vm521_vm3, %v6516_v20 }
 0x6c4   : > { %6549 = vst.msk [vmem:[%s12413_s6 + $0xc8] sm:$0xff] %vm521_vm3, %v6517_v28  ;;  %6550 = vst.msk [vmem:[%s12413_s6 + $0xd0] sm:$0xff] %vm521_vm3, %v6518_v46 }
 0x6c5   : > { %6551 = vst.msk [vmem:[%s12413_s6 + $0xd8] sm:$0xff] %vm521_vm3, %v6519_v39  ;;  %6552 = vst.msk [vmem:[%s12413_s6 + $0xe0] sm:$0xff] %vm521_vm3, %v6520_v2 }
 0x6c6   : > { %6553 = vst.msk [vmem:[%s12413_s6 + $0xe8] sm:$0xff] %vm521_vm3, %v6521_v52  ;;  %6554 = vst.msk [vmem:[%s12413_s6 + $0xf0] sm:$0xff] %vm521_vm3, %v6522_v53 }
 0x6c7   : > { %6555 = vst.msk [vmem:[%s12413_s6 + $0xf8] sm:$0xff] %vm521_vm3, %v6523_v59 }
 0x6c8 PF: > { %s13_s12 = sadd.s32 1, %s9290_s12  }
 0x6c9   : > { %p10_p4 = scmp.ge.s32.totalorder %s13_s12, 4  }
 0x6cb   :  { %12 = sbr.rel (!%p10_p4) target bundleno = 1 (0x1), region = 78 }

</bundles_post_ra>
